<compile_context>
chip_gen: v7x
topology: tpu7x:2x2x1
jax: 0.10.0
libtpu: 0.0.40
codegen_flags: <defaults>
</compile_context>

<pallas_src>
import numpy as np
import jax
import jax.numpy as jnp
from jax import lax
from jax.experimental import pallas as pl
from jax.experimental.pallas import tpu as pltpu


# --------------------------- fused block kernel -----------------------------
def _make_dense_block_kernel(num_layers, c0, growth, cmid, D, H, W):
    dhw = D * H * W
    HW = H * W

    def kernel(*refs):
        x_ref = refs[0]                          # (c0, dhw)
        mask_ref = refs[1]                       # (27, 1, dhw)
        param_refs = refs[2:2 + 4 * num_layers]  # (w1, b1, w2, b2) per layer
        o_ref = refs[2 + 4 * num_layers]         # (c_final, dhw), VMEM-resident
        col_ref = refs[3 + 4 * num_layers]       # (27*cmid, dhw) scratch

        # Seed the concatenated feature map with the input channels.
        o_ref[0:c0, :] = x_ref[...]

        cin = c0
        for l in range(num_layers):
            w1_ref, b1_ref, w2_ref, b2_ref = param_refs[4 * l:4 * l + 4]

            # conv1 (1x1x1, BN1 scale folded into w1) + bias + ReLU.
            h = jnp.dot(w1_ref[...], o_ref[0:cin, :],
                        preferred_element_type=jnp.float32)
            h = jnp.maximum(h + b1_ref[...], 0.0)            # (cmid, dhw)

            # conv2 (3x3x3, pad=1): build im2col with lane rolls (XLU) and
            # precomputed boundary masks, writing 8-aligned sublane slices;
            # then one K = 27*cmid MXU matmul.
            t = 0
            for dz in (-1, 0, 1):
                for dy in (-1, 0, 1):
                    for dx in (-1, 0, 1):
                        off = dz * HW + dy * W + dx
                        if off == 0:
                            sh = h
                        else:
                            sh = pltpu.roll(h, (-off) % dhw, axis=1)
                            sh = sh * mask_ref[t]            # (1, dhw) bcast
                        col_ref[t * cmid:(t + 1) * cmid, :] = sh
                        t += 1

            y = jnp.dot(w2_ref[...], col_ref[...],
                        preferred_element_type=jnp.float32)
            y = jnp.maximum(y + b2_ref[...], 0.0)            # (growth, dhw)

            # "Concatenate": append this layer's channels to the feature map.
            o_ref[cin:cin + growth, :] = y
            cin += growth

    return kernel


def _make_tap_masks(D, H, W):
    """(27, 1, D*H*W) f32 validity masks for the 3x3x3 taps (padding=1)."""
    z, y, x = np.meshgrid(np.arange(D), np.arange(H), np.arange(W),
                          indexing="ij")
    rows = []
    for dz in (-1, 0, 1):
        for dy in (-1, 0, 1):
            for dx in (-1, 0, 1):
                ok = ((0 <= z + dz) & (z + dz < D) &
                      (0 <= y + dy) & (y + dy < H) &
                      (0 <= x + dx) & (x + dx < W))
                rows.append(ok.reshape(-1).astype(np.float32))
    return jnp.asarray(np.stack(rows)[:, None, :])


def dense_block_pallas(x_ncdhw, layer_params, growth):
    """Fused DenseBlock forward. x: (N, C0, D, H, W) f32 (PyTorch NCDHW)."""
    N, C0, D, H, W = x_ncdhw.shape
    L = len(layer_params)
    cmid = layer_params[0][0].shape[0]
    c_final = C0 + L * growth
    dhw = D * H * W

    x2 = x_ncdhw.reshape(N, C0, dhw)          # wrapper-side reshape (cheap)
    tap_mask = _make_tap_masks(D, H, W)

    flat_params = []
    in_specs = [
        pl.BlockSpec((None, C0, dhw), lambda n: (n, 0, 0)),
        pl.BlockSpec((27, 1, dhw), lambda n: (0, 0, 0)),
    ]
    for (w1, b1, w2, b2) in layer_params:
        for p in (w1, b1, w2, b2):
            flat_params.append(p)
            in_specs.append(pl.BlockSpec(p.shape, lambda n: (0, 0)))

    kernel = _make_dense_block_kernel(L, C0, growth, cmid, D, H, W)

    out = pl.pallas_call(
        kernel,
        out_shape=jax.ShapeDtypeStruct((N, c_final, dhw), x_ncdhw.dtype),
        grid_spec=pltpu.PrefetchScalarGridSpec(
            num_scalar_prefetch=0,
            grid=(N,),
            in_specs=in_specs,
            out_specs=pl.BlockSpec((None, c_final, dhw), lambda n: (n, 0, 0)),
            scratch_shapes=[pltpu.VMEM((27 * cmid, dhw), jnp.float32)],
        ),
        compiler_params=pltpu.CompilerParams(
            dimension_semantics=("parallel",)),
    )(x2, tap_mask, *flat_params)

    return out.reshape(N, c_final, D, H, W)


# ---------------- deterministic parameter construction ----------------------
def make_dense_layer_params(key, c_in, growth):
    c_mid, c_out = 4 * growth, growth
    k1, k2, k3, k4, k5, k6 = jax.random.split(key, 6)
    w1 = 0.2 * jax.random.normal(k1, (c_mid, c_in), jnp.float32)
    s1 = 1.0 + 0.1 * jax.random.normal(k2, (c_mid,), jnp.float32)
    b1 = 0.1 * jax.random.normal(k3, (c_mid,), jnp.float32)
    w2 = 0.1 * jax.random.normal(k4, (3, 3, 3, c_mid, c_out), jnp.float32)
    s2 = 1.0 + 0.1 * jax.random.normal(k5, (c_out,), jnp.float32)
    b2 = 0.1 * jax.random.normal(k6, (c_out,), jnp.float32)

    # Fold eval-mode BN scales into the conv weights (exact: scale precedes ReLU).
    w1_f = w1 * s1[:, None]                                      # (Cmid, Cin)
    b1_f = b1[:, None]                                           # (Cmid, 1)
    # (kz,ky,kx,ci,co) -> (co, tap, ci) -> (Cout, 27*Cmid), tap = kz*9+ky*3+kx
    w2_f = jnp.transpose(w2.reshape(27, c_mid, c_out), (2, 0, 1))
    w2_f = (w2_f.reshape(c_out, 27 * c_mid)) * s2[:, None]
    b2_f = b2[:, None]                                           # (Cout, 1)

    kernel_params = (w1_f, b1_f, w2_f, b2_f)
    ref_params = (w1, s1, b1, w2, s2, b2)
    return kernel_params, ref_params


# ---------------- pure-JAX reference (for correctness check) ----------------
def dense_layer_ref(x_ndhwc, w1, s1, b1, w2_dhwio, s2, b2):
    h = jnp.einsum("ndhwc,mc->ndhwm", x_ndhwc, w1)
    h = jnp.maximum(h * s1 + b1, 0.0)
    y = lax.conv_general_dilated(
        h, w2_dhwio, window_strides=(1, 1, 1), padding=[(1, 1)] * 3,
        dimension_numbers=("NDHWC", "DHWIO", "NDHWC"))
    return jnp.maximum(y * s2 + b2, 0.0)


if __name__ == "__main__":
    N, C0, D, H, W = 2, 4, 8, 8, 8       # D*H*W = 512 -> lane-dense
    growth, num_layers = 4, 2

    key = jax.random.PRNGKey(0)
    kx, kp = jax.random.split(key)
    x_ncdhw = jax.random.normal(kx, (N, C0, D, H, W), jnp.float32)

    layer_params, ref_params = [], []
    c = C0
    for _ in range(num_layers):
        kp, ki = jax.random.split(kp)
        kparams, rparams = make_dense_layer_params(ki, c, growth)
        layer_params.append(kparams)
        ref_params.append(rparams)
        c += growth

    out = jax.block_until_ready(
        dense_block_pallas(x_ncdhw, layer_params, growth))

    # Reference DenseBlock (NDHWC), then back to NCDHW for comparison.
    xr = jnp.transpose(x_ncdhw, (0, 2, 3, 4, 1))
    for (w1, s1, b1, w2_dhwio, s2, b2) in ref_params:
        yr = dense_layer_ref(xr, w1, s1, b1, w2_dhwio, s2, b2)
        xr = jnp.concatenate([xr, yr], axis=-1)
    ref_ncdhw = jnp.transpose(xr, (0, 4, 1, 2, 3))

    assert out.shape == (N, C0 + num_layers * growth, D, H, W)
    assert bool(jnp.allclose(out, ref_ncdhw, atol=1e-4, rtol=1e-4)), \
        float(jnp.max(jnp.abs(out - ref_ncdhw)))

    jax.block_until_ready(out)
    print("KERNEL_OK")
</pallas_src>

<mosaic_0001>
module attributes {stable_mosaic.version = 11 : i64} {
  func.func @kernel(%arg0: i32, %arg1: memref<1x4x512xf32, #tpu.memory_space<vmem>>, %arg2: memref<27x1x512xf32, #tpu.memory_space<vmem>>, %arg3: memref<16x4xf32, #tpu.memory_space<vmem>>, %arg4: memref<16x1xf32, #tpu.memory_space<vmem>>, %arg5: memref<4x432xf32, #tpu.memory_space<vmem>>, %arg6: memref<4x1xf32, #tpu.memory_space<vmem>>, %arg7: memref<16x8xf32, #tpu.memory_space<vmem>>, %arg8: memref<16x1xf32, #tpu.memory_space<vmem>>, %arg9: memref<4x432xf32, #tpu.memory_space<vmem>>, %arg10: memref<4x1xf32, #tpu.memory_space<vmem>>, %arg11: memref<1x12x512xf32, #tpu.memory_space<vmem>>, %arg12: memref<432x512xf32, #tpu.memory_space<vmem>>) attributes {dimension_semantics = [#tpu.dimension_semantics<parallel>], iteration_bounds = array<i64: 2>, scalar_prefetch = 0 : i64, scratch_operands = 1 : i64, tpu.core_type = #tpu.core_type<tc>, window_params = [{transform_indices = @transform_0, window_bounds = array<i64: 1, 4, 512>}, {pipeline_mode = #tpu.pipeline_mode<synchronous>, transform_indices = @transform_1, window_bounds = array<i64: 27, 1, 512>}, {pipeline_mode = #tpu.pipeline_mode<synchronous>, transform_indices = @transform_2, window_bounds = array<i64: 16, 4>}, {pipeline_mode = #tpu.pipeline_mode<synchronous>, transform_indices = @transform_3, window_bounds = array<i64: 16, 1>}, {pipeline_mode = #tpu.pipeline_mode<synchronous>, transform_indices = @transform_4, window_bounds = array<i64: 4, 432>}, {pipeline_mode = #tpu.pipeline_mode<synchronous>, transform_indices = @transform_5, window_bounds = array<i64: 4, 1>}, {pipeline_mode = #tpu.pipeline_mode<synchronous>, transform_indices = @transform_6, window_bounds = array<i64: 16, 8>}, {pipeline_mode = #tpu.pipeline_mode<synchronous>, transform_indices = @transform_7, window_bounds = array<i64: 16, 1>}, {pipeline_mode = #tpu.pipeline_mode<synchronous>, transform_indices = @transform_8, window_bounds = array<i64: 4, 432>}, {pipeline_mode = #tpu.pipeline_mode<synchronous>, transform_indices = @transform_9, window_bounds = array<i64: 4, 1>}, {transform_indices = @transform_10, window_bounds = array<i64: 1, 12, 512>}]} {
    %c0 = arith.constant 0 : index
    %c0_0 = arith.constant 0 : index
    %c0_1 = arith.constant 0 : index
    %0 = vector.load %arg1[%c0, %c0_0, %c0_1] : memref<1x4x512xf32, #tpu.memory_space<vmem>>, vector<1x4x512xf32>
    %1 = vector.shape_cast %0 : vector<1x4x512xf32> to vector<4x512xf32>
    %c0_2 = arith.constant 0 : index
    %c0_3 = arith.constant 0 : index
    %c0_4 = arith.constant 0 : index
    %2 = vector.load %arg11[%c0_2, %c0_3, %c0_4] : memref<1x12x512xf32, #tpu.memory_space<vmem>>, vector<1x4x512xf32>
    %3 = vector.shape_cast %2 : vector<1x4x512xf32> to vector<4x512xf32>
    %4 = vector.shape_cast %1 : vector<4x512xf32> to vector<1x4x512xf32>
    tpu.vector_store %arg11[%c0_2, %c0_3, %c0_4], %4 {strides = array<i32>} : memref<1x12x512xf32, #tpu.memory_space<vmem>>, vector<1x4x512xf32>,
    %c0_5 = arith.constant 0 : index
    %c0_6 = arith.constant 0 : index
    %5 = vector.load %arg3[%c0_5, %c0_6] : memref<16x4xf32, #tpu.memory_space<vmem>>, vector<16x4xf32>
    %c0_7 = arith.constant 0 : index
    %c0_8 = arith.constant 0 : index
    %c0_9 = arith.constant 0 : index
    %6 = vector.load %arg11[%c0_7, %c0_8, %c0_9] : memref<1x12x512xf32, #tpu.memory_space<vmem>>, vector<1x4x512xf32>
    %7 = vector.shape_cast %6 : vector<1x4x512xf32> to vector<4x512xf32>
    %cst = arith.constant dense<0.000000e+00> : vector<16x512xf32>
    %8 = tpu.matmul %5, %7, %cst {dimension_numbers = #tpu.dot_dimension_numbers<[1], [0], [0], [1], [0, 0, 1, 1], [], []>} : vector<16x4xf32>, vector<4x512xf32>, vector<16x512xf32> -> vector<16x512xf32>
    %c0_10 = arith.constant 0 : index
    %c0_11 = arith.constant 0 : index
    %9 = vector.load %arg4[%c0_10, %c0_11] : memref<16x1xf32, #tpu.memory_space<vmem>>, vector<16x1xf32>
    %10 = vector.broadcast %9 : vector<16x1xf32> to vector<16x512xf32>
    %11 = arith.addf %8, %10 : vector<16x512xf32>
    %cst_12 = arith.constant 0.000000e+00 : f32
    %12 = vector.broadcast %cst_12 : f32 to vector<16x512xf32>
    %13 = arith.maximumf %11, %12 : vector<16x512xf32>
    %c73_i32 = arith.constant 73 : i32
    %14 = tpu.dynamic_rotate %13 by %c73_i32 dim 1 : vector<16x512xf32>, i32 -> vector<16x512xf32>
    %c0_13 = arith.constant 0 : index
    %c0_14 = arith.constant 0 : index
    %c0_15 = arith.constant 0 : index
    %15 = vector.load %arg2[%c0_13, %c0_14, %c0_15] : memref<27x1x512xf32, #tpu.memory_space<vmem>>, vector<1x1x512xf32>
    %16 = vector.shape_cast %15 : vector<1x1x512xf32> to vector<1x512xf32>
    %17 = vector.broadcast %16 : vector<1x512xf32> to vector<16x512xf32>
    %18 = arith.mulf %14, %17 : vector<16x512xf32>
    %c0_16 = arith.constant 0 : index
    %c0_17 = arith.constant 0 : index
    %19 = vector.load %arg12[%c0_16, %c0_17] : memref<432x512xf32, #tpu.memory_space<vmem>>, vector<16x512xf32>
    tpu.vector_store %arg12[%c0_16, %c0_17], %18 {strides = array<i32>} : memref<432x512xf32, #tpu.memory_space<vmem>>, vector<16x512xf32>,
    %c72_i32 = arith.constant 72 : i32
    %20 = tpu.dynamic_rotate %13 by %c72_i32 dim 1 : vector<16x512xf32>, i32 -> vector<16x512xf32>
    %c1 = arith.constant 1 : index
    %c0_18 = arith.constant 0 : index
    %c0_19 = arith.constant 0 : index
    %21 = vector.load %arg2[%c1, %c0_18, %c0_19] : memref<27x1x512xf32, #tpu.memory_space<vmem>>, vector<1x1x512xf32>
    %22 = vector.shape_cast %21 : vector<1x1x512xf32> to vector<1x512xf32>
    %23 = vector.broadcast %22 : vector<1x512xf32> to vector<16x512xf32>
    %24 = arith.mulf %20, %23 : vector<16x512xf32>
    %c16 = arith.constant 16 : index
    %c0_20 = arith.constant 0 : index
    %25 = vector.load %arg12[%c16, %c0_20] : memref<432x512xf32, #tpu.memory_space<vmem>>, vector<16x512xf32>
    tpu.vector_store %arg12[%c16, %c0_20], %24 {strides = array<i32>} : memref<432x512xf32, #tpu.memory_space<vmem>>, vector<16x512xf32>,
    %c71_i32 = arith.constant 71 : i32
    %26 = tpu.dynamic_rotate %13 by %c71_i32 dim 1 : vector<16x512xf32>, i32 -> vector<16x512xf32>
    %c2 = arith.constant 2 : index
    %c0_21 = arith.constant 0 : index
    %c0_22 = arith.constant 0 : index
    %27 = vector.load %arg2[%c2, %c0_21, %c0_22] : memref<27x1x512xf32, #tpu.memory_space<vmem>>, vector<1x1x512xf32>
    %28 = vector.shape_cast %27 : vector<1x1x512xf32> to vector<1x512xf32>
    %29 = vector.broadcast %28 : vector<1x512xf32> to vector<16x512xf32>
    %30 = arith.mulf %26, %29 : vector<16x512xf32>
    %c32 = arith.constant 32 : index
    %c0_23 = arith.constant 0 : index
    %31 = vector.load %arg12[%c32, %c0_23] : memref<432x512xf32, #tpu.memory_space<vmem>>, vector<16x512xf32>
    tpu.vector_store %arg12[%c32, %c0_23], %30 {strides = array<i32>} : memref<432x512xf32, #tpu.memory_space<vmem>>, vector<16x512xf32>,
    %c65_i32 = arith.constant 65 : i32
    %32 = tpu.dynamic_rotate %13 by %c65_i32 dim 1 : vector<16x512xf32>, i32 -> vector<16x512xf32>
    %c3 = arith.constant 3 : index
    %c0_24 = arith.constant 0 : index
    %c0_25 = arith.constant 0 : index
    %33 = vector.load %arg2[%c3, %c0_24, %c0_25] : memref<27x1x512xf32, #tpu.memory_space<vmem>>, vector<1x1x512xf32>
    %34 = vector.shape_cast %33 : vector<1x1x512xf32> to vector<1x512xf32>
    %35 = vector.broadcast %34 : vector<1x512xf32> to vector<16x512xf32>
    %36 = arith.mulf %32, %35 : vector<16x512xf32>
    %c48 = arith.constant 48 : index
    %c0_26 = arith.constant 0 : index
    %37 = vector.load %arg12[%c48, %c0_26] : memref<432x512xf32, #tpu.memory_space<vmem>>, vector<16x512xf32>
    tpu.vector_store %arg12[%c48, %c0_26], %36 {strides = array<i32>} : memref<432x512xf32, #tpu.memory_space<vmem>>, vector<16x512xf32>,
    %c64_i32 = arith.constant 64 : i32
    %38 = tpu.dynamic_rotate %13 by %c64_i32 dim 1 : vector<16x512xf32>, i32 -> vector<16x512xf32>
    %c4 = arith.constant 4 : index
    %c0_27 = arith.constant 0 : index
    %c0_28 = arith.constant 0 : index
    %39 = vector.load %arg2[%c4, %c0_27, %c0_28] : memref<27x1x512xf32, #tpu.memory_space<vmem>>, vector<1x1x512xf32>
    %40 = vector.shape_cast %39 : vector<1x1x512xf32> to vector<1x512xf32>
    %41 = vector.broadcast %40 : vector<1x512xf32> to vector<16x512xf32>
    %42 = arith.mulf %38, %41 : vector<16x512xf32>
    %c64 = arith.constant 64 : index
    %c0_29 = arith.constant 0 : index
    %43 = vector.load %arg12[%c64, %c0_29] : memref<432x512xf32, #tpu.memory_space<vmem>>, vector<16x512xf32>
    tpu.vector_store %arg12[%c64, %c0_29], %42 {strides = array<i32>} : memref<432x512xf32, #tpu.memory_space<vmem>>, vector<16x512xf32>,
    %c63_i32 = arith.constant 63 : i32
    %44 = tpu.dynamic_rotate %13 by %c63_i32 dim 1 : vector<16x512xf32>, i32 -> vector<16x512xf32>
    %c5 = arith.constant 5 : index
    %c0_30 = arith.constant 0 : index
    %c0_31 = arith.constant 0 : index
    %45 = vector.load %arg2[%c5, %c0_30, %c0_31] : memref<27x1x512xf32, #tpu.memory_space<vmem>>, vector<1x1x512xf32>
    %46 = vector.shape_cast %45 : vector<1x1x512xf32> to vector<1x512xf32>
    %47 = vector.broadcast %46 : vector<1x512xf32> to vector<16x512xf32>
    %48 = arith.mulf %44, %47 : vector<16x512xf32>
    %c80 = arith.constant 80 : index
    %c0_32 = arith.constant 0 : index
    %49 = vector.load %arg12[%c80, %c0_32] : memref<432x512xf32, #tpu.memory_space<vmem>>, vector<16x512xf32>
    tpu.vector_store %arg12[%c80, %c0_32], %48 {strides = array<i32>} : memref<432x512xf32, #tpu.memory_space<vmem>>, vector<16x512xf32>,
    %c57_i32 = arith.constant 57 : i32
    %50 = tpu.dynamic_rotate %13 by %c57_i32 dim 1 : vector<16x512xf32>, i32 -> vector<16x512xf32>
    %c6 = arith.constant 6 : index
    %c0_33 = arith.constant 0 : index
    %c0_34 = arith.constant 0 : index
    %51 = vector.load %arg2[%c6, %c0_33, %c0_34] : memref<27x1x512xf32, #tpu.memory_space<vmem>>, vector<1x1x512xf32>
    %52 = vector.shape_cast %51 : vector<1x1x512xf32> to vector<1x512xf32>
    %53 = vector.broadcast %52 : vector<1x512xf32> to vector<16x512xf32>
    %54 = arith.mulf %50, %53 : vector<16x512xf32>
    %c96 = arith.constant 96 : index
    %c0_35 = arith.constant 0 : index
    %55 = vector.load %arg12[%c96, %c0_35] : memref<432x512xf32, #tpu.memory_space<vmem>>, vector<16x512xf32>
    tpu.vector_store %arg12[%c96, %c0_35], %54 {strides = array<i32>} : memref<432x512xf32, #tpu.memory_space<vmem>>, vector<16x512xf32>,
    %c56_i32 = arith.constant 56 : i32
    %56 = tpu.dynamic_rotate %13 by %c56_i32 dim 1 : vector<16x512xf32>, i32 -> vector<16x512xf32>
    %c7 = arith.constant 7 : index
    %c0_36 = arith.constant 0 : index
    %c0_37 = arith.constant 0 : index
    %57 = vector.load %arg2[%c7, %c0_36, %c0_37] : memref<27x1x512xf32, #tpu.memory_space<vmem>>, vector<1x1x512xf32>
    %58 = vector.shape_cast %57 : vector<1x1x512xf32> to vector<1x512xf32>
    %59 = vector.broadcast %58 : vector<1x512xf32> to vector<16x512xf32>
    %60 = arith.mulf %56, %59 : vector<16x512xf32>
    %c112 = arith.constant 112 : index
    %c0_38 = arith.constant 0 : index
    %61 = vector.load %arg12[%c112, %c0_38] : memref<432x512xf32, #tpu.memory_space<vmem>>, vector<16x512xf32>
    tpu.vector_store %arg12[%c112, %c0_38], %60 {strides = array<i32>} : memref<432x512xf32, #tpu.memory_space<vmem>>, vector<16x512xf32>,
    %c55_i32 = arith.constant 55 : i32
    %62 = tpu.dynamic_rotate %13 by %c55_i32 dim 1 : vector<16x512xf32>, i32 -> vector<16x512xf32>
    %c8 = arith.constant 8 : index
    %c0_39 = arith.constant 0 : index
    %c0_40 = arith.constant 0 : index
    %63 = vector.load %arg2[%c8, %c0_39, %c0_40] : memref<27x1x512xf32, #tpu.memory_space<vmem>>, vector<1x1x512xf32>
    %64 = vector.shape_cast %63 : vector<1x1x512xf32> to vector<1x512xf32>
    %65 = vector.broadcast %64 : vector<1x512xf32> to vector<16x512xf32>
    %66 = arith.mulf %62, %65 : vector<16x512xf32>
    %c128 = arith.constant 128 : index
    %c0_41 = arith.constant 0 : index
    %67 = vector.load %arg12[%c128, %c0_41] : memref<432x512xf32, #tpu.memory_space<vmem>>, vector<16x512xf32>
    tpu.vector_store %arg12[%c128, %c0_41], %66 {strides = array<i32>} : memref<432x512xf32, #tpu.memory_space<vmem>>, vector<16x512xf32>,
    %c9_i32 = arith.constant 9 : i32
    %68 = tpu.dynamic_rotate %13 by %c9_i32 dim 1 : vector<16x512xf32>, i32 -> vector<16x512xf32>
    %c9 = arith.constant 9 : index
    %c0_42 = arith.constant 0 : index
    %c0_43 = arith.constant 0 : index
    %69 = vector.load %arg2[%c9, %c0_42, %c0_43] : memref<27x1x512xf32, #tpu.memory_space<vmem>>, vector<1x1x512xf32>
    %70 = vector.shape_cast %69 : vector<1x1x512xf32> to vector<1x512xf32>
    %71 = vector.broadcast %70 : vector<1x512xf32> to vector<16x512xf32>
    %72 = arith.mulf %68, %71 : vector<16x512xf32>
    %c144 = arith.constant 144 : index
    %c0_44 = arith.constant 0 : index
    %73 = vector.load %arg12[%c144, %c0_44] : memref<432x512xf32, #tpu.memory_space<vmem>>, vector<16x512xf32>
    tpu.vector_store %arg12[%c144, %c0_44], %72 {strides = array<i32>} : memref<432x512xf32, #tpu.memory_space<vmem>>, vector<16x512xf32>,
    %c8_i32 = arith.constant 8 : i32
    %74 = tpu.dynamic_rotate %13 by %c8_i32 dim 1 : vector<16x512xf32>, i32 -> vector<16x512xf32>
    %c10 = arith.constant 10 : index
    %c0_45 = arith.constant 0 : index
    %c0_46 = arith.constant 0 : index
    %75 = vector.load %arg2[%c10, %c0_45, %c0_46] : memref<27x1x512xf32, #tpu.memory_space<vmem>>, vector<1x1x512xf32>
    %76 = vector.shape_cast %75 : vector<1x1x512xf32> to vector<1x512xf32>
    %77 = vector.broadcast %76 : vector<1x512xf32> to vector<16x512xf32>
    %78 = arith.mulf %74, %77 : vector<16x512xf32>
    %c160 = arith.constant 160 : index
    %c0_47 = arith.constant 0 : index
    %79 = vector.load %arg12[%c160, %c0_47] : memref<432x512xf32, #tpu.memory_space<vmem>>, vector<16x512xf32>
    tpu.vector_store %arg12[%c160, %c0_47], %78 {strides = array<i32>} : memref<432x512xf32, #tpu.memory_space<vmem>>, vector<16x512xf32>,
    %c7_i32 = arith.constant 7 : i32
    %80 = tpu.dynamic_rotate %13 by %c7_i32 dim 1 : vector<16x512xf32>, i32 -> vector<16x512xf32>
    %c11 = arith.constant 11 : index
    %c0_48 = arith.constant 0 : index
    %c0_49 = arith.constant 0 : index
    %81 = vector.load %arg2[%c11, %c0_48, %c0_49] : memref<27x1x512xf32, #tpu.memory_space<vmem>>, vector<1x1x512xf32>
    %82 = vector.shape_cast %81 : vector<1x1x512xf32> to vector<1x512xf32>
    %83 = vector.broadcast %82 : vector<1x512xf32> to vector<16x512xf32>
    %84 = arith.mulf %80, %83 : vector<16x512xf32>
    %c176 = arith.constant 176 : index
    %c0_50 = arith.constant 0 : index
    %85 = vector.load %arg12[%c176, %c0_50] : memref<432x512xf32, #tpu.memory_space<vmem>>, vector<16x512xf32>
    tpu.vector_store %arg12[%c176, %c0_50], %84 {strides = array<i32>} : memref<432x512xf32, #tpu.memory_space<vmem>>, vector<16x512xf32>,
    %c1_i32 = arith.constant 1 : i32
    %86 = tpu.dynamic_rotate %13 by %c1_i32 dim 1 : vector<16x512xf32>, i32 -> vector<16x512xf32>
    %c12 = arith.constant 12 : index
    %c0_51 = arith.constant 0 : index
    %c0_52 = arith.constant 0 : index
    %87 = vector.load %arg2[%c12, %c0_51, %c0_52] : memref<27x1x512xf32, #tpu.memory_space<vmem>>, vector<1x1x512xf32>
    %88 = vector.shape_cast %87 : vector<1x1x512xf32> to vector<1x512xf32>
    %89 = vector.broadcast %88 : vector<1x512xf32> to vector<16x512xf32>
    %90 = arith.mulf %86, %89 : vector<16x512xf32>
    %c192 = arith.constant 192 : index
    %c0_53 = arith.constant 0 : index
    %91 = vector.load %arg12[%c192, %c0_53] : memref<432x512xf32, #tpu.memory_space<vmem>>, vector<16x512xf32>
    tpu.vector_store %arg12[%c192, %c0_53], %90 {strides = array<i32>} : memref<432x512xf32, #tpu.memory_space<vmem>>, vector<16x512xf32>,
    %c208 = arith.constant 208 : index
    %c0_54 = arith.constant 0 : index
    %92 = vector.load %arg12[%c208, %c0_54] : memref<432x512xf32, #tpu.memory_space<vmem>>, vector<16x512xf32>
    tpu.vector_store %arg12[%c208, %c0_54], %13 {strides = array<i32>} : memref<432x512xf32, #tpu.memory_space<vmem>>, vector<16x512xf32>,
    %c511_i32 = arith.constant 511 : i32
    %93 = tpu.dynamic_rotate %13 by %c511_i32 dim 1 : vector<16x512xf32>, i32 -> vector<16x512xf32>
    %c14 = arith.constant 14 : index
    %c0_55 = arith.constant 0 : index
    %c0_56 = arith.constant 0 : index
    %94 = vector.load %arg2[%c14, %c0_55, %c0_56] : memref<27x1x512xf32, #tpu.memory_space<vmem>>, vector<1x1x512xf32>
    %95 = vector.shape_cast %94 : vector<1x1x512xf32> to vector<1x512xf32>
    %96 = vector.broadcast %95 : vector<1x512xf32> to vector<16x512xf32>
    %97 = arith.mulf %93, %96 : vector<16x512xf32>
    %c224 = arith.constant 224 : index
    %c0_57 = arith.constant 0 : index
    %98 = vector.load %arg12[%c224, %c0_57] : memref<432x512xf32, #tpu.memory_space<vmem>>, vector<16x512xf32>
    tpu.vector_store %arg12[%c224, %c0_57], %97 {strides = array<i32>} : memref<432x512xf32, #tpu.memory_space<vmem>>, vector<16x512xf32>,
    %c505_i32 = arith.constant 505 : i32
    %99 = tpu.dynamic_rotate %13 by %c505_i32 dim 1 : vector<16x512xf32>, i32 -> vector<16x512xf32>
    %c15 = arith.constant 15 : index
    %c0_58 = arith.constant 0 : index
    %c0_59 = arith.constant 0 : index
    %100 = vector.load %arg2[%c15, %c0_58, %c0_59] : memref<27x1x512xf32, #tpu.memory_space<vmem>>, vector<1x1x512xf32>
    %101 = vector.shape_cast %100 : vector<1x1x512xf32> to vector<1x512xf32>
    %102 = vector.broadcast %101 : vector<1x512xf32> to vector<16x512xf32>
    %103 = arith.mulf %99, %102 : vector<16x512xf32>
    %c240 = arith.constant 240 : index
    %c0_60 = arith.constant 0 : index
    %104 = vector.load %arg12[%c240, %c0_60] : memref<432x512xf32, #tpu.memory_space<vmem>>, vector<16x512xf32>
    tpu.vector_store %arg12[%c240, %c0_60], %103 {strides = array<i32>} : memref<432x512xf32, #tpu.memory_space<vmem>>, vector<16x512xf32>,
    %c504_i32 = arith.constant 504 : i32
    %105 = tpu.dynamic_rotate %13 by %c504_i32 dim 1 : vector<16x512xf32>, i32 -> vector<16x512xf32>
    %c16_61 = arith.constant 16 : index
    %c0_62 = arith.constant 0 : index
    %c0_63 = arith.constant 0 : index
    %106 = vector.load %arg2[%c16_61, %c0_62, %c0_63] : memref<27x1x512xf32, #tpu.memory_space<vmem>>, vector<1x1x512xf32>
    %107 = vector.shape_cast %106 : vector<1x1x512xf32> to vector<1x512xf32>
    %108 = vector.broadcast %107 : vector<1x512xf32> to vector<16x512xf32>
    %109 = arith.mulf %105, %108 : vector<16x512xf32>
    %c256 = arith.constant 256 : index
    %c0_64 = arith.constant 0 : index
    %110 = vector.load %arg12[%c256, %c0_64] : memref<432x512xf32, #tpu.memory_space<vmem>>, vector<16x512xf32>
    tpu.vector_store %arg12[%c256, %c0_64], %109 {strides = array<i32>} : memref<432x512xf32, #tpu.memory_space<vmem>>, vector<16x512xf32>,
    %c503_i32 = arith.constant 503 : i32
    %111 = tpu.dynamic_rotate %13 by %c503_i32 dim 1 : vector<16x512xf32>, i32 -> vector<16x512xf32>
    %c17 = arith.constant 17 : index
    %c0_65 = arith.constant 0 : index
    %c0_66 = arith.constant 0 : index
    %112 = vector.load %arg2[%c17, %c0_65, %c0_66] : memref<27x1x512xf32, #tpu.memory_space<vmem>>, vector<1x1x512xf32>
    %113 = vector.shape_cast %112 : vector<1x1x512xf32> to vector<1x512xf32>
    %114 = vector.broadcast %113 : vector<1x512xf32> to vector<16x512xf32>
    %115 = arith.mulf %111, %114 : vector<16x512xf32>
    %c272 = arith.constant 272 : index
    %c0_67 = arith.constant 0 : index
    %116 = vector.load %arg12[%c272, %c0_67] : memref<432x512xf32, #tpu.memory_space<vmem>>, vector<16x512xf32>
    tpu.vector_store %arg12[%c272, %c0_67], %115 {strides = array<i32>} : memref<432x512xf32, #tpu.memory_space<vmem>>, vector<16x512xf32>,
    %c457_i32 = arith.constant 457 : i32
    %117 = tpu.dynamic_rotate %13 by %c457_i32 dim 1 : vector<16x512xf32>, i32 -> vector<16x512xf32>
    %c18 = arith.constant 18 : index
    %c0_68 = arith.constant 0 : index
    %c0_69 = arith.constant 0 : index
    %118 = vector.load %arg2[%c18, %c0_68, %c0_69] : memref<27x1x512xf32, #tpu.memory_space<vmem>>, vector<1x1x512xf32>
    %119 = vector.shape_cast %118 : vector<1x1x512xf32> to vector<1x512xf32>
    %120 = vector.broadcast %119 : vector<1x512xf32> to vector<16x512xf32>
    %121 = arith.mulf %117, %120 : vector<16x512xf32>
    %c288 = arith.constant 288 : index
    %c0_70 = arith.constant 0 : index
    %122 = vector.load %arg12[%c288, %c0_70] : memref<432x512xf32, #tpu.memory_space<vmem>>, vector<16x512xf32>
    tpu.vector_store %arg12[%c288, %c0_70], %121 {strides = array<i32>} : memref<432x512xf32, #tpu.memory_space<vmem>>, vector<16x512xf32>,
    %c456_i32 = arith.constant 456 : i32
    %123 = tpu.dynamic_rotate %13 by %c456_i32 dim 1 : vector<16x512xf32>, i32 -> vector<16x512xf32>
    %c19 = arith.constant 19 : index
    %c0_71 = arith.constant 0 : index
    %c0_72 = arith.constant 0 : index
    %124 = vector.load %arg2[%c19, %c0_71, %c0_72] : memref<27x1x512xf32, #tpu.memory_space<vmem>>, vector<1x1x512xf32>
    %125 = vector.shape_cast %124 : vector<1x1x512xf32> to vector<1x512xf32>
    %126 = vector.broadcast %125 : vector<1x512xf32> to vector<16x512xf32>
    %127 = arith.mulf %123, %126 : vector<16x512xf32>
    %c304 = arith.constant 304 : index
    %c0_73 = arith.constant 0 : index
    %128 = vector.load %arg12[%c304, %c0_73] : memref<432x512xf32, #tpu.memory_space<vmem>>, vector<16x512xf32>
    tpu.vector_store %arg12[%c304, %c0_73], %127 {strides = array<i32>} : memref<432x512xf32, #tpu.memory_space<vmem>>, vector<16x512xf32>,
    %c455_i32 = arith.constant 455 : i32
    %129 = tpu.dynamic_rotate %13 by %c455_i32 dim 1 : vector<16x512xf32>, i32 -> vector<16x512xf32>
    %c20 = arith.constant 20 : index
    %c0_74 = arith.constant 0 : index
    %c0_75 = arith.constant 0 : index
    %130 = vector.load %arg2[%c20, %c0_74, %c0_75] : memref<27x1x512xf32, #tpu.memory_space<vmem>>, vector<1x1x512xf32>
    %131 = vector.shape_cast %130 : vector<1x1x512xf32> to vector<1x512xf32>
    %132 = vector.broadcast %131 : vector<1x512xf32> to vector<16x512xf32>
    %133 = arith.mulf %129, %132 : vector<16x512xf32>
    %c320 = arith.constant 320 : index
    %c0_76 = arith.constant 0 : index
    %134 = vector.load %arg12[%c320, %c0_76] : memref<432x512xf32, #tpu.memory_space<vmem>>, vector<16x512xf32>
    tpu.vector_store %arg12[%c320, %c0_76], %133 {strides = array<i32>} : memref<432x512xf32, #tpu.memory_space<vmem>>, vector<16x512xf32>,
    %c449_i32 = arith.constant 449 : i32
    %135 = tpu.dynamic_rotate %13 by %c449_i32 dim 1 : vector<16x512xf32>, i32 -> vector<16x512xf32>
    %c21 = arith.constant 21 : index
    %c0_77 = arith.constant 0 : index
    %c0_78 = arith.constant 0 : index
    %136 = vector.load %arg2[%c21, %c0_77, %c0_78] : memref<27x1x512xf32, #tpu.memory_space<vmem>>, vector<1x1x512xf32>
    %137 = vector.shape_cast %136 : vector<1x1x512xf32> to vector<1x512xf32>
    %138 = vector.broadcast %137 : vector<1x512xf32> to vector<16x512xf32>
    %139 = arith.mulf %135, %138 : vector<16x512xf32>
    %c336 = arith.constant 336 : index
    %c0_79 = arith.constant 0 : index
    %140 = vector.load %arg12[%c336, %c0_79] : memref<432x512xf32, #tpu.memory_space<vmem>>, vector<16x512xf32>
    tpu.vector_store %arg12[%c336, %c0_79], %139 {strides = array<i32>} : memref<432x512xf32, #tpu.memory_space<vmem>>, vector<16x512xf32>,
    %c448_i32 = arith.constant 448 : i32
    %141 = tpu.dynamic_rotate %13 by %c448_i32 dim 1 : vector<16x512xf32>, i32 -> vector<16x512xf32>
    %c22 = arith.constant 22 : index
    %c0_80 = arith.constant 0 : index
    %c0_81 = arith.constant 0 : index
    %142 = vector.load %arg2[%c22, %c0_80, %c0_81] : memref<27x1x512xf32, #tpu.memory_space<vmem>>, vector<1x1x512xf32>
    %143 = vector.shape_cast %142 : vector<1x1x512xf32> to vector<1x512xf32>
    %144 = vector.broadcast %143 : vector<1x512xf32> to vector<16x512xf32>
    %145 = arith.mulf %141, %144 : vector<16x512xf32>
    %c352 = arith.constant 352 : index
    %c0_82 = arith.constant 0 : index
    %146 = vector.load %arg12[%c352, %c0_82] : memref<432x512xf32, #tpu.memory_space<vmem>>, vector<16x512xf32>
    tpu.vector_store %arg12[%c352, %c0_82], %145 {strides = array<i32>} : memref<432x512xf32, #tpu.memory_space<vmem>>, vector<16x512xf32>,
    %c447_i32 = arith.constant 447 : i32
    %147 = tpu.dynamic_rotate %13 by %c447_i32 dim 1 : vector<16x512xf32>, i32 -> vector<16x512xf32>
    %c23 = arith.constant 23 : index
    %c0_83 = arith.constant 0 : index
    %c0_84 = arith.constant 0 : index
    %148 = vector.load %arg2[%c23, %c0_83, %c0_84] : memref<27x1x512xf32, #tpu.memory_space<vmem>>, vector<1x1x512xf32>
    %149 = vector.shape_cast %148 : vector<1x1x512xf32> to vector<1x512xf32>
    %150 = vector.broadcast %149 : vector<1x512xf32> to vector<16x512xf32>
    %151 = arith.mulf %147, %150 : vector<16x512xf32>
    %c368 = arith.constant 368 : index
    %c0_85 = arith.constant 0 : index
    %152 = vector.load %arg12[%c368, %c0_85] : memref<432x512xf32, #tpu.memory_space<vmem>>, vector<16x512xf32>
    tpu.vector_store %arg12[%c368, %c0_85], %151 {strides = array<i32>} : memref<432x512xf32, #tpu.memory_space<vmem>>, vector<16x512xf32>,
    %c441_i32 = arith.constant 441 : i32
    %153 = tpu.dynamic_rotate %13 by %c441_i32 dim 1 : vector<16x512xf32>, i32 -> vector<16x512xf32>
    %c24 = arith.constant 24 : index
    %c0_86 = arith.constant 0 : index
    %c0_87 = arith.constant 0 : index
    %154 = vector.load %arg2[%c24, %c0_86, %c0_87] : memref<27x1x512xf32, #tpu.memory_space<vmem>>, vector<1x1x512xf32>
    %155 = vector.shape_cast %154 : vector<1x1x512xf32> to vector<1x512xf32>
    %156 = vector.broadcast %155 : vector<1x512xf32> to vector<16x512xf32>
    %157 = arith.mulf %153, %156 : vector<16x512xf32>
    %c384 = arith.constant 384 : index
    %c0_88 = arith.constant 0 : index
    %158 = vector.load %arg12[%c384, %c0_88] : memref<432x512xf32, #tpu.memory_space<vmem>>, vector<16x512xf32>
    tpu.vector_store %arg12[%c384, %c0_88], %157 {strides = array<i32>} : memref<432x512xf32, #tpu.memory_space<vmem>>, vector<16x512xf32>,
    %c440_i32 = arith.constant 440 : i32
    %159 = tpu.dynamic_rotate %13 by %c440_i32 dim 1 : vector<16x512xf32>, i32 -> vector<16x512xf32>
    %c25 = arith.constant 25 : index
    %c0_89 = arith.constant 0 : index
    %c0_90 = arith.constant 0 : index
    %160 = vector.load %arg2[%c25, %c0_89, %c0_90] : memref<27x1x512xf32, #tpu.memory_space<vmem>>, vector<1x1x512xf32>
    %161 = vector.shape_cast %160 : vector<1x1x512xf32> to vector<1x512xf32>
    %162 = vector.broadcast %161 : vector<1x512xf32> to vector<16x512xf32>
    %163 = arith.mulf %159, %162 : vector<16x512xf32>
    %c400 = arith.constant 400 : index
    %c0_91 = arith.constant 0 : index
    %164 = vector.load %arg12[%c400, %c0_91] : memref<432x512xf32, #tpu.memory_space<vmem>>, vector<16x512xf32>
    tpu.vector_store %arg12[%c400, %c0_91], %163 {strides = array<i32>} : memref<432x512xf32, #tpu.memory_space<vmem>>, vector<16x512xf32>,
    %c439_i32 = arith.constant 439 : i32
    %165 = tpu.dynamic_rotate %13 by %c439_i32 dim 1 : vector<16x512xf32>, i32 -> vector<16x512xf32>
    %c26 = arith.constant 26 : index
    %c0_92 = arith.constant 0 : index
    %c0_93 = arith.constant 0 : index
    %166 = vector.load %arg2[%c26, %c0_92, %c0_93] : memref<27x1x512xf32, #tpu.memory_space<vmem>>, vector<1x1x512xf32>
    %167 = vector.shape_cast %166 : vector<1x1x512xf32> to vector<1x512xf32>
    %168 = vector.broadcast %167 : vector<1x512xf32> to vector<16x512xf32>
    %169 = arith.mulf %165, %168 : vector<16x512xf32>
    %c416 = arith.constant 416 : index
    %c0_94 = arith.constant 0 : index
    %170 = vector.load %arg12[%c416, %c0_94] : memref<432x512xf32, #tpu.memory_space<vmem>>, vector<16x512xf32>
    tpu.vector_store %arg12[%c416, %c0_94], %169 {strides = array<i32>} : memref<432x512xf32, #tpu.memory_space<vmem>>, vector<16x512xf32>,
    %c0_95 = arith.constant 0 : index
    %c0_96 = arith.constant 0 : index
    %171 = vector.load %arg5[%c0_95, %c0_96] : memref<4x432xf32, #tpu.memory_space<vmem>>, vector<4x432xf32>
    %c0_97 = arith.constant 0 : index
    %c0_98 = arith.constant 0 : index
    %172 = vector.load %arg12[%c0_97, %c0_98] : memref<432x512xf32, #tpu.memory_space<vmem>>, vector<432x512xf32>
    %cst_99 = arith.constant dense<0.000000e+00> : vector<4x512xf32>
    %173 = tpu.matmul %171, %172, %cst_99 {dimension_numbers = #tpu.dot_dimension_numbers<[1], [0], [0], [1], [0, 0, 1, 1], [], []>} : vector<4x432xf32>, vector<432x512xf32>, vector<4x512xf32> -> vector<4x512xf32>
    %c0_100 = arith.constant 0 : index
    %c0_101 = arith.constant 0 : index
    %174 = vector.load %arg6[%c0_100, %c0_101] : memref<4x1xf32, #tpu.memory_space<vmem>>, vector<4x1xf32>
    %175 = vector.broadcast %174 : vector<4x1xf32> to vector<4x512xf32>
    %176 = arith.addf %173, %175 : vector<4x512xf32>
    %cst_102 = arith.constant 0.000000e+00 : f32
    %177 = vector.broadcast %cst_102 : f32 to vector<4x512xf32>
    %178 = arith.maximumf %176, %177 : vector<4x512xf32>
    %c0_103 = arith.constant 0 : index
    %c4_104 = arith.constant 4 : index
    %c0_105 = arith.constant 0 : index
    %179 = vector.load %arg11[%c0_103, %c4_104, %c0_105] : memref<1x12x512xf32, #tpu.memory_space<vmem>>, vector<1x4x512xf32>
    %180 = vector.shape_cast %179 : vector<1x4x512xf32> to vector<4x512xf32>
    %181 = vector.shape_cast %178 : vector<4x512xf32> to vector<1x4x512xf32>
    tpu.vector_store %arg11[%c0_103, %c4_104, %c0_105], %181 {strides = array<i32>} : memref<1x12x512xf32, #tpu.memory_space<vmem>>, vector<1x4x512xf32>,
    %c0_106 = arith.constant 0 : index
    %c0_107 = arith.constant 0 : index
    %182 = vector.load %arg7[%c0_106, %c0_107] : memref<16x8xf32, #tpu.memory_space<vmem>>, vector<16x8xf32>
    %c0_108 = arith.constant 0 : index
    %c0_109 = arith.constant 0 : index
    %c0_110 = arith.constant 0 : index
    %183 = vector.load %arg11[%c0_108, %c0_109, %c0_110] : memref<1x12x512xf32, #tpu.memory_space<vmem>>, vector<1x8x512xf32>
    %184 = vector.shape_cast %183 : vector<1x8x512xf32> to vector<8x512xf32>
    %cst_111 = arith.constant dense<0.000000e+00> : vector<16x512xf32>
    %185 = tpu.matmul %182, %184, %cst_111 {dimension_numbers = #tpu.dot_dimension_numbers<[1], [0], [0], [1], [0, 0, 1, 1], [], []>} : vector<16x8xf32>, vector<8x512xf32>, vector<16x512xf32> -> vector<16x512xf32>
    %c0_112 = arith.constant 0 : index
    %c0_113 = arith.constant 0 : index
    %186 = vector.load %arg8[%c0_112, %c0_113] : memref<16x1xf32, #tpu.memory_space<vmem>>, vector<16x1xf32>
    %187 = vector.broadcast %186 : vector<16x1xf32> to vector<16x512xf32>
    %188 = arith.addf %185, %187 : vector<16x512xf32>
    %cst_114 = arith.constant 0.000000e+00 : f32
    %189 = vector.broadcast %cst_114 : f32 to vector<16x512xf32>
    %190 = arith.maximumf %188, %189 : vector<16x512xf32>
    %c73_i32_115 = arith.constant 73 : i32
    %191 = tpu.dynamic_rotate %190 by %c73_i32_115 dim 1 : vector<16x512xf32>, i32 -> vector<16x512xf32>
    %c0_116 = arith.constant 0 : index
    %c0_117 = arith.constant 0 : index
    %c0_118 = arith.constant 0 : index
    %192 = vector.load %arg2[%c0_116, %c0_117, %c0_118] : memref<27x1x512xf32, #tpu.memory_space<vmem>>, vector<1x1x512xf32>
    %193 = vector.shape_cast %192 : vector<1x1x512xf32> to vector<1x512xf32>
    %194 = vector.broadcast %193 : vector<1x512xf32> to vector<16x512xf32>
    %195 = arith.mulf %191, %194 : vector<16x512xf32>
    %c0_119 = arith.constant 0 : index
    %c0_120 = arith.constant 0 : index
    %196 = vector.load %arg12[%c0_119, %c0_120] : memref<432x512xf32, #tpu.memory_space<vmem>>, vector<16x512xf32>
    tpu.vector_store %arg12[%c0_119, %c0_120], %195 {strides = array<i32>} : memref<432x512xf32, #tpu.memory_space<vmem>>, vector<16x512xf32>,
    %c72_i32_121 = arith.constant 72 : i32
    %197 = tpu.dynamic_rotate %190 by %c72_i32_121 dim 1 : vector<16x512xf32>, i32 -> vector<16x512xf32>
    %c1_122 = arith.constant 1 : index
    %c0_123 = arith.constant 0 : index
    %c0_124 = arith.constant 0 : index
    %198 = vector.load %arg2[%c1_122, %c0_123, %c0_124] : memref<27x1x512xf32, #tpu.memory_space<vmem>>, vector<1x1x512xf32>
    %199 = vector.shape_cast %198 : vector<1x1x512xf32> to vector<1x512xf32>
    %200 = vector.broadcast %199 : vector<1x512xf32> to vector<16x512xf32>
    %201 = arith.mulf %197, %200 : vector<16x512xf32>
    %c16_125 = arith.constant 16 : index
    %c0_126 = arith.constant 0 : index
    %202 = vector.load %arg12[%c16_125, %c0_126] : memref<432x512xf32, #tpu.memory_space<vmem>>, vector<16x512xf32>
    tpu.vector_store %arg12[%c16_125, %c0_126], %201 {strides = array<i32>} : memref<432x512xf32, #tpu.memory_space<vmem>>, vector<16x512xf32>,
    %c71_i32_127 = arith.constant 71 : i32
    %203 = tpu.dynamic_rotate %190 by %c71_i32_127 dim 1 : vector<16x512xf32>, i32 -> vector<16x512xf32>
    %c2_128 = arith.constant 2 : index
    %c0_129 = arith.constant 0 : index
    %c0_130 = arith.constant 0 : index
    %204 = vector.load %arg2[%c2_128, %c0_129, %c0_130] : memref<27x1x512xf32, #tpu.memory_space<vmem>>, vector<1x1x512xf32>
    %205 = vector.shape_cast %204 : vector<1x1x512xf32> to vector<1x512xf32>
    %206 = vector.broadcast %205 : vector<1x512xf32> to vector<16x512xf32>
    %207 = arith.mulf %203, %206 : vector<16x512xf32>
    %c32_131 = arith.constant 32 : index
    %c0_132 = arith.constant 0 : index
    %208 = vector.load %arg12[%c32_131, %c0_132] : memref<432x512xf32, #tpu.memory_space<vmem>>, vector<16x512xf32>
    tpu.vector_store %arg12[%c32_131, %c0_132], %207 {strides = array<i32>} : memref<432x512xf32, #tpu.memory_space<vmem>>, vector<16x512xf32>,
    %c65_i32_133 = arith.constant 65 : i32
    %209 = tpu.dynamic_rotate %190 by %c65_i32_133 dim 1 : vector<16x512xf32>, i32 -> vector<16x512xf32>
    %c3_134 = arith.constant 3 : index
    %c0_135 = arith.constant 0 : index
    %c0_136 = arith.constant 0 : index
    %210 = vector.load %arg2[%c3_134, %c0_135, %c0_136] : memref<27x1x512xf32, #tpu.memory_space<vmem>>, vector<1x1x512xf32>
    %211 = vector.shape_cast %210 : vector<1x1x512xf32> to vector<1x512xf32>
    %212 = vector.broadcast %211 : vector<1x512xf32> to vector<16x512xf32>
    %213 = arith.mulf %209, %212 : vector<16x512xf32>
    %c48_137 = arith.constant 48 : index
    %c0_138 = arith.constant 0 : index
    %214 = vector.load %arg12[%c48_137, %c0_138] : memref<432x512xf32, #tpu.memory_space<vmem>>, vector<16x512xf32>
    tpu.vector_store %arg12[%c48_137, %c0_138], %213 {strides = array<i32>} : memref<432x512xf32, #tpu.memory_space<vmem>>, vector<16x512xf32>,
    %c64_i32_139 = arith.constant 64 : i32
    %215 = tpu.dynamic_rotate %190 by %c64_i32_139 dim 1 : vector<16x512xf32>, i32 -> vector<16x512xf32>
    %c4_140 = arith.constant 4 : index
    %c0_141 = arith.constant 0 : index
    %c0_142 = arith.constant 0 : index
    %216 = vector.load %arg2[%c4_140, %c0_141, %c0_142] : memref<27x1x512xf32, #tpu.memory_space<vmem>>, vector<1x1x512xf32>
    %217 = vector.shape_cast %216 : vector<1x1x512xf32> to vector<1x512xf32>
    %218 = vector.broadcast %217 : vector<1x512xf32> to vector<16x512xf32>
    %219 = arith.mulf %215, %218 : vector<16x512xf32>
    %c64_143 = arith.constant 64 : index
    %c0_144 = arith.constant 0 : index
    %220 = vector.load %arg12[%c64_143, %c0_144] : memref<432x512xf32, #tpu.memory_space<vmem>>, vector<16x512xf32>
    tpu.vector_store %arg12[%c64_143, %c0_144], %219 {strides = array<i32>} : memref<432x512xf32, #tpu.memory_space<vmem>>, vector<16x512xf32>,
    %c63_i32_145 = arith.constant 63 : i32
    %221 = tpu.dynamic_rotate %190 by %c63_i32_145 dim 1 : vector<16x512xf32>, i32 -> vector<16x512xf32>
    %c5_146 = arith.constant 5 : index
    %c0_147 = arith.constant 0 : index
    %c0_148 = arith.constant 0 : index
    %222 = vector.load %arg2[%c5_146, %c0_147, %c0_148] : memref<27x1x512xf32, #tpu.memory_space<vmem>>, vector<1x1x512xf32>
    %223 = vector.shape_cast %222 : vector<1x1x512xf32> to vector<1x512xf32>
    %224 = vector.broadcast %223 : vector<1x512xf32> to vector<16x512xf32>
    %225 = arith.mulf %221, %224 : vector<16x512xf32>
    %c80_149 = arith.constant 80 : index
    %c0_150 = arith.constant 0 : index
    %226 = vector.load %arg12[%c80_149, %c0_150] : memref<432x512xf32, #tpu.memory_space<vmem>>, vector<16x512xf32>
    tpu.vector_store %arg12[%c80_149, %c0_150], %225 {strides = array<i32>} : memref<432x512xf32, #tpu.memory_space<vmem>>, vector<16x512xf32>,
    %c57_i32_151 = arith.constant 57 : i32
    %227 = tpu.dynamic_rotate %190 by %c57_i32_151 dim 1 : vector<16x512xf32>, i32 -> vector<16x512xf32>
    %c6_152 = arith.constant 6 : index
    %c0_153 = arith.constant 0 : index
    %c0_154 = arith.constant 0 : index
    %228 = vector.load %arg2[%c6_152, %c0_153, %c0_154] : memref<27x1x512xf32, #tpu.memory_space<vmem>>, vector<1x1x512xf32>
    %229 = vector.shape_cast %228 : vector<1x1x512xf32> to vector<1x512xf32>
    %230 = vector.broadcast %229 : vector<1x512xf32> to vector<16x512xf32>
    %231 = arith.mulf %227, %230 : vector<16x512xf32>
    %c96_155 = arith.constant 96 : index
    %c0_156 = arith.constant 0 : index
    %232 = vector.load %arg12[%c96_155, %c0_156] : memref<432x512xf32, #tpu.memory_space<vmem>>, vector<16x512xf32>
    tpu.vector_store %arg12[%c96_155, %c0_156], %231 {strides = array<i32>} : memref<432x512xf32, #tpu.memory_space<vmem>>, vector<16x512xf32>,
    %c56_i32_157 = arith.constant 56 : i32
    %233 = tpu.dynamic_rotate %190 by %c56_i32_157 dim 1 : vector<16x512xf32>, i32 -> vector<16x512xf32>
    %c7_158 = arith.constant 7 : index
    %c0_159 = arith.constant 0 : index
    %c0_160 = arith.constant 0 : index
    %234 = vector.load %arg2[%c7_158, %c0_159, %c0_160] : memref<27x1x512xf32, #tpu.memory_space<vmem>>, vector<1x1x512xf32>
    %235 = vector.shape_cast %234 : vector<1x1x512xf32> to vector<1x512xf32>
    %236 = vector.broadcast %235 : vector<1x512xf32> to vector<16x512xf32>
    %237 = arith.mulf %233, %236 : vector<16x512xf32>
    %c112_161 = arith.constant 112 : index
    %c0_162 = arith.constant 0 : index
    %238 = vector.load %arg12[%c112_161, %c0_162] : memref<432x512xf32, #tpu.memory_space<vmem>>, vector<16x512xf32>
    tpu.vector_store %arg12[%c112_161, %c0_162], %237 {strides = array<i32>} : memref<432x512xf32, #tpu.memory_space<vmem>>, vector<16x512xf32>,
    %c55_i32_163 = arith.constant 55 : i32
    %239 = tpu.dynamic_rotate %190 by %c55_i32_163 dim 1 : vector<16x512xf32>, i32 -> vector<16x512xf32>
    %c8_164 = arith.constant 8 : index
    %c0_165 = arith.constant 0 : index
    %c0_166 = arith.constant 0 : index
    %240 = vector.load %arg2[%c8_164, %c0_165, %c0_166] : memref<27x1x512xf32, #tpu.memory_space<vmem>>, vector<1x1x512xf32>
    %241 = vector.shape_cast %240 : vector<1x1x512xf32> to vector<1x512xf32>
    %242 = vector.broadcast %241 : vector<1x512xf32> to vector<16x512xf32>
    %243 = arith.mulf %239, %242 : vector<16x512xf32>
    %c128_167 = arith.constant 128 : index
    %c0_168 = arith.constant 0 : index
    %244 = vector.load %arg12[%c128_167, %c0_168] : memref<432x512xf32, #tpu.memory_space<vmem>>, vector<16x512xf32>
    tpu.vector_store %arg12[%c128_167, %c0_168], %243 {strides = array<i32>} : memref<432x512xf32, #tpu.memory_space<vmem>>, vector<16x512xf32>,
    %c9_i32_169 = arith.constant 9 : i32
    %245 = tpu.dynamic_rotate %190 by %c9_i32_169 dim 1 : vector<16x512xf32>, i32 -> vector<16x512xf32>
    %c9_170 = arith.constant 9 : index
    %c0_171 = arith.constant 0 : index
    %c0_172 = arith.constant 0 : index
    %246 = vector.load %arg2[%c9_170, %c0_171, %c0_172] : memref<27x1x512xf32, #tpu.memory_space<vmem>>, vector<1x1x512xf32>
    %247 = vector.shape_cast %246 : vector<1x1x512xf32> to vector<1x512xf32>
    %248 = vector.broadcast %247 : vector<1x512xf32> to vector<16x512xf32>
    %249 = arith.mulf %245, %248 : vector<16x512xf32>
    %c144_173 = arith.constant 144 : index
    %c0_174 = arith.constant 0 : index
    %250 = vector.load %arg12[%c144_173, %c0_174] : memref<432x512xf32, #tpu.memory_space<vmem>>, vector<16x512xf32>
    tpu.vector_store %arg12[%c144_173, %c0_174], %249 {strides = array<i32>} : memref<432x512xf32, #tpu.memory_space<vmem>>, vector<16x512xf32>,
    %c8_i32_175 = arith.constant 8 : i32
    %251 = tpu.dynamic_rotate %190 by %c8_i32_175 dim 1 : vector<16x512xf32>, i32 -> vector<16x512xf32>
    %c10_176 = arith.constant 10 : index
    %c0_177 = arith.constant 0 : index
    %c0_178 = arith.constant 0 : index
    %252 = vector.load %arg2[%c10_176, %c0_177, %c0_178] : memref<27x1x512xf32, #tpu.memory_space<vmem>>, vector<1x1x512xf32>
    %253 = vector.shape_cast %252 : vector<1x1x512xf32> to vector<1x512xf32>
    %254 = vector.broadcast %253 : vector<1x512xf32> to vector<16x512xf32>
    %255 = arith.mulf %251, %254 : vector<16x512xf32>
    %c160_179 = arith.constant 160 : index
    %c0_180 = arith.constant 0 : index
    %256 = vector.load %arg12[%c160_179, %c0_180] : memref<432x512xf32, #tpu.memory_space<vmem>>, vector<16x512xf32>
    tpu.vector_store %arg12[%c160_179, %c0_180], %255 {strides = array<i32>} : memref<432x512xf32, #tpu.memory_space<vmem>>, vector<16x512xf32>,
    %c7_i32_181 = arith.constant 7 : i32
    %257 = tpu.dynamic_rotate %190 by %c7_i32_181 dim 1 : vector<16x512xf32>, i32 -> vector<16x512xf32>
    %c11_182 = arith.constant 11 : index
    %c0_183 = arith.constant 0 : index
    %c0_184 = arith.constant 0 : index
    %258 = vector.load %arg2[%c11_182, %c0_183, %c0_184] : memref<27x1x512xf32, #tpu.memory_space<vmem>>, vector<1x1x512xf32>
    %259 = vector.shape_cast %258 : vector<1x1x512xf32> to vector<1x512xf32>
    %260 = vector.broadcast %259 : vector<1x512xf32> to vector<16x512xf32>
    %261 = arith.mulf %257, %260 : vector<16x512xf32>
    %c176_185 = arith.constant 176 : index
    %c0_186 = arith.constant 0 : index
    %262 = vector.load %arg12[%c176_185, %c0_186] : memref<432x512xf32, #tpu.memory_space<vmem>>, vector<16x512xf32>
    tpu.vector_store %arg12[%c176_185, %c0_186], %261 {strides = array<i32>} : memref<432x512xf32, #tpu.memory_space<vmem>>, vector<16x512xf32>,
    %c1_i32_187 = arith.constant 1 : i32
    %263 = tpu.dynamic_rotate %190 by %c1_i32_187 dim 1 : vector<16x512xf32>, i32 -> vector<16x512xf32>
    %c12_188 = arith.constant 12 : index
    %c0_189 = arith.constant 0 : index
    %c0_190 = arith.constant 0 : index
    %264 = vector.load %arg2[%c12_188, %c0_189, %c0_190] : memref<27x1x512xf32, #tpu.memory_space<vmem>>, vector<1x1x512xf32>
    %265 = vector.shape_cast %264 : vector<1x1x512xf32> to vector<1x512xf32>
    %266 = vector.broadcast %265 : vector<1x512xf32> to vector<16x512xf32>
    %267 = arith.mulf %263, %266 : vector<16x512xf32>
    %c192_191 = arith.constant 192 : index
    %c0_192 = arith.constant 0 : index
    %268 = vector.load %arg12[%c192_191, %c0_192] : memref<432x512xf32, #tpu.memory_space<vmem>>, vector<16x512xf32>
    tpu.vector_store %arg12[%c192_191, %c0_192], %267 {strides = array<i32>} : memref<432x512xf32, #tpu.memory_space<vmem>>, vector<16x512xf32>,
    %c208_193 = arith.constant 208 : index
    %c0_194 = arith.constant 0 : index
    %269 = vector.load %arg12[%c208_193, %c0_194] : memref<432x512xf32, #tpu.memory_space<vmem>>, vector<16x512xf32>
    tpu.vector_store %arg12[%c208_193, %c0_194], %190 {strides = array<i32>} : memref<432x512xf32, #tpu.memory_space<vmem>>, vector<16x512xf32>,
    %c511_i32_195 = arith.constant 511 : i32
    %270 = tpu.dynamic_rotate %190 by %c511_i32_195 dim 1 : vector<16x512xf32>, i32 -> vector<16x512xf32>
    %c14_196 = arith.constant 14 : index
    %c0_197 = arith.constant 0 : index
    %c0_198 = arith.constant 0 : index
    %271 = vector.load %arg2[%c14_196, %c0_197, %c0_198] : memref<27x1x512xf32, #tpu.memory_space<vmem>>, vector<1x1x512xf32>
    %272 = vector.shape_cast %271 : vector<1x1x512xf32> to vector<1x512xf32>
    %273 = vector.broadcast %272 : vector<1x512xf32> to vector<16x512xf32>
    %274 = arith.mulf %270, %273 : vector<16x512xf32>
    %c224_199 = arith.constant 224 : index
    %c0_200 = arith.constant 0 : index
    %275 = vector.load %arg12[%c224_199, %c0_200] : memref<432x512xf32, #tpu.memory_space<vmem>>, vector<16x512xf32>
    tpu.vector_store %arg12[%c224_199, %c0_200], %274 {strides = array<i32>} : memref<432x512xf32, #tpu.memory_space<vmem>>, vector<16x512xf32>,
    %c505_i32_201 = arith.constant 505 : i32
    %276 = tpu.dynamic_rotate %190 by %c505_i32_201 dim 1 : vector<16x512xf32>, i32 -> vector<16x512xf32>
    %c15_202 = arith.constant 15 : index
    %c0_203 = arith.constant 0 : index
    %c0_204 = arith.constant 0 : index
    %277 = vector.load %arg2[%c15_202, %c0_203, %c0_204] : memref<27x1x512xf32, #tpu.memory_space<vmem>>, vector<1x1x512xf32>
    %278 = vector.shape_cast %277 : vector<1x1x512xf32> to vector<1x512xf32>
    %279 = vector.broadcast %278 : vector<1x512xf32> to vector<16x512xf32>
    %280 = arith.mulf %276, %279 : vector<16x512xf32>
    %c240_205 = arith.constant 240 : index
    %c0_206 = arith.constant 0 : index
    %281 = vector.load %arg12[%c240_205, %c0_206] : memref<432x512xf32, #tpu.memory_space<vmem>>, vector<16x512xf32>
    tpu.vector_store %arg12[%c240_205, %c0_206], %280 {strides = array<i32>} : memref<432x512xf32, #tpu.memory_space<vmem>>, vector<16x512xf32>,
    %c504_i32_207 = arith.constant 504 : i32
    %282 = tpu.dynamic_rotate %190 by %c504_i32_207 dim 1 : vector<16x512xf32>, i32 -> vector<16x512xf32>
    %c16_208 = arith.constant 16 : index
    %c0_209 = arith.constant 0 : index
    %c0_210 = arith.constant 0 : index
    %283 = vector.load %arg2[%c16_208, %c0_209, %c0_210] : memref<27x1x512xf32, #tpu.memory_space<vmem>>, vector<1x1x512xf32>
    %284 = vector.shape_cast %283 : vector<1x1x512xf32> to vector<1x512xf32>
    %285 = vector.broadcast %284 : vector<1x512xf32> to vector<16x512xf32>
    %286 = arith.mulf %282, %285 : vector<16x512xf32>
    %c256_211 = arith.constant 256 : index
    %c0_212 = arith.constant 0 : index
    %287 = vector.load %arg12[%c256_211, %c0_212] : memref<432x512xf32, #tpu.memory_space<vmem>>, vector<16x512xf32>
    tpu.vector_store %arg12[%c256_211, %c0_212], %286 {strides = array<i32>} : memref<432x512xf32, #tpu.memory_space<vmem>>, vector<16x512xf32>,
    %c503_i32_213 = arith.constant 503 : i32
    %288 = tpu.dynamic_rotate %190 by %c503_i32_213 dim 1 : vector<16x512xf32>, i32 -> vector<16x512xf32>
    %c17_214 = arith.constant 17 : index
    %c0_215 = arith.constant 0 : index
    %c0_216 = arith.constant 0 : index
    %289 = vector.load %arg2[%c17_214, %c0_215, %c0_216] : memref<27x1x512xf32, #tpu.memory_space<vmem>>, vector<1x1x512xf32>
    %290 = vector.shape_cast %289 : vector<1x1x512xf32> to vector<1x512xf32>
    %291 = vector.broadcast %290 : vector<1x512xf32> to vector<16x512xf32>
    %292 = arith.mulf %288, %291 : vector<16x512xf32>
    %c272_217 = arith.constant 272 : index
    %c0_218 = arith.constant 0 : index
    %293 = vector.load %arg12[%c272_217, %c0_218] : memref<432x512xf32, #tpu.memory_space<vmem>>, vector<16x512xf32>
    tpu.vector_store %arg12[%c272_217, %c0_218], %292 {strides = array<i32>} : memref<432x512xf32, #tpu.memory_space<vmem>>, vector<16x512xf32>,
    %c457_i32_219 = arith.constant 457 : i32
    %294 = tpu.dynamic_rotate %190 by %c457_i32_219 dim 1 : vector<16x512xf32>, i32 -> vector<16x512xf32>
    %c18_220 = arith.constant 18 : index
    %c0_221 = arith.constant 0 : index
    %c0_222 = arith.constant 0 : index
    %295 = vector.load %arg2[%c18_220, %c0_221, %c0_222] : memref<27x1x512xf32, #tpu.memory_space<vmem>>, vector<1x1x512xf32>
    %296 = vector.shape_cast %295 : vector<1x1x512xf32> to vector<1x512xf32>
    %297 = vector.broadcast %296 : vector<1x512xf32> to vector<16x512xf32>
    %298 = arith.mulf %294, %297 : vector<16x512xf32>
    %c288_223 = arith.constant 288 : index
    %c0_224 = arith.constant 0 : index
    %299 = vector.load %arg12[%c288_223, %c0_224] : memref<432x512xf32, #tpu.memory_space<vmem>>, vector<16x512xf32>
    tpu.vector_store %arg12[%c288_223, %c0_224], %298 {strides = array<i32>} : memref<432x512xf32, #tpu.memory_space<vmem>>, vector<16x512xf32>,
    %c456_i32_225 = arith.constant 456 : i32
    %300 = tpu.dynamic_rotate %190 by %c456_i32_225 dim 1 : vector<16x512xf32>, i32 -> vector<16x512xf32>
    %c19_226 = arith.constant 19 : index
    %c0_227 = arith.constant 0 : index
    %c0_228 = arith.constant 0 : index
    %301 = vector.load %arg2[%c19_226, %c0_227, %c0_228] : memref<27x1x512xf32, #tpu.memory_space<vmem>>, vector<1x1x512xf32>
    %302 = vector.shape_cast %301 : vector<1x1x512xf32> to vector<1x512xf32>
    %303 = vector.broadcast %302 : vector<1x512xf32> to vector<16x512xf32>
    %304 = arith.mulf %300, %303 : vector<16x512xf32>
    %c304_229 = arith.constant 304 : index
    %c0_230 = arith.constant 0 : index
    %305 = vector.load %arg12[%c304_229, %c0_230] : memref<432x512xf32, #tpu.memory_space<vmem>>, vector<16x512xf32>
    tpu.vector_store %arg12[%c304_229, %c0_230], %304 {strides = array<i32>} : memref<432x512xf32, #tpu.memory_space<vmem>>, vector<16x512xf32>,
    %c455_i32_231 = arith.constant 455 : i32
    %306 = tpu.dynamic_rotate %190 by %c455_i32_231 dim 1 : vector<16x512xf32>, i32 -> vector<16x512xf32>
    %c20_232 = arith.constant 20 : index
    %c0_233 = arith.constant 0 : index
    %c0_234 = arith.constant 0 : index
    %307 = vector.load %arg2[%c20_232, %c0_233, %c0_234] : memref<27x1x512xf32, #tpu.memory_space<vmem>>, vector<1x1x512xf32>
    %308 = vector.shape_cast %307 : vector<1x1x512xf32> to vector<1x512xf32>
    %309 = vector.broadcast %308 : vector<1x512xf32> to vector<16x512xf32>
    %310 = arith.mulf %306, %309 : vector<16x512xf32>
    %c320_235 = arith.constant 320 : index
    %c0_236 = arith.constant 0 : index
    %311 = vector.load %arg12[%c320_235, %c0_236] : memref<432x512xf32, #tpu.memory_space<vmem>>, vector<16x512xf32>
    tpu.vector_store %arg12[%c320_235, %c0_236], %310 {strides = array<i32>} : memref<432x512xf32, #tpu.memory_space<vmem>>, vector<16x512xf32>,
    %c449_i32_237 = arith.constant 449 : i32
    %312 = tpu.dynamic_rotate %190 by %c449_i32_237 dim 1 : vector<16x512xf32>, i32 -> vector<16x512xf32>
    %c21_238 = arith.constant 21 : index
    %c0_239 = arith.constant 0 : index
    %c0_240 = arith.constant 0 : index
    %313 = vector.load %arg2[%c21_238, %c0_239, %c0_240] : memref<27x1x512xf32, #tpu.memory_space<vmem>>, vector<1x1x512xf32>
    %314 = vector.shape_cast %313 : vector<1x1x512xf32> to vector<1x512xf32>
    %315 = vector.broadcast %314 : vector<1x512xf32> to vector<16x512xf32>
    %316 = arith.mulf %312, %315 : vector<16x512xf32>
    %c336_241 = arith.constant 336 : index
    %c0_242 = arith.constant 0 : index
    %317 = vector.load %arg12[%c336_241, %c0_242] : memref<432x512xf32, #tpu.memory_space<vmem>>, vector<16x512xf32>
    tpu.vector_store %arg12[%c336_241, %c0_242], %316 {strides = array<i32>} : memref<432x512xf32, #tpu.memory_space<vmem>>, vector<16x512xf32>,
    %c448_i32_243 = arith.constant 448 : i32
    %318 = tpu.dynamic_rotate %190 by %c448_i32_243 dim 1 : vector<16x512xf32>, i32 -> vector<16x512xf32>
    %c22_244 = arith.constant 22 : index
    %c0_245 = arith.constant 0 : index
    %c0_246 = arith.constant 0 : index
    %319 = vector.load %arg2[%c22_244, %c0_245, %c0_246] : memref<27x1x512xf32, #tpu.memory_space<vmem>>, vector<1x1x512xf32>
    %320 = vector.shape_cast %319 : vector<1x1x512xf32> to vector<1x512xf32>
    %321 = vector.broadcast %320 : vector<1x512xf32> to vector<16x512xf32>
    %322 = arith.mulf %318, %321 : vector<16x512xf32>
    %c352_247 = arith.constant 352 : index
    %c0_248 = arith.constant 0 : index
    %323 = vector.load %arg12[%c352_247, %c0_248] : memref<432x512xf32, #tpu.memory_space<vmem>>, vector<16x512xf32>
    tpu.vector_store %arg12[%c352_247, %c0_248], %322 {strides = array<i32>} : memref<432x512xf32, #tpu.memory_space<vmem>>, vector<16x512xf32>,
    %c447_i32_249 = arith.constant 447 : i32
    %324 = tpu.dynamic_rotate %190 by %c447_i32_249 dim 1 : vector<16x512xf32>, i32 -> vector<16x512xf32>
    %c23_250 = arith.constant 23 : index
    %c0_251 = arith.constant 0 : index
    %c0_252 = arith.constant 0 : index
    %325 = vector.load %arg2[%c23_250, %c0_251, %c0_252] : memref<27x1x512xf32, #tpu.memory_space<vmem>>, vector<1x1x512xf32>
    %326 = vector.shape_cast %325 : vector<1x1x512xf32> to vector<1x512xf32>
    %327 = vector.broadcast %326 : vector<1x512xf32> to vector<16x512xf32>
    %328 = arith.mulf %324, %327 : vector<16x512xf32>
    %c368_253 = arith.constant 368 : index
    %c0_254 = arith.constant 0 : index
    %329 = vector.load %arg12[%c368_253, %c0_254] : memref<432x512xf32, #tpu.memory_space<vmem>>, vector<16x512xf32>
    tpu.vector_store %arg12[%c368_253, %c0_254], %328 {strides = array<i32>} : memref<432x512xf32, #tpu.memory_space<vmem>>, vector<16x512xf32>,
    %c441_i32_255 = arith.constant 441 : i32
    %330 = tpu.dynamic_rotate %190 by %c441_i32_255 dim 1 : vector<16x512xf32>, i32 -> vector<16x512xf32>
    %c24_256 = arith.constant 24 : index
    %c0_257 = arith.constant 0 : index
    %c0_258 = arith.constant 0 : index
    %331 = vector.load %arg2[%c24_256, %c0_257, %c0_258] : memref<27x1x512xf32, #tpu.memory_space<vmem>>, vector<1x1x512xf32>
    %332 = vector.shape_cast %331 : vector<1x1x512xf32> to vector<1x512xf32>
    %333 = vector.broadcast %332 : vector<1x512xf32> to vector<16x512xf32>
    %334 = arith.mulf %330, %333 : vector<16x512xf32>
    %c384_259 = arith.constant 384 : index
    %c0_260 = arith.constant 0 : index
    %335 = vector.load %arg12[%c384_259, %c0_260] : memref<432x512xf32, #tpu.memory_space<vmem>>, vector<16x512xf32>
    tpu.vector_store %arg12[%c384_259, %c0_260], %334 {strides = array<i32>} : memref<432x512xf32, #tpu.memory_space<vmem>>, vector<16x512xf32>,
    %c440_i32_261 = arith.constant 440 : i32
    %336 = tpu.dynamic_rotate %190 by %c440_i32_261 dim 1 : vector<16x512xf32>, i32 -> vector<16x512xf32>
    %c25_262 = arith.constant 25 : index
    %c0_263 = arith.constant 0 : index
    %c0_264 = arith.constant 0 : index
    %337 = vector.load %arg2[%c25_262, %c0_263, %c0_264] : memref<27x1x512xf32, #tpu.memory_space<vmem>>, vector<1x1x512xf32>
    %338 = vector.shape_cast %337 : vector<1x1x512xf32> to vector<1x512xf32>
    %339 = vector.broadcast %338 : vector<1x512xf32> to vector<16x512xf32>
    %340 = arith.mulf %336, %339 : vector<16x512xf32>
    %c400_265 = arith.constant 400 : index
    %c0_266 = arith.constant 0 : index
    %341 = vector.load %arg12[%c400_265, %c0_266] : memref<432x512xf32, #tpu.memory_space<vmem>>, vector<16x512xf32>
    tpu.vector_store %arg12[%c400_265, %c0_266], %340 {strides = array<i32>} : memref<432x512xf32, #tpu.memory_space<vmem>>, vector<16x512xf32>,
    %c439_i32_267 = arith.constant 439 : i32
    %342 = tpu.dynamic_rotate %190 by %c439_i32_267 dim 1 : vector<16x512xf32>, i32 -> vector<16x512xf32>
    %c26_268 = arith.constant 26 : index
    %c0_269 = arith.constant 0 : index
    %c0_270 = arith.constant 0 : index
    %343 = vector.load %arg2[%c26_268, %c0_269, %c0_270] : memref<27x1x512xf32, #tpu.memory_space<vmem>>, vector<1x1x512xf32>
    %344 = vector.shape_cast %343 : vector<1x1x512xf32> to vector<1x512xf32>
    %345 = vector.broadcast %344 : vector<1x512xf32> to vector<16x512xf32>
    %346 = arith.mulf %342, %345 : vector<16x512xf32>
    %c416_271 = arith.constant 416 : index
    %c0_272 = arith.constant 0 : index
    %347 = vector.load %arg12[%c416_271, %c0_272] : memref<432x512xf32, #tpu.memory_space<vmem>>, vector<16x512xf32>
    tpu.vector_store %arg12[%c416_271, %c0_272], %346 {strides = array<i32>} : memref<432x512xf32, #tpu.memory_space<vmem>>, vector<16x512xf32>,
    %c0_273 = arith.constant 0 : index
    %c0_274 = arith.constant 0 : index
    %348 = vector.load %arg9[%c0_273, %c0_274] : memref<4x432xf32, #tpu.memory_space<vmem>>, vector<4x432xf32>
    %c0_275 = arith.constant 0 : index
    %c0_276 = arith.constant 0 : index
    %349 = vector.load %arg12[%c0_275, %c0_276] : memref<432x512xf32, #tpu.memory_space<vmem>>, vector<432x512xf32>
    %cst_277 = arith.constant dense<0.000000e+00> : vector<4x512xf32>
    %350 = tpu.matmul %348, %349, %cst_277 {dimension_numbers = #tpu.dot_dimension_numbers<[1], [0], [0], [1], [0, 0, 1, 1], [], []>} : vector<4x432xf32>, vector<432x512xf32>, vector<4x512xf32> -> vector<4x512xf32>
    %c0_278 = arith.constant 0 : index
    %c0_279 = arith.constant 0 : index
    %351 = vector.load %arg10[%c0_278, %c0_279] : memref<4x1xf32, #tpu.memory_space<vmem>>, vector<4x1xf32>
    %352 = vector.broadcast %351 : vector<4x1xf32> to vector<4x512xf32>
    %353 = arith.addf %350, %352 : vector<4x512xf32>
    %cst_280 = arith.constant 0.000000e+00 : f32
    %354 = vector.broadcast %cst_280 : f32 to vector<4x512xf32>
    %355 = arith.maximumf %353, %354 : vector<4x512xf32>
    %c0_281 = arith.constant 0 : index
    %c8_282 = arith.constant 8 : index
    %c0_283 = arith.constant 0 : index
    %356 = vector.load %arg11[%c0_281, %c8_282, %c0_283] : memref<1x12x512xf32, #tpu.memory_space<vmem>>, vector<1x4x512xf32>
    %357 = vector.shape_cast %356 : vector<1x4x512xf32> to vector<4x512xf32>
    %358 = vector.shape_cast %355 : vector<4x512xf32> to vector<1x4x512xf32>
    tpu.vector_store %arg11[%c0_281, %c8_282, %c0_283], %358 {strides = array<i32>} : memref<1x12x512xf32, #tpu.memory_space<vmem>>, vector<1x4x512xf32>,
    return
  }
  func.func @transform_0(%arg0: i32) -> (i32, i32, i32) {
    %c0_i32 = arith.constant 0 : i32
    %c0_i32_0 = arith.constant 0 : i32
    %c0_i32_1 = arith.constant 0 : i32
    return %arg0, %c0_i32, %c0_i32_0 : i32, i32, i32
  }
  func.func @transform_1(%arg0: i32) -> (i32, i32, i32) {
    %c0_i32 = arith.constant 0 : i32
    %c0_i32_0 = arith.constant 0 : i32
    %c0_i32_1 = arith.constant 0 : i32
    %c0_i32_2 = arith.constant 0 : i32
    return %c0_i32, %c0_i32_0, %c0_i32_1 : i32, i32, i32
  }
  func.func @transform_2(%arg0: i32) -> (i32, i32) {
    %c0_i32 = arith.constant 0 : i32
    %c0_i32_0 = arith.constant 0 : i32
    %c0_i32_1 = arith.constant 0 : i32
    return %c0_i32, %c0_i32_0 : i32, i32
  }
  func.func @transform_3(%arg0: i32) -> (i32, i32) {
    %c0_i32 = arith.constant 0 : i32
    %c0_i32_0 = arith.constant 0 : i32
    %c0_i32_1 = arith.constant 0 : i32
    return %c0_i32, %c0_i32_0 : i32, i32
  }
  func.func @transform_4(%arg0: i32) -> (i32, i32) {
    %c0_i32 = arith.constant 0 : i32
    %c0_i32_0 = arith.constant 0 : i32
    %c0_i32_1 = arith.constant 0 : i32
    return %c0_i32, %c0_i32_0 : i32, i32
  }
  func.func @transform_5(%arg0: i32) -> (i32, i32) {
    %c0_i32 = arith.constant 0 : i32
    %c0_i32_0 = arith.constant 0 : i32
    %c0_i32_1 = arith.constant 0 : i32
    return %c0_i32, %c0_i32_0 : i32, i32
  }
  func.func @transform_6(%arg0: i32) -> (i32, i32) {
    %c0_i32 = arith.constant 0 : i32
    %c0_i32_0 = arith.constant 0 : i32
    %c0_i32_1 = arith.constant 0 : i32
    return %c0_i32, %c0_i32_0 : i32, i32
  }
  func.func @transform_7(%arg0: i32) -> (i32, i32) {
    %c0_i32 = arith.constant 0 : i32
    %c0_i32_0 = arith.constant 0 : i32
    %c0_i32_1 = arith.constant 0 : i32
    return %c0_i32, %c0_i32_0 : i32, i32
  }
  func.func @transform_8(%arg0: i32) -> (i32, i32) {
    %c0_i32 = arith.constant 0 : i32
    %c0_i32_0 = arith.constant 0 : i32
    %c0_i32_1 = arith.constant 0 : i32
    return %c0_i32, %c0_i32_0 : i32, i32
  }
  func.func @transform_9(%arg0: i32) -> (i32, i32) {
    %c0_i32 = arith.constant 0 : i32
    %c0_i32_0 = arith.constant 0 : i32
    %c0_i32_1 = arith.constant 0 : i32
    return %c0_i32, %c0_i32_0 : i32, i32
  }
  func.func @transform_10(%arg0: i32) -> (i32, i32, i32) {
    %c0_i32 = arith.constant 0 : i32
    %c0_i32_0 = arith.constant 0 : i32
    %c0_i32_1 = arith.constant 0 : i32
    return %arg0, %c0_i32, %c0_i32_0 : i32, i32, i32
  }
}

</mosaic_0001>

<bundles_post_ra>
// kernel: tpu_custom_call.1
= control target key start
LH: loop header
LB: loop body
LE: loop exit
PB: predicated region body
PF: predicated region fallthrough
CT: control target
= control target key end

     0   :  { %15 = vsyncpa [#allocation4], 0  ;;  %s5398_s13 = smov 0   ;;  %s8784_s0 = inlined_call_operand.vmem [shape: f32[2,4,512], index: 0, kind: input, shape index: {}]   ;;  %s8785_s1 = inlined_call_operand.hbm [shape: f32[27,1,512], index: 1, kind: input, shape index: {}]   ;;  %s8786_s2 = inlined_call_operand.vmem [shape: f32[16,4], index: 2, kind: input, shape index: {}]   ;;  %s8787_s3 = inlined_call_operand.vmem [shape: f32[16,1], index: 3, kind: input, shape index: {}]   ;;  %s8788_s4 = inlined_call_operand.vmem [shape: f32[4,432], index: 4, kind: input, shape index: {}]   ;;  %s8789_s5 = inlined_call_operand.vmem [shape: f32[4,1], index: 5, kind: input, shape index: {}]   ;;  %s8790_s6 = inlined_call_operand.vmem [shape: f32[16,8], index: 6, kind: input, shape index: {}]   ;;  %s8791_s7 = inlined_call_operand.vmem [shape: f32[16,1], index: 7, kind: input, shape index: {}]   ;;  %s8792_s8 = inlined_call_operand.vmem [shape: f32[4,432], index: 8, kind: input, shape index: {}]   ;;  %s8793_s9 = inlined_call_operand.vmem [shape: f32[4,1], index: 9, kind: input, shape index: {}]   ;;  %s8794_s10 = inlined_call_operand.vmem [shape: f32[2,12,512], index: 10, kind: output, shape index: {}]  }
   0x1 LB: > { %s5404_s14 = sadd.s32 4294967295, %s5319_s13   ;;  %p4754_p0 = scmp.ge.s32.totalorder %s5319_s13, 1  ;;  %s5319_s13 = sphi %s5398_s13, %s21_s13  }
   0x2   : > { %p267_p1 = scmp.lt.s32.totalorder %s5319_s13, 3  ;;  %s5321_s15 = smov [#allocation3]  }
   0x3   : > { %s279_s16 = sshll.u32 %s5321_s15, 4  ;;  %p8795_p3 = scmp.eq.s32.totalorder %s5404_s14, 0  ;;  %s280_s16 = int_to_ptr.vmem [resolvable:$true] %s279_s16 }
   0x4   : > { %p5408_p2 = pnand %p4754_p0, %p267_p1  ;;  %s5281_s21 = scalar_lea.hbm %s8785_s1, 1728 }
   0x5   : > { %p5282_p6 = scmp.ne.s32.totalorder %s8785_s1, %s5281_s21  ;;  %p5288_p10 = scmp.lt.u32.totalorder %s5281_s21, %s8785_s1 }
   0x6   : > { %s9118_s17 = scalar_select %p5408_p2, 1, 0 }
   0x7   : > { %p5235_p4 = pneg %p5408_p2 }
   0x9   : > { %p5417_p5 = pnand %p8795_p3, %p5235_p4 }
   0xb   : > { %p5283_p7 = pneg %p5417_p5 }
   0xd   : > { %p5284_p8 = pnand %p5283_p7, %p5282_p6 }
   0xf   : > { %p5285_p9 = pneg %p5284_p8 }
  0x11   : > { %p5290_p11 = pnand %p5288_p10, %p5285_p9 }
  0x13   : > { %5293 = shalt.err (!%p5290_p11)
}
  0x14   : > { %s5294_s26 = scalar_lea.vmem %s280_s16, 1728  ;;  %p5302_p1 = scmp.lt.s32.totalorder %s280_s16, %s280_s16 }
  0x15   : > { %p5295_p12 = scmp.ne.s32.totalorder %s280_s16, %s5294_s26  ;;  %p5303_p4 = scmp.lt.s32.totalorder %s5294_s26, %s5294_s26 }
  0x17   : > { %p5297_p13 = pnand %p5295_p12, %p5283_p7  ;;  %p5304_p3 = por %p5303_p4, %p5302_p1 }
  0x19   : > { %p5298_p0 = pneg %p5297_p13 }
  0x1b   : > { %p5305_p2 = pnand %p5304_p3, %p5298_p0 }
  0x1d   : > { %5308 = shalt.err (!%p5305_p2)
}
  0x1e   : > { %s5322_s27 = smov 64   ;;  %s5323_s28 = smov 4  }
  0x1f   : > { %5238 = dma.hbm_to_vmem [thread:$0]  (!%p5417_p5), %s8785_s1, 1728, %s280_s16, [#allocation4], %s5322_s27, %s5322_s27, %s5323_s28  }
  0x20   : > { %p9120_p6 = scmp.ne.s32.totalorder %s9118_s17, 0 }
  0x22   : > { %327 = sbr.rel (%p9120_p6) target bundleno = 1814 (0x716), region = 60 }
  0x29   : > { %p9121_p8 = scmp.eq.s32.totalorder %s5404_s14, 0 }
  0x2b   : > { %5314 = dma.done.wait (%p9121_p8), [#allocation4], 1728   ;;  %p9122_p7 = pmov %p9121_p8 }
  0x2c   : > { %p365_p2 = scmp.lt.s32.totalorder %s5404_s14, 1  ;;  %v8797_v0 = vmov 0.0   ;;  %v5325_v1 = vmov 0   ;;  %v393_v6 = vld [vmem:[%s8787_s3] sm:$0xff]  ;;  %v394_v7 = vld [vmem:[%s8787_s3 + $0x8] sm:$0xff]  ;;  %vm412_vm0 = vcmask 1043456  }
  0x2d   : > { %5316 = vsyncadd (%p9122_p7), [#allocation4], 4294965568  ;;  %489 = vmatprep.mubr.f32.mxu0 %v8797_v0  ;;  %566 = vmatprep.mubr.f32.mxu1 %v8797_v0  ;;  %v387_v12 = vld [vmem:[%s8786_s2] sm:$0xff]  ;;  %vm405_vm1 = vcmask 31744   ;;  %v388_v13 = vld [vmem:[%s8786_s2 + $0x8] sm:$0xff]  ;;  %s5326_s28 = smov 73  }
  0x2e   : > { %s9827_s14 = smov (!%p365_p2, %s5404_s14), 1  ;;  %5271 = vset.pattern.permute.xlu0 %v5325_v1  ;;  %5272 = vset.pattern.permute.xlu1 %v5325_v1  ;;  %s5327_s29 = smov 72  }
  0x2f   : > { %s4781_s11 = sshll.u32 %s9827_s14, 4  ;;  %s4782_s12 = sshll.u32 %s9827_s14, 6  ;;  %397 = vperm.xlu0 %5271, %v393_v6  }
  0x30   : > { %s369_s17 = scalar_lea.vmem %s8784_s0, %s4781_s11  ;;  %s5453_s20 = scalar_lea.vmem %s8794_s10, %s4782_s12 }
  0x31   : > { %v375_v2 = vld [vmem:[%s369_s17] sm:$0xff]  ;;  %v376_v3 = vld [vmem:[%s369_s17 + $0x8] sm:$0xff]  ;;  %s5328_s30 = smov 71   ;;  %s5329_s11 = smov 65  }
  0x32   : > { %v379_v4 = vcombine.high %v375_v2, %v375_v2  ;;  %383 = vst [vmem:[%s5453_s20] sm:$0xf] %v375_v2  ;;  %v380_v5 = vcombine.high %v376_v3, %v376_v3  ;;  %385 = vst [vmem:[%s5453_s20 + $0x10] sm:$0xf] %v376_v3  ;;  %s5330_s12 = smov 64   ;;  %s5331_s15 = smov 63  }
  0x33   : > { %402 = vperm.xlu0 %5271, %v394_v7   ;;  %s5332_s16 = smov 57   ;;  %s5333_s17 = smov 56  }
  0x34   : > { %384 = vst [vmem:[%s5453_s20 + $0x8] sm:$0xf] %v379_v4  ;;  %386 = vst [vmem:[%s5453_s20 + $0x18] sm:$0xf] %v380_v5  ;;  %s5334_s18 = smov 55   ;;  %s5335_s19 = smov 9  }
  0x35   : > { %s5336_s14 = smov 8   ;;  %s5337_s21 = smov 7  }
  0x36   : > { %s5338_s22 = smov 1   ;;  %s5339_s23 = smov 127  }
  0x37   : > { %s8965_s24 = smov 121   ;;  %s8909_s25 = smov 120  }
  0x38   : > { %s8963_s26 = smov 119  }
  0x39   : > { %v389_v8 = vld [vmem:[%s5453_s20] sm:$0xf]  ;;  %v391_v9 = vld [vmem:[%s5453_s20 + $0x10] sm:$0xf] }
  0x3b   : > { %v390_v10 = vld [vmem:[%s5453_s20 + $0x8] sm:$0xf]  ;;  %v392_v11 = vld [vmem:[%s5453_s20 + $0x18] sm:$0xf] }
  0x3c   : > { %4763 = vmatprep.subr.msk.mxu0 %vm412_vm0, %v390_v10  ;;  %4767 = vmatprep.subr.msk.mxu1 %vm412_vm0, %v392_v11 }
  0x3d   : > { %4764 = vmatpush1.msk.msra.mxu0 %vm412_vm0, %v389_v8  ;;  %4768 = vmatpush1.msk.msra.mxu1 %vm412_vm0, %v391_v9 }
  0x3e   : > { %4765 = vmatmul.mubr.msk.f32.vlgmr.msra.gmra.mrb[0].mxu0 %vm405_vm1, %v387_v12  ;;  %4769 = vmatmul.mubr.msk.f32.vlgmr.msra.gmra.mrb[0].mxu1 %vm405_vm1, %v387_v12 }
  0x3f   : > { %495 = vmatprep.mubr.f32.mxu0 %v8797_v0  ;;  %572 = vmatprep.mubr.f32.mxu1 %v8797_v0  ;;  %v614_v0 = vld [vmem:[#allocation3] sm:$0xf] }
  0x42   : > { %4766 = vmatmul.mubr.msk.f32.gmra.mrb[2].mxu0 %vm405_vm1, %v388_v13  ;;  %4770 = vmatmul.mubr.msk.f32.gmra.mrb[2].mxu1 %vm405_vm1, %v388_v13  ;;  %vm8961_vm1 = vcmask 392192  }
  0xae   : > { %v5477_v14 = vpop.permute.xlu0 %397 }
  0xb2   : > { %v5485_v21 = vpop.permute.xlu0 %402 }
 0x111   : > { %v491_v15 = vpop.f32.mrb[0].mxu0  ;;  %v568_v16 = vpop.f32.mrb[0].mxu1 }
 0x112   : > { %v492_v17 = vadd.f32 %v491_v15, %v5477_v14  ;;  %v569_v18 = vadd.f32 %v568_v16, %v5477_v14  ;;  %v5481_v19 = vpop.f32.mrb[1].mxu0  ;;  %v5483_v20 = vpop.f32.mrb[1].mxu1 }
 0x113   : > { %v494_v32 = vadd.f32 %v5481_v19, %v5477_v14  ;;  %v571_v34 = vadd.f32 %v5483_v20, %v5477_v14 }
 0x114   : > { %v5487_v22 = vmax.f32 %v492_v17, 0.0  ;;  %v5489_v23 = vmax.f32 %v569_v18, 0.0 }
 0x115   : > { %v497_v24 = vpop.f32.mrb[2].mxu0  ;;  %v574_v25 = vpop.f32.mrb[2].mxu1  ;;  %v5619_v33 = vmax.f32 %v494_v32, 0.0  ;;  %v5631_v37 = vmax.f32 %v571_v34, 0.0 }
 0x116   : > { %9123 = vst [vmem:[#allocation6_spill] sm:$0xff] %v5487_v22  ;;  %9124 = vst [vmem:[#allocation7_spill] sm:$0xff] %v5489_v23  ;;  %v498_v26 = vadd.f32 %v497_v24, %v5485_v21  ;;  %v5492_v27 = vpop.f32.mrb[3].mxu1  ;;  %595 = vrot.lane.b32.xlu0 %v5489_v23, %s5326_s28  ;;  %v5496_v28 = vpop.f32.mrb[3].mxu0  ;;  %587 = vrot.lane.b32.xlu1 %v5487_v22, %s5326_s28  ;;  %v575_v30 = vadd.f32 %v574_v25, %v5485_v21 }
 0x117   : > { %9127 = vst [vmem:[#allocation10_spill] sm:$0xff] %v5619_v33  ;;  %9128 = vst [vmem:[#allocation11_spill] sm:$0xff] %v5631_v37  ;;  %v500_v38 = vadd.f32 %v5496_v28, %v5485_v21  ;;  %v577_v41 = vadd.f32 %v5492_v27, %v5485_v21  ;;  %v603_v27 = vlaneseq }
 0x118   : > { %v5500_v29 = vmax.f32 %v498_v26, 0.0  ;;  %v5507_v31 = vmax.f32 %v575_v30, 0.0 }
 0x119   : > { %v5645_v42 = vmax.f32 %v500_v38, 0.0  ;;  %v5655_v45 = vmax.f32 %v577_v41, 0.0  ;;  %v617_v32 = vshrl.u32 %v603_v27, 7 }
 0x11a   : > { %9125 = vst [vmem:[#allocation8_spill] sm:$0xff] %v5500_v29  ;;  %652 = vrot.lane.b32.xlu0 %v5487_v22, %s5327_s29  ;;  %589 = vrot.lane.b32.xlu1 %v5500_v29, %s5326_s28  ;;  %9126 = vst [vmem:[#allocation9_spill] sm:$0xff] %v5507_v31 }
 0x11b   : > { %9129 = vst [vmem:[#allocation12_spill] sm:$0xff] %v5645_v42  ;;  %9130 = vst [vmem:[#allocation13_spill] sm:$0xff] %v5655_v45  ;;  %v5841_v41 = vsub.s32 1, %v617_v32 }
 0x11d   : > { %9170 = vst [vmem:[#allocation53_spill] sm:$0xff] %v5841_v41 }
 0x11e   : > { %660 = vrot.lane.b32.xlu0 %v5489_v23, %s5327_s29  ;;  %597 = vrot.lane.b32.xlu1 %v5507_v31, %s5326_s28 }
 0x122   : > { %716 = vrot.lane.b32.xlu0 %v5487_v22, %s5328_s30  ;;  %654 = vrot.lane.b32.xlu1 %v5500_v29, %s5327_s29 }
 0x126   : > { %724 = vrot.lane.b32.xlu0 %v5489_v23, %s5328_s30  ;;  %662 = vrot.lane.b32.xlu1 %v5507_v31, %s5327_s29 }
 0x12a   : > { %780 = vrot.lane.b32.xlu0 %v5487_v22, %s5329_s11  ;;  %718 = vrot.lane.b32.xlu1 %v5500_v29, %s5328_s30 }
 0x12e   : > { %788 = vrot.lane.b32.xlu0 %v5489_v23, %s5329_s11  ;;  %726 = vrot.lane.b32.xlu1 %v5507_v31, %s5328_s30 }
 0x132   : > { %844 = vrot.lane.b32.xlu0 %v5487_v22, %s5330_s12  ;;  %782 = vrot.lane.b32.xlu1 %v5500_v29, %s5329_s11 }
 0x136   : > { %852 = vrot.lane.b32.xlu0 %v5489_v23, %s5330_s12  ;;  %790 = vrot.lane.b32.xlu1 %v5507_v31, %s5329_s11 }
 0x13a   : > { %908 = vrot.lane.b32.xlu0 %v5487_v22, %s5331_s15  ;;  %846 = vrot.lane.b32.xlu1 %v5500_v29, %s5330_s12 }
 0x13e   : > { %916 = vrot.lane.b32.xlu0 %v5489_v23, %s5331_s15  ;;  %854 = vrot.lane.b32.xlu1 %v5507_v31, %s5330_s12 }
 0x142   : > { %972 = vrot.lane.b32.xlu0 %v5487_v22, %s5332_s16  ;;  %910 = vrot.lane.b32.xlu1 %v5500_v29, %s5331_s15 }
 0x146   : > { %980 = vrot.lane.b32.xlu0 %v5489_v23, %s5332_s16  ;;  %918 = vrot.lane.b32.xlu1 %v5507_v31, %s5331_s15 }
 0x14a   : > { %1036 = vrot.lane.b32.xlu0 %v5487_v22, %s5333_s17  ;;  %974 = vrot.lane.b32.xlu1 %v5500_v29, %s5332_s16 }
 0x14e   : > { %1044 = vrot.lane.b32.xlu0 %v5489_v23, %s5333_s17  ;;  %982 = vrot.lane.b32.xlu1 %v5507_v31, %s5332_s16 }
 0x152   : > { %1100 = vrot.lane.b32.xlu0 %v5487_v22, %s5334_s18  ;;  %1038 = vrot.lane.b32.xlu1 %v5500_v29, %s5333_s17 }
 0x156   : > { %1108 = vrot.lane.b32.xlu0 %v5489_v23, %s5334_s18  ;;  %1046 = vrot.lane.b32.xlu1 %v5507_v31, %s5333_s17 }
 0x15a   : > { %1164 = vrot.lane.b32.xlu0 %v5487_v22, %s5335_s19  ;;  %1102 = vrot.lane.b32.xlu1 %v5500_v29, %s5334_s18 }
 0x15e   : > { %1172 = vrot.lane.b32.xlu0 %v5489_v23, %s5335_s19  ;;  %1110 = vrot.lane.b32.xlu1 %v5507_v31, %s5334_s18 }
 0x162   : > { %1228 = vrot.lane.b32.xlu0 %v5487_v22, %s5336_s14  ;;  %1166 = vrot.lane.b32.xlu1 %v5500_v29, %s5335_s19 }
 0x166   : > { %1236 = vrot.lane.b32.xlu0 %v5489_v23, %s5336_s14  ;;  %1174 = vrot.lane.b32.xlu1 %v5507_v31, %s5335_s19 }
 0x16a   : > { %1292 = vrot.lane.b32.xlu0 %v5487_v22, %s5337_s21  ;;  %1230 = vrot.lane.b32.xlu1 %v5500_v29, %s5336_s14 }
 0x16e   : > { %1300 = vrot.lane.b32.xlu0 %v5489_v23, %s5337_s21  ;;  %1238 = vrot.lane.b32.xlu1 %v5507_v31, %s5336_s14 }
 0x172   : > { %1356 = vrot.lane.b32.xlu0 %v5487_v22, %s5338_s22  ;;  %1294 = vrot.lane.b32.xlu1 %v5500_v29, %s5337_s21 }
 0x176   : > { %1364 = vrot.lane.b32.xlu0 %v5489_v23, %s5338_s22  ;;  %1302 = vrot.lane.b32.xlu1 %v5507_v31, %s5337_s21 }
 0x17a   : > { %1428 = vrot.lane.b32.xlu0 %v5487_v22, %s5339_s23  ;;  %1358 = vrot.lane.b32.xlu1 %v5500_v29, %s5338_s22 }
 0x17e   : > { %1436 = vrot.lane.b32.xlu0 %v5489_v23, %s5339_s23  ;;  %1366 = vrot.lane.b32.xlu1 %v5507_v31, %s5338_s22 }
 0x182   : > { %1492 = vrot.lane.b32.xlu0 %v5487_v22, %s8965_s24  ;;  %1430 = vrot.lane.b32.xlu1 %v5500_v29, %s5339_s23 }
 0x186   : > { %1500 = vrot.lane.b32.xlu0 %v5489_v23, %s8965_s24  ;;  %1438 = vrot.lane.b32.xlu1 %v5507_v31, %s5339_s23 }
 0x188   : > { %v5623_v35 = vpop.permute.xlu0 %595  ;;  %v5625_v36 = vpop.permute.xlu1 %587 }
 0x18a   : > { %591 = vrot.lane.b32.xlu0 %v5619_v33, %s5326_s28  ;;  %1494 = vrot.lane.b32.xlu1 %v5500_v29, %s8965_s24 }
 0x18c   : > { %v5635_v39 = vpop.permute.xlu0 %652  ;;  %v5637_v40 = vpop.permute.xlu1 %589 }
 0x18e   : > { %599 = vrot.lane.b32.xlu0 %v5631_v37, %s5326_s28  ;;  %1502 = vrot.lane.b32.xlu1 %v5507_v31, %s8965_s24 }
 0x190   : > { %v5647_v43 = vpop.permute.xlu0 %660  ;;  %v5649_v44 = vpop.permute.xlu1 %597 }
 0x192   : > { %656 = vrot.lane.b32.xlu0 %v5619_v33, %s5327_s29  ;;  %593 = vrot.lane.b32.xlu1 %v5645_v42, %s5326_s28 }
 0x194   : > { %v5657_v46 = vpop.permute.xlu0 %716  ;;  %v5659_v47 = vpop.permute.xlu1 %654 }
 0x196   : > { %664 = vrot.lane.b32.xlu0 %v5631_v37, %s5327_s29  ;;  %601 = vrot.lane.b32.xlu1 %v5655_v45, %s5326_s28 }
 0x198   : > { %v5665_v48 = vpop.permute.xlu0 %724  ;;  %v5667_v49 = vpop.permute.xlu1 %662 }
 0x19a   : > { %720 = vrot.lane.b32.xlu0 %v5619_v33, %s5328_s30  ;;  %658 = vrot.lane.b32.xlu1 %v5645_v42, %s5327_s29 }
 0x19c   : > { %v5673_v50 = vpop.permute.xlu0 %780  ;;  %v5675_v51 = vpop.permute.xlu1 %718 }
 0x19e   : > { %728 = vrot.lane.b32.xlu0 %v5631_v37, %s5328_s30  ;;  %666 = vrot.lane.b32.xlu1 %v5655_v45, %s5327_s29 }
 0x1a0   : > { %v5681_v52 = vpop.permute.xlu0 %788  ;;  %v5683_v53 = vpop.permute.xlu1 %726 }
 0x1a1   : > { %9131 = vst [vmem:[#allocation14_spill] sm:$0xff] %v5681_v52 }
 0x1a2   : > { %784 = vrot.lane.b32.xlu0 %v5619_v33, %s5329_s11  ;;  %722 = vrot.lane.b32.xlu1 %v5645_v42, %s5328_s30 }
 0x1a4   : > { %v5689_v54 = vpop.permute.xlu0 %844  ;;  %v5691_v55 = vpop.permute.xlu1 %782 }
 0x1a5   : > { %9132 = vst [vmem:[#allocation15_spill] sm:$0xff] %v5689_v54  ;;  %9133 = vst [vmem:[#allocation16_spill] sm:$0xff] %v5691_v55  ;;  %v1880_v54 = vld [vmem:[#allocation3 + $0x5c] sm:$0xf] }
 0x1a6   : > { %792 = vrot.lane.b32.xlu0 %v5631_v37, %s5329_s11  ;;  %730 = vrot.lane.b32.xlu1 %v5655_v45, %s5328_s30 }
 0x1a8   : > { %v5697_v56 = vpop.permute.xlu0 %852  ;;  %v5699_v57 = vpop.permute.xlu1 %790 }
 0x1a9   : > { %9134 = vst [vmem:[#allocation17_spill] sm:$0xff] %v5697_v56  ;;  %9135 = vst [vmem:[#allocation18_spill] sm:$0xff] %v5699_v57  ;;  %v934_v57 = vld [vmem:[#allocation3 + $0x14] sm:$0xf] }
 0x1aa   : > { %848 = vrot.lane.b32.xlu0 %v5619_v33, %s5330_s12  ;;  %786 = vrot.lane.b32.xlu1 %v5645_v42, %s5329_s11 }
 0x1ac   : > { %v5705_v58 = vpop.permute.xlu0 %908  ;;  %v5707_v59 = vpop.permute.xlu1 %846 }
 0x1ad   : > { %9136 = vst [vmem:[#allocation19_spill] sm:$0xff] %v5705_v58  ;;  %9137 = vst [vmem:[#allocation20_spill] sm:$0xff] %v5707_v59  ;;  %v870_v59 = vld [vmem:[#allocation3 + $0x10] sm:$0xf] }
 0x1ae   : > { %856 = vrot.lane.b32.xlu0 %v5631_v37, %s5330_s12  ;;  %794 = vrot.lane.b32.xlu1 %v5655_v45, %s5329_s11 }
 0x1b0   : > { %v5713_v60 = vpop.permute.xlu0 %916  ;;  %v5715_v61 = vpop.permute.xlu1 %854 }
 0x1b1   : > { %9138 = vst [vmem:[#allocation21_spill] sm:$0xff] %v5713_v60  ;;  %9139 = vst [vmem:[#allocation22_spill] sm:$0xff] %v5715_v61  ;;  %v1841_v61 = vld [vmem:[#allocation3 + $0x58] sm:$0xf] }
 0x1b2   : > { %912 = vrot.lane.b32.xlu0 %v5619_v33, %s5331_s15  ;;  %850 = vrot.lane.b32.xlu1 %v5645_v42, %s5330_s12 }
 0x1b4   : > { %v5721_v62 = vpop.permute.xlu0 %972  ;;  %v5723_v63 = vpop.permute.xlu1 %910 }
 0x1b5   : > { %9140 = vst [vmem:[#allocation23_spill] sm:$0xff] %v5721_v62  ;;  %9141 = vst [vmem:[#allocation24_spill] sm:$0xff] %v5723_v63 }
 0x1b6   : > { %920 = vrot.lane.b32.xlu0 %v5631_v37, %s5331_s15  ;;  %858 = vrot.lane.b32.xlu1 %v5655_v45, %s5330_s12 }
 0x1b8   : > { %v5729_v1 = vpop.permute.xlu0 %980  ;;  %v5731_v2 = vpop.permute.xlu1 %918 }
 0x1b9   : > { %9142 = vst [vmem:[#allocation25_spill] sm:$0xff] %v5729_v1  ;;  %9143 = vst [vmem:[#allocation26_spill] sm:$0xff] %v5731_v2 }
 0x1ba   : > { %976 = vrot.lane.b32.xlu0 %v5619_v33, %s5332_s16  ;;  %914 = vrot.lane.b32.xlu1 %v5645_v42, %s5331_s15 }
 0x1bc   : > { %v5737_v3 = vpop.permute.xlu0 %1036  ;;  %v5739_v4 = vpop.permute.xlu1 %974 }
 0x1bd   : > { %9144 = vst [vmem:[#allocation27_spill] sm:$0xff] %v5737_v3  ;;  %9145 = vst [vmem:[#allocation28_spill] sm:$0xff] %v5739_v4  ;;  %v806_v4 = vld [vmem:[#allocation3 + $0xc] sm:$0xf] }
 0x1be   : > { %984 = vrot.lane.b32.xlu0 %v5631_v37, %s5332_s16  ;;  %922 = vrot.lane.b32.xlu1 %v5655_v45, %s5331_s15  ;;  %v5944_v58 = vrot.slane %v806_v4, %v5841_v41 }
 0x1c0   : > { %v5745_v5 = vpop.permute.xlu0 %1044  ;;  %v5747_v6 = vpop.permute.xlu1 %982  ;;  %9181 = vst [vmem:[#allocation64_spill] sm:$0xff] %v5944_v58 }
 0x1c1   : > { %9146 = vst [vmem:[#allocation29_spill] sm:$0xff] %v5745_v5  ;;  %9147 = vst [vmem:[#allocation30_spill] sm:$0xff] %v5747_v6  ;;  %v1802_v6 = vld [vmem:[#allocation3 + $0x54] sm:$0xf] }
 0x1c2   : > { %1040 = vrot.lane.b32.xlu0 %v5619_v33, %s5333_s17  ;;  %978 = vrot.lane.b32.xlu1 %v5645_v42, %s5332_s16 }
 0x1c4   : > { %v5753_v7 = vpop.permute.xlu0 %1100  ;;  %v5755_v8 = vpop.permute.xlu1 %1038 }
 0x1c5   : > { %9148 = vst [vmem:[#allocation31_spill] sm:$0xff] %v5753_v7  ;;  %9149 = vst [vmem:[#allocation32_spill] sm:$0xff] %v5755_v8 }
 0x1c6   : > { %1048 = vrot.lane.b32.xlu0 %v5631_v37, %s5333_s17  ;;  %986 = vrot.lane.b32.xlu1 %v5655_v45, %s5332_s16 }
 0x1c8   : > { %v5761_v9 = vpop.permute.xlu0 %1108  ;;  %v5763_v10 = vpop.permute.xlu1 %1046 }
 0x1c9   : > { %9150 = vst [vmem:[#allocation33_spill] sm:$0xff] %v5761_v9  ;;  %9151 = vst [vmem:[#allocation34_spill] sm:$0xff] %v5763_v10 }
 0x1ca   : > { %1104 = vrot.lane.b32.xlu0 %v5619_v33, %s5334_s18  ;;  %1042 = vrot.lane.b32.xlu1 %v5645_v42, %s5333_s17 }
 0x1cc   : > { %v5769_v11 = vpop.permute.xlu0 %1164  ;;  %v5771_v12 = vpop.permute.xlu1 %1102 }
 0x1cd   : > { %9152 = vst [vmem:[#allocation35_spill] sm:$0xff] %v5769_v11  ;;  %9153 = vst [vmem:[#allocation36_spill] sm:$0xff] %v5771_v12  ;;  %v742_v12 = vld [vmem:[#allocation3 + $0x8] sm:$0xf] }
 0x1ce   : > { %1112 = vrot.lane.b32.xlu0 %v5631_v37, %s5334_s18  ;;  %1050 = vrot.lane.b32.xlu1 %v5655_v45, %s5333_s17  ;;  %v5916_v3 = vrot.slane %v742_v12, %v5841_v41 }
 0x1d0   : > { %v5777_v13 = vpop.permute.xlu0 %1172  ;;  %v5779_v14 = vpop.permute.xlu1 %1110 }
 0x1d1   : > { %9154 = vst [vmem:[#allocation37_spill] sm:$0xff] %v5777_v13  ;;  %9155 = vst [vmem:[#allocation38_spill] sm:$0xff] %v5779_v14  ;;  %v1763_v14 = vld [vmem:[#allocation3 + $0x50] sm:$0xf] }
 0x1d2   : > { %1168 = vrot.lane.b32.xlu0 %v5619_v33, %s5335_s19  ;;  %1106 = vrot.lane.b32.xlu1 %v5645_v42, %s5334_s18 }
 0x1d4   : > { %v5785_v15 = vpop.permute.xlu0 %1228  ;;  %v5787_v16 = vpop.permute.xlu1 %1166 }
 0x1d5   : > { %9156 = vst [vmem:[#allocation39_spill] sm:$0xff] %v5785_v15  ;;  %9157 = vst [vmem:[#allocation40_spill] sm:$0xff] %v5787_v16 }
 0x1d6   : > { %1176 = vrot.lane.b32.xlu0 %v5631_v37, %s5335_s19  ;;  %1114 = vrot.lane.b32.xlu1 %v5655_v45, %s5334_s18 }
 0x1d8   : > { %v5793_v17 = vpop.permute.xlu0 %1236  ;;  %v5795_v18 = vpop.permute.xlu1 %1174 }
 0x1d9   : > { %9158 = vst [vmem:[#allocation41_spill] sm:$0xff] %v5793_v17  ;;  %9159 = vst [vmem:[#allocation42_spill] sm:$0xff] %v5795_v18 }
 0x1da   : > { %1232 = vrot.lane.b32.xlu0 %v5619_v33, %s5336_s14  ;;  %1170 = vrot.lane.b32.xlu1 %v5645_v42, %s5335_s19 }
 0x1dc   : > { %v5801_v19 = vpop.permute.xlu0 %1292  ;;  %v5803_v20 = vpop.permute.xlu1 %1230 }
 0x1dd   : > { %9160 = vst [vmem:[#allocation43_spill] sm:$0xff] %v5801_v19  ;;  %9161 = vst [vmem:[#allocation44_spill] sm:$0xff] %v5803_v20  ;;  %v5858_v19 = vrot.slane %v614_v0, %v5841_v41 }
 0x1de   : > { %1240 = vrot.lane.b32.xlu0 %v5631_v37, %s5336_s14  ;;  %1178 = vrot.lane.b32.xlu1 %v5655_v45, %s5335_s19 }
 0x1e0   : > { %v5809_v21 = vpop.permute.xlu0 %1300  ;;  %v5811_v24 = vpop.permute.xlu1 %1238 }
 0x1e1   : > { %9162 = vst [vmem:[#allocation45_spill] sm:$0xff] %v5809_v21  ;;  %9163 = vst [vmem:[#allocation46_spill] sm:$0xff] %v5811_v24  ;;  %v1724_v24 = vld [vmem:[#allocation3 + $0x4c] sm:$0xf] }
 0x1e2   : > { %1296 = vrot.lane.b32.xlu0 %v5619_v33, %s5337_s21  ;;  %1234 = vrot.lane.b32.xlu1 %v5645_v42, %s5336_s14 }
 0x1e4   : > { %v5817_v25 = vpop.permute.xlu0 %1356  ;;  %v5819_v26 = vpop.permute.xlu1 %1294 }
 0x1e5   : > { %9164 = vst [vmem:[#allocation47_spill] sm:$0xff] %v5817_v25  ;;  %9165 = vst [vmem:[#allocation48_spill] sm:$0xff] %v5819_v26  ;;  %v5845_v25 = vsub.s32 2, %v617_v32  ;;  %v5851_v26 = vsub.s32 3, %v617_v32 }
 0x1e6   : > { %1304 = vrot.lane.b32.xlu0 %v5631_v37, %s5337_s21  ;;  %1242 = vrot.lane.b32.xlu1 %v5655_v45, %s5336_s14 }
 0x1e7   : > { %9172 = vst [vmem:[#allocation55_spill] sm:$0xff] %v5845_v25  ;;  %9175 = vst [vmem:[#allocation58_spill] sm:$0xff] %v5851_v26  ;;  %v5861_v17 = vrot.slane %v614_v0, %v5845_v25  ;;  %v5877_v16 = vrot.slane %v614_v0, %v5851_v26  ;;  %v5910_v7 = vrot.slane %v1724_v24, %v5845_v25 }
 0x1e8   : > { %v5825_v28 = vpop.permute.xlu0 %1364  ;;  %v5827_v30 = vpop.permute.xlu1 %1302  ;;  %v5913_v9 = vrot.slane %v1724_v24, %v5851_v26  ;;  %v5919_v5 = vrot.slane %v742_v12, %v5845_v25  ;;  %v5935_v2 = vrot.slane %v742_v12, %v5851_v26  ;;  %v5938_v62 = vrot.slane %v1763_v14, %v5845_v25 }
 0x1e9   : > { %9166 = vst [vmem:[#allocation49_spill] sm:$0xff] %v5825_v28  ;;  %9167 = vst [vmem:[#allocation50_spill] sm:$0xff] %v5827_v30  ;;  %v5843_v28 = vsub.s32 0, %v617_v32  ;;  %v5941_v60 = vrot.slane %v1763_v14, %v5851_v26  ;;  %v5964_v56 = vrot.slane %v806_v4, %v5851_v26  ;;  %v5967_v55 = vrot.slane %v1802_v6, %v5845_v25 }
 0x1ea   : > { %1360 = vrot.lane.b32.xlu0 %v5619_v33, %s5338_s22  ;;  %1298 = vrot.lane.b32.xlu1 %v5645_v42, %s5337_s21  ;;  %v5996_v52 = vrot.slane %v1841_v61, %v5851_v26 }
 0x1eb   : > { %9171 = vst [vmem:[#allocation54_spill] sm:$0xff] %v5843_v28  ;;  %9180 = vst [vmem:[#allocation63_spill] sm:$0xff] %v5941_v60  ;;  %v5979_v58 = vrot.slane %v1841_v61, %v5843_v28 }
 0x1ec   : > { %v5833_v34 = vpop.permute.xlu0 %1428  ;;  %v5835_v38 = vpop.permute.xlu1 %1358  ;;  %9186 = vst [vmem:[#allocation69_spill] sm:$0xff] %v5964_v56  ;;  %9187 = vst [vmem:[#allocation70_spill] sm:$0xff] %v5967_v55  ;;  %v5984_v56 = vrot.slane %v1841_v61, %v5841_v41  ;;  %v5987_v55 = vrot.slane %v870_v59, %v5843_v28 }
 0x1ed   : > { %9168 = vst [vmem:[#allocation51_spill] sm:$0xff] %v5833_v34  ;;  %9169 = vst [vmem:[#allocation52_spill] sm:$0xff] %v5835_v38  ;;  %v1685_v34 = vld [vmem:[#allocation3 + $0x48] sm:$0xf]  ;;  %v678_v38 = vld [vmem:[#allocation3 + $0x4] sm:$0xf] }
 0x1ee   : > { %1368 = vrot.lane.b32.xlu0 %v5631_v37, %s5338_s22  ;;  %1306 = vrot.lane.b32.xlu1 %v5655_v45, %s5337_s21  ;;  %v5867_v32 = vrot.slane %v1685_v34, %v5841_v41  ;;  %v5880_v18 = vrot.slane %v1685_v34, %v5845_v25  ;;  %v5883_v11 = vrot.slane %v1685_v34, %v5851_v26 }
 0x1ef   : > { %v5886_v13 = vrot.slane %v678_v38, %v5841_v41  ;;  %v5889_v8 = vrot.slane %v678_v38, %v5845_v25  ;;  %v5907_v10 = vrot.slane %v678_v38, %v5851_v26  ;;  %9191 = vst [vmem:[#allocation74_spill] sm:$0xff] %v5979_v58  ;;  %9193 = vst [vmem:[#allocation76_spill] sm:$0xff] %v5984_v56 }
 0x1f0   : > { %v5847_v30 = vpop.permute.xlu0 %1436  ;;  %v5849_v21 = vpop.permute.xlu1 %1366  ;;  %9194 = vst [vmem:[#allocation77_spill] sm:$0xff] %v5987_v55  ;;  %9197 = vst [vmem:[#allocation80_spill] sm:$0xff] %v5996_v52  ;;  %v5999_v58 = vrot.slane %v934_v57, %v5841_v41  ;;  %v6005_v56 = vrot.slane %v1880_v54, %v5843_v28  ;;  %v1062_v52 = vld [vmem:[#allocation3 + $0x1c] sm:$0xf] }
 0x1f1   : > { %9173 = vst [vmem:[#allocation56_spill] sm:$0xff] %v5847_v30  ;;  %9174 = vst [vmem:[#allocation57_spill] sm:$0xff] %v5849_v21  ;;  %v5864_v30 = vrot.slane %v1685_v34, %v5843_v28  ;;  %v5870_v21 = vrot.slane %v614_v0, %v5843_v28  ;;  %v5895_v0 = vrot.slane %v1724_v24, %v5841_v41  ;;  %v5904_v34 = vand.u32 127, %v603_v27 }
 0x1f2   : > { %1432 = vrot.lane.b32.xlu0 %v5619_v33, %s5339_s23  ;;  %1362 = vrot.lane.b32.xlu1 %v5645_v42, %s5338_s22  ;;  %v5922_v27 = vrot.slane %v1763_v14, %v5843_v28  ;;  %9198 = vst [vmem:[#allocation81_spill] sm:$0xff] %v5999_v58  ;;  %9200 = vst [vmem:[#allocation83_spill] sm:$0xff] %v6005_v56  ;;  %v6019_v58 = vrot.slane %v1880_v54, %v5845_v25 }
 0x1f3   : > { %vm605_vm2 = vcmp.lt.s32.totalorder %v5904_v34, 73  ;;  %vm668_vm3 = vcmp.lt.s32.totalorder %v5904_v34, 72  ;;  %v6025_v56 = vrot.slane %v1880_v54, %v5851_v26  ;;  %vm732_vm4 = vcmp.lt.s32.totalorder %v5904_v34, 71 }
 0x1f4   : > { %v5872_v20 = vpop.permute.xlu0 %1492  ;;  %v5874_v15 = vpop.permute.xlu1 %1430  ;;  %9204 = vst [vmem:[#allocation87_spill] sm:$0xff] %v6019_v58  ;;  %vm796_vm5 = vcmp.lt.s32.totalorder %v5904_v34, 65  ;;  %vm860_vm6 = vcmp.lt.s32.totalorder %v5904_v34, 64  ;;  %vm924_vm7 = vcmp.lt.s32.totalorder %v5904_v34, 63  ;;  %vm988_vm8 = vcmp.lt.s32.totalorder %v5904_v34, 57 }
 0x1f5   : > { %9176 = vst [vmem:[#allocation59_spill] sm:$0xff] %v5872_v20  ;;  %9177 = vst [vmem:[#allocation60_spill] sm:$0xff] %v5874_v15  ;;  %v5892_v20 = vrot.slane %v1724_v24, %v5843_v28  ;;  %v5898_v15 = vrot.slane %v678_v38, %v5843_v28  ;;  %v5925_v38 = vrot.slane %v1763_v14, %v5841_v41  ;;  %vm1052_vm9 = vcmp.lt.s32.totalorder %v5904_v34, 56 }
 0x1f6   : > { %1440 = vrot.lane.b32.xlu0 %v5631_v37, %s5339_s23  ;;  %1370 = vrot.lane.b32.xlu1 %v5655_v45, %s5338_s22  ;;  %v5932_v24 = vrot.slane %v742_v12, %v5843_v28  ;;  %v5953_v12 = vrot.slane %v1802_v6, %v5841_v41  ;;  %v5961_v14 = vrot.slane %v806_v4, %v5843_v28  ;;  %vm1116_vm10 = vcmp.lt.s32.totalorder %v5904_v34, 55 }
 0x1f7   : > { %9205 = vst [vmem:[#allocation88_spill] sm:$0xff] %v6025_v56  ;;  %v1126_v56 = vld [vmem:[#allocation3 + $0x20] sm:$0xf]  ;;  %vm1180_vm11 = vcmp.lt.s32.totalorder %v5904_v34, 9  ;;  %vm1244_vm12 = vcmp.lt.s32.totalorder %v5904_v34, 8  ;;  %vm1308_vm13 = vcmp.lt.s32.totalorder %v5904_v34, 7 }
 0x1f8   : > { %v5927_v1 = vpop.permute.xlu0 %1500  ;;  %v5929_v63 = vpop.permute.xlu1 %1438  ;;  %9184 = vst [vmem:[#allocation67_spill] sm:$0xff] %v5953_v12  ;;  %9185 = vst [vmem:[#allocation68_spill] sm:$0xff] %v5961_v14  ;;  %v5970_v12 = vrot.slane %v1802_v6, %v5851_v26  ;;  %vm1372_vm14 = vcmp.lt.s32.totalorder %v5904_v34, 1  ;;  %vm1444_vm15 = vcmp.lt.s32.totalorder %v5904_v34, 127  ;;  %vm8960_vm0 = vcmp.lt.s32.totalorder %v5904_v34, 121 }
 0x1f9   : > { %9178 = vst [vmem:[#allocation61_spill] sm:$0xff] %v5927_v1  ;;  %9179 = vst [vmem:[#allocation62_spill] sm:$0xff] %v5929_v63  ;;  %v5947_v1 = vrot.slane %v806_v4, %v5845_v25  ;;  %v5950_v63 = vrot.slane %v1802_v6, %v5843_v28  ;;  %v5990_v6 = vrot.slane %v870_v59, %v5851_v26 }
 0x1fa   : > { %1496 = vrot.lane.b32.xlu0 %v5619_v33, %s8965_s24  ;;  %1434 = vrot.lane.b32.xlu1 %v5645_v42, %s5339_s23  ;;  %9188 = vst [vmem:[#allocation71_spill] sm:$0xff] %v5970_v12  ;;  %v998_v12 = vld [vmem:[#allocation3 + $0x18] sm:$0xf] }
 0x1fb   : > { %9182 = vst [vmem:[#allocation65_spill] sm:$0xff] %v5947_v1  ;;  %9183 = vst [vmem:[#allocation66_spill] sm:$0xff] %v5950_v63  ;;  %v5973_v63 = vrot.slane %v870_v59, %v5841_v41  ;;  %v5976_v1 = vrot.slane %v870_v59, %v5845_v25  ;;  %v6010_v59 = vrot.slane %v1880_v54, %v5841_v41 }
 0x1fc   : > { %v592_v14 = vpop.permute.xlu0 %591  ;;  %v5981_v4 = vpop.permute.xlu1 %1494  ;;  %9195 = vst [vmem:[#allocation78_spill] sm:$0xff] %v5990_v6  ;;  %v6042_v55 = vrot.slane %v998_v12, %v5843_v28  ;;  %v6045_v54 = vrot.slane %v998_v12, %v5851_v26 }
 0x1fd   : > { %9189 = vst [vmem:[#allocation72_spill] sm:$0xff] %v5973_v63  ;;  %9190 = vst [vmem:[#allocation73_spill] sm:$0xff] %v5976_v1  ;;  %v5993_v63 = vrot.slane %v1841_v61, %v5845_v25  ;;  %v1919_v1 = vld [vmem:[#allocation3 + $0x60] sm:$0xf]  ;;  %v6016_v61 = vrot.slane %v934_v57, %v5851_v26 }
 0x1fe   : > { %9192 = vst [vmem:[#allocation75_spill] sm:$0xff] %v5981_v4  ;;  %v6002_v4 = vrot.slane %v934_v57, %v5845_v25  ;;  %1504 = vrot.lane.b32.xlu0 %v5631_v37, %s8965_s24  ;;  %9201 = vst [vmem:[#allocation84_spill] sm:$0xff] %v6010_v59  ;;  %1442 = vrot.lane.b32.xlu1 %v5655_v45, %s5339_s23  ;;  %v6028_v59 = vrot.slane %v998_v12, %v5841_v41 }
 0x1ff   : > { %9196 = vst [vmem:[#allocation79_spill] sm:$0xff] %v5993_v63  ;;  %v6013_v63 = vrot.slane %v934_v57, %v5843_v28  ;;  %9203 = vst [vmem:[#allocation86_spill] sm:$0xff] %v6016_v61  ;;  %v6034_v57 = vrot.slane %v1919_v1, %v5843_v28  ;;  %v6039_v6 = vrot.slane %v1919_v1, %v5841_v41 }
 0x200   : > { %9199 = vst [vmem:[#allocation82_spill] sm:$0xff] %v6002_v4  ;;  %v1958_v4 = vld [vmem:[#allocation3 + $0x64] sm:$0xf]  ;;  %9206 = vst [vmem:[#allocation89_spill] sm:$0xff] %v6028_v59  ;;  %v600_v58 = vpop.permute.xlu0 %599  ;;  %v6036_v61 = vpop.permute.xlu1 %1502  ;;  %v6048_v59 = vrot.slane %v1919_v1, %v5845_v25  ;;  %v6051_v60 = vrot.slane %v1919_v1, %v5851_v26  ;;  %v6071_v1 = vrot.slane %v1062_v52, %v5851_v26 }
 0x201   : > { %9202 = vst [vmem:[#allocation85_spill] sm:$0xff] %v6013_v63  ;;  %v6031_v63 = vrot.slane %v998_v12, %v5845_v25  ;;  %9208 = vst [vmem:[#allocation91_spill] sm:$0xff] %v6034_v57  ;;  %v6054_v57 = vrot.slane %v1062_v52, %v5841_v41  ;;  %v6065_v12 = vrot.slane %v1958_v4, %v5841_v41 }
 0x202   : > { %9209 = vst [vmem:[#allocation92_spill] sm:$0xff] %v6036_v61  ;;  %9210 = vst [vmem:[#allocation93_spill] sm:$0xff] %v6039_v6  ;;  %v6057_v61 = vrot.slane %v1062_v52, %v5845_v25  ;;  %v6060_v6 = vrot.slane %v1958_v4, %v5843_v28  ;;  %1556 = vrot.lane.b32.xlu0 %v5487_v22, %s8909_s25  ;;  %1498 = vrot.lane.b32.xlu1 %v5645_v42, %s8965_s24 }
 0x203   : > { %9207 = vst [vmem:[#allocation90_spill] sm:$0xff] %v6031_v63  ;;  %9211 = vst [vmem:[#allocation94_spill] sm:$0xff] %v6042_v55  ;;  %v1997_v63 = vld [vmem:[#allocation3 + $0x68] sm:$0xf] }
 0x204   : > { %9212 = vst [vmem:[#allocation95_spill] sm:$0xff] %v6045_v54  ;;  %9213 = vst [vmem:[#allocation96_spill] sm:$0xff] %v6048_v59  ;;  %v6068_v59 = vrot.slane %v1062_v52, %v5843_v28  ;;  %v1190_v52 = vld [vmem:[#allocation3 + $0x24] sm:$0xf]  ;;  %v6110_v54 = vrot.slane %v1997_v63, %v5845_v25  ;;  %v6113_v55 = vrot.slane %v1997_v63, %v5851_v26 }
 0x205   : > { %9214 = vst [vmem:[#allocation97_spill] sm:$0xff] %v6051_v60  ;;  %9215 = vst [vmem:[#allocation98_spill] sm:$0xff] %v6054_v57  ;;  %v6074_v57 = vrot.slane %v1958_v4, %v5845_v25  ;;  %v594_v60 = vpop.permute.xlu1 %593 }
 0x206   : > { %9216 = vst [vmem:[#allocation99_spill] sm:$0xff] %v6057_v61  ;;  %9217 = vst [vmem:[#allocation100_spill] sm:$0xff] %v6060_v6  ;;  %v6079_v6 = vrot.slane %v1958_v4, %v5851_v26  ;;  %v6082_v61 = vrot.slane %v1126_v56, %v5841_v41  ;;  %v6095_v4 = vrot.slane %v1997_v63, %v5841_v41  ;;  %1560 = vrot.lane.b32.xlu0 %v5619_v33, %s8909_s25 }
 0x207   : > { %9218 = vst [vmem:[#allocation101_spill] sm:$0xff] %v6065_v12  ;;  %9219 = vst [vmem:[#allocation102_spill] sm:$0xff] %v6068_v59  ;;  %v6085_v12 = vrot.slane %v1126_v56, %v5845_v25  ;;  %v6088_v59 = vrot.slane %v1997_v63, %v5843_v28  ;;  %1506 = vrot.lane.b32.xlu1 %v5655_v45, %s8965_s24  ;;  %s9474_s24 = smov 121  }
 0x208   : > { %9220 = vst [vmem:[#allocation103_spill] sm:$0xff] %v6071_v1  ;;  %9221 = vst [vmem:[#allocation104_spill] sm:$0xff] %v6074_v57  ;;  %v610_v57 = vsel %vm605_vm2, %v5625_v36, %v592_v14  ;;  %v657_v1 = vpop.permute.xlu0 %656 }
 0x209   : > { %9222 = vst [vmem:[#allocation105_spill] sm:$0xff] %v6079_v6  ;;  %9223 = vst [vmem:[#allocation106_spill] sm:$0xff] %v6082_v61  ;;  %v6098_v61 = vrot.slane %v1126_v56, %v5843_v28  ;;  %v611_v6 = vsel %vm605_vm2, %v5637_v40, %v594_v60  ;;  %v6130_v63 = vmul.f32 %v5864_v30, %v610_v57 }
 0x20a   : > { %9224 = vst [vmem:[#allocation107_spill] sm:$0xff] %v6085_v12  ;;  %9225 = vst [vmem:[#allocation108_spill] sm:$0xff] %v6088_v59  ;;  %v6101_v12 = vrot.slane %v1126_v56, %v5851_v26  ;;  %v608_v59 = vsel %vm605_vm2, %v592_v14, %v5623_v35  ;;  %v612_v56 = vsel %vm605_vm2, %v600_v58, %v5625_v36  ;;  %1564 = vrot.lane.b32.xlu0 %v5489_v23, %s8909_s25 }
 0x20b   : > { %9226 = vst [vmem:[#allocation109_spill] sm:$0xff] %v6098_v61  ;;  %9228 = vst [vmem:[#allocation111_spill] sm:$0xff] %v6110_v54  ;;  %v606_v61 = vsel %vm605_vm2, %v5623_v35, %v600_v58  ;;  %v6124_v14 = vrot.slane %v1190_v52, %v5841_v41  ;;  %v6134_v35 = vmul.f32 %v5864_v30, %v611_v6  ;;  %1558 = vrot.lane.b32.xlu1 %v5500_v29, %s8909_s25 }
 0x20c   : > { %9227 = vst [vmem:[#allocation110_spill] sm:$0xff] %v6101_v12  ;;  %9229 = vst [vmem:[#allocation112_spill] sm:$0xff] %v6113_v55  ;;  %v6127_v12 = vrot.slane %v1190_v52, %v5845_v25  ;;  %v641_v55 = vmul.f32 %v5858_v19, %v611_v6  ;;  %v6139_v36 = vrot.slane %v1190_v52, %v5843_v28 }
 0x20d   : > { %9230 = vst [vmem:[#allocation113_spill] sm:$0xff] %v6124_v14  ;;  %9232 = vst [vmem:[#allocation115_spill] sm:$0xff] %v6130_v63  ;;  %v637_v58 = vmul.f32 %v5858_v19, %v610_v57  ;;  %v638_v41 = vmul.f32 %v5861_v17, %v608_v59  ;;  %v609_v25 = vsel %vm605_vm2, %v594_v60, %v5649_v44  ;;  %v602_v14 = vpop.permute.xlu1 %601 }
 0x20e   : > { %9231 = vst [vmem:[#allocation114_spill] sm:$0xff] %v6127_v12  ;;  %9233 = vst [vmem:[#allocation116_spill] sm:$0xff] %v6134_v35  ;;  %v665_v12 = vpop.permute.xlu0 %664  ;;  %v6147_v54 = vrot.slane %v1190_v52, %v5851_v26  ;;  %v6150_v30 = vmul.f32 %v5867_v32, %v608_v59  ;;  %v636_v6 = vmul.f32 %v5870_v21, %v612_v56  ;;  %1568 = vrot.lane.b32.xlu0 %v5631_v37, %s8909_s25 }
 0x20f   : > { %9234 = vst [vmem:[#allocation117_spill] sm:$0xff] %v6139_v36  ;;  %v639_v28 = vmul.f32 %v5877_v16, %v606_v61  ;;  %v6157_v57 = vmul.f32 %v5880_v18, %v606_v61  ;;  %v6160_v60 = vmul.f32 %v5883_v11, %v612_v56  ;;  %v671_v52 = vsel %vm668_vm3, %v657_v1, %v5647_v43 }
 0x210   : > { %9235 = vst [vmem:[#allocation118_spill] sm:$0xff] %v6147_v54  ;;  %9236 = vst [vmem:[#allocation119_spill] sm:$0xff] %v6150_v30  ;;  %v673_v59 = vsel %vm668_vm3, %v5635_v39, %v657_v1  ;;  %v642_v26 = vmul.f32 %v5861_v17, %v609_v25  ;;  %v607_v61 = vsel %vm605_vm2, %v5649_v44, %v602_v14  ;;  %1562 = vrot.lane.b32.xlu1 %v5645_v42, %s8909_s25  ;;  %v9330_v30 = vld [vmem:[#allocation105_spill] sm:$0xff] }
 0x211   : > { %9237 = vst [vmem:[#allocation120_spill] sm:$0xff] %v6157_v57  ;;  %v613_v56 = vsel %vm605_vm2, %v602_v14, %v5637_v40  ;;  %v4783_v19 = vpack.c.bf16 %v641_v55, %v637_v58  ;;  %v675_v1 = vsel %vm668_vm3, %v665_v12, %v5635_v39  ;;  %v643_v17 = vmul.f32 %v5877_v16, %v607_v61  ;;  %v659_v54 = vpop.permute.xlu1 %658  ;;  %v2035_v58 = vld [vmem:[%s8788_s4] sm:$0xff] }
 0x212   : > { %v640_v63 = vmul.f32 %v5870_v21, %v613_v56  ;;  %v6185_v35 = vmul.f32 %v5880_v18, %v607_v61  ;;  %v721_v44 = vpop.permute.xlu0 %720  ;;  %v701_v36 = vmul.f32 %v5886_v13, %v673_v59  ;;  %v6189_v40 = vmul.f32 %v5889_v8, %v671_v52  ;;  %1620 = vrot.lane.b32.xlu0 %v5487_v22, %s8963_s26 }
 0x213   : > { %v6192_v55 = vmul.f32 %v5892_v20, %v673_v59  ;;  %4784 = vmatprep.subr.bf16.mxu0 %v4783_v19  ;;  %v674_v39 = vsel %vm668_vm3, %v5659_v47, %v659_v54  ;;  %v6198_v16 = vmul.f32 %v5895_v0, %v671_v52  ;;  %v669_v18 = vsel %vm668_vm3, %v5647_v43, %v665_v12 }
 0x214   : > { %9238 = vst [vmem:[#allocation121_spill] sm:$0xff] %v6185_v35  ;;  %v4785_v21 = vpack.c.bf16 %v640_v63, %v636_v6  ;;  %v6211_v19 = vmul.f32 %v5867_v32, %v609_v25  ;;  %v4893_v52 = vpack.c.bf16 %v642_v26, %v638_v41  ;;  %v700_v59 = vmul.f32 %v5898_v15, %v675_v1 }
 0x215   : > { %9239 = vst [vmem:[#allocation122_spill] sm:$0xff] %v6192_v55  ;;  %9240 = vst [vmem:[#allocation123_spill] sm:$0xff] %v6198_v16  ;;  %v737_v43 = vsel %vm732_vm4, %v5657_v46, %v721_v44  ;;  %v672_v12 = vsel %vm668_vm3, %v659_v54, %v5667_v49  ;;  %v705_v63 = vmul.f32 %v5886_v13, %v674_v39  ;;  %v667_v41 = vpop.permute.xlu1 %666  ;;  %1566 = vrot.lane.b32.xlu1 %v5507_v31, %s8909_s25  ;;  %v9290_v55 = vld [vmem:[#allocation23_spill] sm:$0xff]  ;;  %v9328_v16 = vld [vmem:[#allocation104_spill] sm:$0xff] }
 0x216   : > { %9241 = vst [vmem:[#allocation124_spill] sm:$0xff] %v6211_v19  ;;  %v6224_v6 = vmul.f32 %v5892_v20, %v674_v39  ;;  %4786 = vmatpush1.bf16.msra.mxu0 %v4785_v21  ;;  %v4891_v25 = vpack.c.bf16 %v643_v17, %v639_v28  ;;  %v729_v26 = vpop.permute.xlu0 %728  ;;  %v703_v32 = vmul.f32 %v5907_v10, %v669_v18  ;;  %v9263_v28 = vld [vmem:[#allocation70_spill] sm:$0xff] }
 0x217   : > { %v6228_v61 = vmul.f32 %v5910_v7, %v669_v18  ;;  %v670_v14 = vsel %vm668_vm3, %v5667_v49, %v667_v41  ;;  %v2261_v57 = vcombine.high %v2035_v58, %v2035_v58  ;;  %v6234_v54 = vmul.f32 %v5913_v9, %v675_v1  ;;  %1624 = vrot.lane.b32.xlu0 %v5619_v33, %s8963_s26 }
 0x218   : > { %9242 = vst [vmem:[#allocation125_spill] sm:$0xff] %v6224_v6  ;;  %v6237_v13 = vmul.f32 %v5883_v11, %v613_v56  ;;  %v735_v20 = vsel %vm732_vm4, %v721_v44, %v5665_v48  ;;  %4892 = vmatprep.subr.bf16.mxu1 %v4891_v25  ;;  %v6245_v17 = vmul.f32 %v5916_v3, %v737_v43 }
 0x219   : > { %9243 = vst [vmem:[#allocation126_spill] sm:$0xff] %v6228_v61  ;;  %v706_v49 = vmul.f32 %v5889_v8, %v672_v12  ;;  %4894 = vmatpush1.bf16.msra.mxu1 %v4893_v52  ;;  %v676_v1 = vsel %vm668_vm3, %v667_v41, %v5659_v47  ;;  %v6252_v11 = vmul.f32 %v5910_v7, %v670_v14  ;;  %v723_v18 = vpop.permute.xlu1 %722 }
 0x21a   : > { %v704_v56 = vmul.f32 %v5898_v15, %v676_v1  ;;  %v707_v44 = vmul.f32 %v5907_v10, %v670_v14  ;;  %v4787_v8 = vpack.c.bf16 %v705_v63, %v701_v36  ;;  %v785_v39 = vpop.permute.xlu0 %784  ;;  %v6262_v47 = vmul.f32 %v5919_v5, %v735_v20  ;;  %2331 = vmatprep.mubr.f32.mxu0 %v2261_v57 }
 0x21b   : > { %9244 = vst [vmem:[#allocation127_spill] sm:$0xff] %v6252_v11  ;;  %v6265_v7 = vmul.f32 %v5922_v27, %v737_v43  ;;  %v6268_v10 = vmul.f32 %v5925_v38, %v735_v20  ;;  %v6273_v21 = vmul.f32 %v5895_v0, %v672_v12  ;;  %v733_v36 = vsel %vm732_vm4, %v5665_v48, %v729_v26 }
 0x21c   : > { %v739_v14 = vsel %vm732_vm4, %v729_v26, %v5657_v46  ;;  %v4789_v58 = vpack.c.bf16 %v704_v56, %v700_v59  ;;  %4788 = vmatprep.subr.bf16.mxu0 %v4787_v8  ;;  %v4897_v52 = vpack.c.bf16 %v706_v49, %v6189_v40  ;;  %v801_v43 = vsel %vm796_vm5, %v5673_v50, %v785_v39 }
 0x21d   : > { %9245 = vst [vmem:[#allocation128_spill] sm:$0xff] %v6265_v7  ;;  %9246 = vst [vmem:[#allocation129_spill] sm:$0xff] %v6273_v21  ;;  %v736_v0 = vsel %vm732_vm4, %v723_v18, %v5683_v53  ;;  %v738_v48 = vsel %vm732_vm4, %v5675_v51, %v723_v18  ;;  %2473 = vmatprep.mubr.f32.mxu1 %v2261_v57  ;;  %1570 = vrot.lane.b32.xlu1 %v5655_v45, %s8909_s25  ;;  %v731_v63 = vpop.permute.xlu1 %730  ;;  %v9279_v7 = vld [vmem:[#allocation79_spill] sm:$0xff]  ;;  %s9476_s25 = smov 119  }
 0x21e   : > { %v769_v12 = vmul.f32 %v5916_v3, %v738_v48  ;;  %v6293_v46 = vmul.f32 %v5922_v27, %v738_v48  ;;  %v4895_v40 = vpack.c.bf16 %v707_v44, %v703_v32  ;;  %v793_v59 = vpop.permute.xlu0 %792  ;;  %v764_v25 = vmul.f32 %v5932_v24, %v739_v14  ;;  %4790 = vmatpush1.bf16.msra.mxu0 %v4789_v58  ;;  %v9249_v27 = vld [vmem:[#allocation63_spill] sm:$0xff]  ;;  %v9250_v32 = vld [vmem:[#allocation14_spill] sm:$0xff]  ;;  %v9251_v44 = vld [vmem:[#allocation64_spill] sm:$0xff] }
 0x21f   : > { %v767_v26 = vmul.f32 %v5935_v2, %v733_v36  ;;  %v6302_v57 = vmul.f32 %v5938_v62, %v733_v36  ;;  %v734_v3 = vsel %vm732_vm4, %v5683_v53, %v731_v63  ;;  %v6308_v41 = vmul.f32 %v9249_v27, %v739_v14  ;;  %1628 = vrot.lane.b32.xlu0 %v5489_v23, %s8963_s26  ;;  %v9258_v48 = vld [vmem:[#allocation18_spill] sm:$0xff] }
 0x220   : > { %9247 = vst [vmem:[#allocation130_spill] sm:$0xff] %v6293_v46  ;;  %v6311_v20 = vmul.f32 %v5913_v9, %v676_v1  ;;  %v799_v49 = vsel %vm796_vm5, %v785_v39, %v9250_v32  ;;  %4896 = vmatprep.subr.bf16.mxu1 %v4895_v40  ;;  %v6319_v8 = vmul.f32 %v9251_v44, %v801_v43 }
 0x221   : > { %9248 = vst [vmem:[#allocation131_spill] sm:$0xff] %v6302_v57  ;;  %v770_v18 = vmul.f32 %v5919_v5, %v736_v0  ;;  %4898 = vmatpush1.bf16.msra.mxu1 %v4897_v52  ;;  %v740_v53 = vsel %vm732_vm4, %v731_v63, %v5675_v51  ;;  %v6326_v9 = vmul.f32 %v5938_v62, %v734_v3  ;;  %v787_v14 = vpop.permute.xlu1 %786  ;;  %v9253_v51 = vld [vmem:[#allocation65_spill] sm:$0xff]  ;;  %v9254_v62 = vld [vmem:[#allocation66_spill] sm:$0xff] }
 0x222   : > { %v768_v1 = vmul.f32 %v5932_v24, %v740_v53  ;;  %v771_v39 = vmul.f32 %v5935_v2, %v734_v3  ;;  %1622 = vrot.lane.b32.xlu1 %v5500_v29, %s8963_s26  ;;  %v4791_v5 = vpack.c.bf16 %v769_v12, %v6245_v17  ;;  %v849_v36 = vpop.permute.xlu0 %848  ;;  %v6337_v58 = vmul.f32 %v9253_v51, %v799_v49  ;;  %v9256_v24 = vld [vmem:[#allocation67_spill] sm:$0xff]  ;;  %v9266_v57 = vld [vmem:[#allocation17_spill] sm:$0xff] }
 0x223   : > { %9252 = vst [vmem:[#allocation63_spill] sm:$0xff] %v6326_v9  ;;  %v6340_v52 = vmul.f32 %v9254_v62, %v801_v43  ;;  %v6343_v2 = vmul.f32 %v9256_v24, %v799_v49  ;;  %v6348_v40 = vmul.f32 %v5925_v38, %v736_v0  ;;  %v797_v17 = vsel %vm796_vm5, %v9250_v32, %v793_v59  ;;  %v9257_v3 = vld [vmem:[#allocation15_spill] sm:$0xff]  ;;  %v9259_v0 = vld [vmem:[#allocation16_spill] sm:$0xff]  ;;  %v9314_v29 = vld [vmem:[#allocation97_spill] sm:$0xff] }
 0x224   : > { %v803_v12 = vsel %vm796_vm5, %v793_v59, %v5673_v50  ;;  %v4793_v63 = vpack.c.bf16 %v768_v1, %v764_v25  ;;  %4792 = vmatprep.subr.bf16.mxu0 %v4791_v5  ;;  %v4901_v43 = vpack.c.bf16 %v770_v18, %v6262_v47  ;;  %v865_v49 = vsel %vm860_vm6, %v9257_v3, %v849_v36  ;;  %v9261_v18 = vld [vmem:[#allocation68_spill] sm:$0xff]  ;;  %v9262_v5 = vld [vmem:[#allocation69_spill] sm:$0xff] }
 0x225   : > { %9255 = vst [vmem:[#allocation14_spill] sm:$0xff] %v6340_v52  ;;  %v800_v38 = vsel %vm796_vm5, %v787_v14, %v9258_v48  ;;  %v802_v32 = vsel %vm796_vm5, %v9259_v0, %v787_v14  ;;  %1632 = vrot.lane.b32.xlu0 %v5631_v37, %s8963_s26  ;;  %v4899_v47 = vpack.c.bf16 %v771_v39, %v767_v26  ;;  %v795_v25 = vpop.permute.xlu1 %794  ;;  %v9267_v9 = vld [vmem:[#allocation72_spill] sm:$0xff]  ;;  %v9308_v37 = vld [vmem:[#allocation27_spill] sm:$0xff] }
 0x226   : > { %v833_v15 = vmul.f32 %v9251_v44, %v802_v32  ;;  %v6368_v50 = vmul.f32 %v9254_v62, %v802_v32  ;;  %1626 = vrot.lane.b32.xlu1 %v5645_v42, %s8963_s26  ;;  %v857_v59 = vpop.permute.xlu0 %856  ;;  %v828_v1 = vmul.f32 %v9261_v18, %v803_v12  ;;  %v831_v56 = vmul.f32 %v9262_v5, %v797_v17  ;;  %v2253_v62 = vld [vmem:[%s8789_s5] sm:$0xf]  ;;  %v9265_v32 = vld [vmem:[#allocation71_spill] sm:$0xff] }
 0x227   : > { %v6377_v14 = vmul.f32 %v9263_v28, %v797_v17  ;;  %4794 = vmatpush1.bf16.msra.mxu0 %v4793_v63  ;;  %v798_v44 = vsel %vm796_vm5, %v9258_v48, %v795_v25  ;;  %v6386_v26 = vmul.f32 %v9265_v32, %v803_v12  ;;  %v6389_v39 = vmul.f32 %v9249_v27, %v740_v53  ;;  %v9269_v63 = vld [vmem:[#allocation73_spill] sm:$0xff]  ;;  %v9312_v42 = vld [vmem:[#allocation96_spill] sm:$0xff] }
 0x228   : > { %9260 = vst [vmem:[#allocation64_spill] sm:$0xff] %v6368_v50  ;;  %v863_v17 = vsel %vm860_vm6, %v849_v36, %v9266_v57  ;;  %4900 = vmatprep.subr.bf16.mxu1 %v4899_v47  ;;  %v6397_v48 = vmul.f32 %v9267_v9, %v865_v49  ;;  %v834_v61 = vmul.f32 %v9253_v51, %v800_v38 }
 0x229   : > { %9264 = vst [vmem:[#allocation65_spill] sm:$0xff] %v6377_v14  ;;  %4902 = vmatpush1.bf16.msra.mxu1 %v4901_v43  ;;  %v804_v12 = vsel %vm796_vm5, %v795_v25, %v9259_v0  ;;  %v6404_v27 = vmul.f32 %v9263_v28, %v798_v44  ;;  %v835_v36 = vmul.f32 %v9262_v5, %v798_v44  ;;  %v851_v43 = vpop.permute.xlu1 %850  ;;  %v9270_v0 = vld [vmem:[#allocation74_spill] sm:$0xff]  ;;  %v9272_v25 = vld [vmem:[#allocation76_spill] sm:$0xff]  ;;  %v9273_v5 = vld [vmem:[#allocation19_spill] sm:$0xff] }
 0x22a   : > { %v832_v53 = vmul.f32 %v9261_v18, %v804_v12  ;;  %2256 = vperm.xlu0 %5271, %v2253_v62   ;;  %1630 = vrot.lane.b32.xlu1 %v5507_v31, %s8963_s26  ;;  %v4795_v47 = vpack.c.bf16 %v833_v15, %v6319_v8  ;;  %v913_v51 = vpop.permute.xlu0 %912  ;;  %v6413_v52 = vmul.f32 %v9269_v63, %v863_v17  ;;  %v2578_v15 = vld [vmem:[%s8791_s7 + $0x8] sm:$0xff]  ;;  %v9297_v31 = vld [vmem:[#allocation88_spill] sm:$0xff] }
 0x22b   : > { %9268 = vst [vmem:[#allocation66_spill] sm:$0xff] %v6404_v27  ;;  %v6416_v28 = vmul.f32 %v9270_v0, %v865_v49  ;;  %v6419_v18 = vmul.f32 %v9272_v25, %v863_v17  ;;  %v6427_v8 = vmul.f32 %v9256_v24, %v800_v38  ;;  %v861_v44 = vsel %vm860_vm6, %v9266_v57, %v857_v59  ;;  %v9274_v27 = vld [vmem:[#allocation22_spill] sm:$0xff]  ;;  %v9275_v38 = vld [vmem:[#allocation20_spill] sm:$0xff] }
 0x22c   : > { %v867_v49 = vsel %vm860_vm6, %v857_v59, %v9257_v3  ;;  %v4797_v62 = vpack.c.bf16 %v832_v53, %v828_v1  ;;  %4796 = vmatprep.subr.bf16.mxu0 %v4795_v47  ;;  %v4905_v17 = vpack.c.bf16 %v834_v61, %v6337_v58  ;;  %v929_v14 = vsel %vm924_vm7, %v9273_v5, %v913_v51  ;;  %v9277_v1 = vld [vmem:[#allocation77_spill] sm:$0xff]  ;;  %v9278_v47 = vld [vmem:[#allocation78_spill] sm:$0xff] }
 0x22d   : > { %9271 = vst [vmem:[#allocation67_spill] sm:$0xff] %v6416_v28  ;;  %v864_v24 = vsel %vm860_vm6, %v851_v43, %v9274_v27  ;;  %v866_v57 = vsel %vm860_vm6, %v9275_v38, %v851_v43  ;;  %v4903_v61 = vpack.c.bf16 %v835_v36, %v831_v56  ;;  %v859_v59 = vpop.permute.xlu1 %858  ;;  %v892_v53 = vmul.f32 %v9277_v1, %v867_v49  ;;  %v9282_v56 = vld [vmem:[#allocation21_spill] sm:$0xff] }
 0x22e   : > { %v897_v50 = vmul.f32 %v9267_v9, %v866_v57  ;;  %v6447_v3 = vmul.f32 %v9270_v0, %v866_v57  ;;  %2586 = vperm.xlu0 %5271, %v2578_v15   ;;  %1634 = vrot.lane.b32.xlu1 %v5655_v45, %s8963_s26  ;;  %v921_v58 = vpop.permute.xlu0 %920  ;;  %v895_v11 = vmul.f32 %v9278_v47, %v861_v44  ;;  %v9281_v0 = vld [vmem:[#allocation80_spill] sm:$0xff]  ;;  %v9298_v45 = vld [vmem:[#allocation25_spill] sm:$0xff]  ;;  %s9475_s26 = smov 120  }
 0x22f   : > { %v6455_v43 = vmul.f32 %v9279_v7, %v861_v44  ;;  %4798 = vmatpush1.bf16.msra.mxu0 %v4797_v62  ;;  %v862_v9 = vsel %vm860_vm6, %v9274_v27, %v859_v59  ;;  %v6461_v15 = vmul.f32 %v9281_v0, %v867_v49  ;;  %v927_v36 = vsel %vm924_vm7, %v913_v51, %v9282_v56  ;;  %v9283_v62 = vld [vmem:[#allocation81_spill] sm:$0xff] }
 0x230   : > { %9276 = vst [vmem:[#allocation15_spill] sm:$0xff] %v6447_v3  ;;  %v898_v57 = vmul.f32 %v9269_v63, %v864_v24  ;;  %4904 = vmatprep.subr.bf16.mxu1 %v4903_v61  ;;  %v6470_v44 = vmul.f32 %v9265_v32, %v804_v12  ;;  %v957_v35 = vmul.f32 %v9283_v62, %v929_v14  ;;  %v9289_v3 = vld [vmem:[#allocation85_spill] sm:$0xff] }
 0x231   : > { %9280 = vst [vmem:[#allocation18_spill] sm:$0xff] %v6455_v43  ;;  %4906 = vmatpush1.bf16.msra.mxu1 %v4905_v17  ;;  %v868_v27 = vsel %vm860_vm6, %v859_v59, %v9275_v38  ;;  %v6477_v49 = vmul.f32 %v9279_v7, %v862_v9  ;;  %v931_v63 = vsel %vm924_vm7, %v921_v58, %v9273_v5  ;;  %v915_v46 = vpop.permute.xlu1 %914  ;;  %v9285_v17 = vld [vmem:[#allocation82_spill] sm:$0xff]  ;;  %v9286_v38 = vld [vmem:[#allocation83_spill] sm:$0xff]  ;;  %v9292_v59 = vld [vmem:[#allocation24_spill] sm:$0xff] }
 0x232   : > { %v896_v51 = vmul.f32 %v9277_v1, %v868_v27  ;;  %v899_v61 = vmul.f32 %v9278_v47, %v862_v9  ;;  %v4799_v32 = vpack.c.bf16 %v897_v50, %v6397_v48  ;;  %v977_v12 = vpop.permute.xlu0 %976  ;;  %v6487_v28 = vmul.f32 %v9285_v17, %v927_v36  ;;  %v9288_v1 = vld [vmem:[#allocation84_spill] sm:$0xff]  ;;  %v9295_v43 = vld [vmem:[#allocation87_spill] sm:$0xff] }
 0x233   : > { %9284 = vst [vmem:[#allocation16_spill] sm:$0xff] %v6477_v49  ;;  %v6490_v7 = vmul.f32 %v9286_v38, %v929_v14  ;;  %v925_v5 = vsel %vm924_vm7, %v9282_v56, %v921_v58  ;;  %v6498_v47 = vmul.f32 %v9288_v1, %v927_v36  ;;  %v6501_v50 = vmul.f32 %v9272_v25, %v864_v24  ;;  %v9291_v58 = vld [vmem:[#allocation26_spill] sm:$0xff] }
 0x234   : > { %v4909_v48 = vpack.c.bf16 %v898_v57, %v6413_v52  ;;  %v4801_v9 = vpack.c.bf16 %v896_v51, %v892_v53  ;;  %4800 = vmatprep.subr.bf16.mxu0 %v4799_v32  ;;  %v956_v14 = vmul.f32 %v9289_v3, %v931_v63  ;;  %v993_v6 = vsel %vm988_vm8, %v9290_v55, %v977_v12  ;;  %v9293_v25 = vld [vmem:[#allocation86_spill] sm:$0xff] }
 0x235   : > { %9287 = vst [vmem:[#allocation68_spill] sm:$0xff] %v6490_v7  ;;  %v928_v56 = vsel %vm924_vm7, %v915_v46, %v9291_v58  ;;  %v930_v36 = vsel %vm924_vm7, %v9292_v59, %v915_v46  ;;  %v959_v24 = vmul.f32 %v9293_v25, %v925_v5  ;;  %v4907_v57 = vpack.c.bf16 %v899_v61, %v895_v11  ;;  %v923_v32 = vpop.permute.xlu1 %922  ;;  %v9299_v11 = vld [vmem:[#allocation89_spill] sm:$0xff] }
 0x236   : > { %v961_v52 = vmul.f32 %v9283_v62, %v930_v36  ;;  %v6517_v53 = vmul.f32 %v9286_v38, %v930_v36  ;;  %4802 = vmatpush1.bf16.msra.mxu0 %v4801_v9  ;;  %v985_v51 = vpop.permute.xlu0 %984  ;;  %v6520_v49 = vmul.f32 %v9295_v43, %v925_v5  ;;  %v6523_v23 = vmul.f32 %v9297_v31, %v931_v63  ;;  %v9304_v7 = vld [vmem:[#allocation93_spill] sm:$0xff] }
 0x237   : > { %v991_v46 = vsel %vm988_vm8, %v977_v12, %v9298_v45  ;;  %v926_v62 = vsel %vm924_vm7, %v9291_v58, %v923_v32  ;;  %v6532_v38 = vmul.f32 %v9281_v0, %v868_v27  ;;  %v6535_v61 = vmul.f32 %v9299_v11, %v993_v6  ;;  %4908 = vmatprep.subr.bf16.mxu1 %v4907_v57 }
 0x238   : > { %9294 = vst [vmem:[#allocation69_spill] sm:$0xff] %v6517_v53  ;;  %9296 = vst [vmem:[#allocation70_spill] sm:$0xff] %v6520_v49  ;;  %v962_v5 = vmul.f32 %v9285_v17, %v928_v56  ;;  %4910 = vmatpush1.bf16.msra.mxu1 %v4909_v48  ;;  %v989_v12 = vsel %vm988_vm8, %v9298_v45, %v985_v51  ;;  %v995_v9 = vsel %vm988_vm8, %v985_v51, %v9290_v55  ;;  %v9301_v17 = vld [vmem:[#allocation90_spill] sm:$0xff]  ;;  %v9302_v55 = vld [vmem:[#allocation91_spill] sm:$0xff] }
 0x239   : > { %v932_v0 = vsel %vm924_vm7, %v923_v32, %v9292_v59  ;;  %v6550_v27 = vmul.f32 %v9295_v43, %v926_v62  ;;  %v6553_v58 = vmul.f32 %v9301_v17, %v991_v46  ;;  %v963_v36 = vmul.f32 %v9293_v25, %v926_v62  ;;  %v979_v63 = vpop.permute.xlu1 %978  ;;  %v9305_v25 = vld [vmem:[#allocation94_spill] sm:$0xff] }
 0x23a   : > { %v960_v48 = vmul.f32 %v9289_v3, %v932_v0  ;;  %v4803_v57 = vpack.c.bf16 %v961_v52, %v957_v35  ;;  %v1041_v45 = vpop.permute.xlu0 %1040  ;;  %v6559_v51 = vmul.f32 %v9302_v55, %v993_v6  ;;  %v6562_v59 = vmul.f32 %v9304_v7, %v991_v46  ;;  %v9306_v52 = vld [vmem:[#allocation95_spill] sm:$0xff]  ;;  %v9307_v6 = vld [vmem:[#allocation29_spill] sm:$0xff] }
 0x23b   : > { %9300 = vst [vmem:[#allocation71_spill] sm:$0xff] %v6550_v27  ;;  %v6565_v43 = vmul.f32 %v9288_v1, %v928_v56  ;;  %v4913_v3 = vpack.c.bf16 %v962_v5, %v6487_v28  ;;  %v1020_v35 = vmul.f32 %v9305_v25, %v995_v9  ;;  %v6572_v62 = vmul.f32 %v9306_v52, %v989_v12  ;;  %v9309_v56 = vld [vmem:[#allocation30_spill] sm:$0xff]  ;;  %v9310_v28 = vld [vmem:[#allocation28_spill] sm:$0xff] }
 0x23c   : > { %9303 = vst [vmem:[#allocation17_spill] sm:$0xff] %v6559_v51  ;;  %v4805_v53 = vpack.c.bf16 %v960_v48, %v956_v14  ;;  %4804 = vmatprep.subr.bf16.mxu0 %v4803_v57  ;;  %v1055_v46 = vsel %vm1052_vm9, %v1041_v45, %v9307_v6  ;;  %v1057_v1 = vsel %vm1052_vm9, %v9308_v37, %v1041_v45  ;;  %v9318_v51 = vld [vmem:[#allocation100_spill] sm:$0xff] }
 0x23d   : > { %v992_v32 = vsel %vm988_vm8, %v979_v63, %v9309_v56  ;;  %v994_v5 = vsel %vm988_vm8, %v9310_v28, %v979_v63  ;;  %v4911_v48 = vpack.c.bf16 %v963_v36, %v959_v24  ;;  %v987_v27 = vpop.permute.xlu1 %986  ;;  %v6593_v33 = vmul.f32 %v9312_v42, %v989_v12  ;;  %v9316_v36 = vld [vmem:[#allocation99_spill] sm:$0xff] }
 0x23e   : > { %v1025_v49 = vmul.f32 %v9299_v11, %v994_v5  ;;  %v6588_v14 = vmul.f32 %v9302_v55, %v994_v5  ;;  %4806 = vmatpush1.bf16.msra.mxu0 %v4805_v53  ;;  %v1049_v57 = vpop.permute.xlu0 %1048  ;;  %v6596_v22 = vmul.f32 %v9314_v29, %v995_v9  ;;  %v6599_v63 = vmul.f32 %v9297_v31, %v932_v0  ;;  %v9315_v53 = vld [vmem:[#allocation98_spill] sm:$0xff] }
 0x23f   : > { %9313 = vst [vmem:[#allocation73_spill] sm:$0xff] %v6593_v33  ;;  %v990_v11 = vsel %vm988_vm8, %v9309_v56, %v987_v27  ;;  %v6605_v24 = vmul.f32 %v9315_v53, %v1057_v1  ;;  %v6608_v55 = vmul.f32 %v9316_v36, %v1055_v46  ;;  %v1026_v5 = vmul.f32 %v9301_v17, %v992_v32  ;;  %v9326_v33 = vld [vmem:[#allocation32_spill] sm:$0xff] }
 0x240   : > { %9311 = vst [vmem:[#allocation72_spill] sm:$0xff] %v6588_v14  ;;  %4912 = vmatprep.subr.bf16.mxu1 %v4911_v48  ;;  %v1053_v31 = vsel %vm1052_vm9, %v9307_v6, %v1049_v57  ;;  %v1059_v9 = vsel %vm1052_vm9, %v1049_v57, %v9308_v37  ;;  %v996_v0 = vsel %vm988_vm8, %v987_v27, %v9310_v28  ;;  %v9320_v57 = vld [vmem:[#allocation101_spill] sm:$0xff] }
 0x241   : > { %4914 = vmatpush1.bf16.msra.mxu1 %v4913_v3  ;;  %v6623_v56 = vmul.f32 %v9312_v42, %v990_v11  ;;  %v1024_v17 = vmul.f32 %v9305_v25, %v996_v0  ;;  %v1027_v48 = vmul.f32 %v9306_v52, %v990_v11  ;;  %v4807_v3 = vpack.c.bf16 %v1025_v49, %v6535_v61  ;;  %v1043_v45 = vpop.permute.xlu1 %1042  ;;  %v9321_v49 = vld [vmem:[#allocation102_spill] sm:$0xff]  ;;  %v9322_v52 = vld [vmem:[#allocation103_spill] sm:$0xff]  ;;  %v9323_v6 = vld [vmem:[#allocation33_spill] sm:$0xff] }
 0x242   : > { %v1105_v12 = vpop.permute.xlu0 %1104  ;;  %v6631_v37 = vmul.f32 %v9318_v51, %v1057_v1  ;;  %v6634_v14 = vmul.f32 %v9320_v57, %v1055_v46  ;;  %v6637_v42 = vmul.f32 %v9304_v7, %v992_v32  ;;  %v4917_v25 = vpack.c.bf16 %v1026_v5, %v6553_v58  ;;  %v9324_v46 = vld [vmem:[#allocation31_spill] sm:$0xff]  ;;  %v9325_v32 = vld [vmem:[#allocation34_spill] sm:$0xff] }
 0x243   : > { %9317 = vst [vmem:[#allocation74_spill] sm:$0xff] %v6623_v56  ;;  %v1084_v61 = vmul.f32 %v9321_v49, %v1059_v9  ;;  %v1087_v28 = vmul.f32 %v9322_v52, %v1053_v31  ;;  %v4809_v11 = vpack.c.bf16 %v1024_v17, %v1020_v35  ;;  %4808 = vmatprep.subr.bf16.mxu0 %v4807_v3 }
 0x244   : > { %9319 = vst [vmem:[#allocation76_spill] sm:$0xff] %v6631_v37  ;;  %v1119_v1 = vsel %vm1116_vm10, %v1105_v12, %v9323_v6  ;;  %v1121_v7 = vsel %vm1116_vm10, %v9324_v46, %v1105_v12  ;;  %v1056_v27 = vsel %vm1052_vm9, %v1043_v45, %v9325_v32  ;;  %v1058_v58 = vsel %vm1052_vm9, %v9326_v33, %v1043_v45  ;;  %v9335_v37 = vld [vmem:[#allocation108_spill] sm:$0xff] }
 0x245   : > { %v1089_v35 = vmul.f32 %v9315_v53, %v1058_v58  ;;  %v6659_v5 = vmul.f32 %v9318_v51, %v1058_v58  ;;  %4810 = vmatpush1.bf16.msra.mxu0 %v4809_v11  ;;  %v4915_v17 = vpack.c.bf16 %v1027_v48, %v6572_v62  ;;  %v1051_v12 = vpop.permute.xlu1 %1050  ;;  %v6665_v21 = vmul.f32 %v9328_v16, %v1053_v31  ;;  %v9332_v53 = vld [vmem:[#allocation106_spill] sm:$0xff]  ;;  %v9333_v48 = vld [vmem:[#allocation107_spill] sm:$0xff] }
 0x246   : > { %v1113_v3 = vpop.permute.xlu0 %1112  ;;  %v6668_v45 = vmul.f32 %v9330_v30, %v1059_v9  ;;  %v6671_v19 = vmul.f32 %v9314_v29, %v996_v0  ;;  %v1054_v51 = vsel %vm1052_vm9, %v9325_v32, %v1051_v12  ;;  %v6677_v62 = vmul.f32 %v9332_v53, %v1121_v7 }
 0x247   : > { %9327 = vst [vmem:[#allocation19_spill] sm:$0xff] %v6659_v5  ;;  %9329 = vst [vmem:[#allocation22_spill] sm:$0xff] %v6665_v21  ;;  %v6680_v11 = vmul.f32 %v9333_v48, %v1119_v1  ;;  %v1090_v58 = vmul.f32 %v9316_v36, %v1056_v27  ;;  %4916 = vmatprep.subr.bf16.mxu1 %v4915_v17  ;;  %v1117_v29 = vsel %vm1116_vm10, %v9323_v6, %v1113_v3  ;;  %v9340_v6 = vld [vmem:[#allocation110_spill] sm:$0xff]  ;;  %v9342_v21 = vld [vmem:[#allocation111_spill] sm:$0xff] }
 0x248   : > { %9331 = vst [vmem:[#allocation20_spill] sm:$0xff] %v6668_v45  ;;  %4918 = vmatpush1.bf16.msra.mxu1 %v4917_v25  ;;  %v1123_v9 = vsel %vm1116_vm10, %v1113_v3, %v9324_v46  ;;  %v1060_v0 = vsel %vm1052_vm9, %v1051_v12, %v9326_v33  ;;  %v6695_v32 = vmul.f32 %v9328_v16, %v1054_v51  ;;  %v9338_v12 = vld [vmem:[#allocation36_spill] sm:$0xff] }
 0x249   : > { %v1088_v36 = vmul.f32 %v9321_v49, %v1060_v0  ;;  %v1091_v17 = vmul.f32 %v9322_v52, %v1054_v51  ;;  %v4811_v25 = vpack.c.bf16 %v1089_v35, %v6605_v24  ;;  %v1107_v56 = vpop.permute.xlu1 %1106  ;;  %v6703_v46 = vmul.f32 %v9335_v37, %v1121_v7  ;;  %v9337_v52 = vld [vmem:[#allocation38_spill] sm:$0xff] }
 0x24a   : > { %9334 = vst [vmem:[#allocation77_spill] sm:$0xff] %v6695_v32  ;;  %v1169_v31 = vpop.permute.xlu0 %1168  ;;  %v6706_v3 = vmul.f32 %v6095_v4, %v1119_v1  ;;  %v6709_v33 = vmul.f32 %v9320_v57, %v1056_v27  ;;  %v4921_v49 = vpack.c.bf16 %v1090_v58, %v6608_v55  ;;  %v1120_v35 = vsel %vm1116_vm10, %v1107_v56, %v9337_v52  ;;  %v9339_v1 = vld [vmem:[#allocation109_spill] sm:$0xff] }
 0x24b   : > { %9336 = vst [vmem:[#allocation78_spill] sm:$0xff] %v6703_v46  ;;  %v4813_v24 = vpack.c.bf16 %v1088_v36, %v1084_v61  ;;  %4812 = vmatprep.subr.bf16.mxu0 %v4811_v25  ;;  %v1122_v7 = vsel %vm1116_vm10, %v9338_v12, %v1107_v56  ;;  %v1148_v51 = vmul.f32 %v9339_v1, %v1123_v9 }
 0x24c   : > { %v1151_v57 = vmul.f32 %v9340_v6, %v1117_v29  ;;  %v1153_v27 = vmul.f32 %v9332_v53, %v1122_v7  ;;  %v6724_v16 = vmul.f32 %v9335_v37, %v1122_v7  ;;  %v4919_v55 = vpack.c.bf16 %v1091_v17, %v1087_v28  ;;  %v9344_v53 = vld [vmem:[#allocation112_spill] sm:$0xff] }
 0x24d   : > { %4814 = vmatpush1.bf16.msra.mxu0 %v4813_v24  ;;  %v1115_v58 = vpop.permute.xlu1 %1114  ;;  %v6733_v32 = vmul.f32 %v9342_v21, %v1117_v29  ;;  %v6736_v5 = vmul.f32 %v9344_v53, %v1123_v9  ;;  %v1154_v37 = vmul.f32 %v9333_v48, %v1120_v35  ;;  %v6742_v17 = vmul.f32 %v9330_v30, %v1060_v0  ;;  %v9347_v24 = vld [vmem:[#allocation37_spill] sm:$0xff]  ;;  %v9348_v48 = vld [vmem:[#allocation35_spill] sm:$0xff] }
 0x24e   : > { %9341 = vst [vmem:[#allocation79_spill] sm:$0xff] %v6724_v16  ;;  %v1177_v61 = vpop.permute.xlu0 %1176  ;;  %v1183_v7 = vsel %vm1180_vm11, %v1169_v31, %v9347_v24  ;;  %4920 = vmatprep.subr.bf16.mxu1 %v4919_v55  ;;  %v1118_v29 = vsel %vm1116_vm10, %v9337_v52, %v1115_v58  ;;  %v1124_v9 = vsel %vm1116_vm10, %v1115_v58, %v9338_v12  ;;  %v1254_v12 = vld [vmem:[#allocation3 + $0x28] sm:$0xf] }
 0x24f   : > { %9343 = vst [vmem:[#allocation80_spill] sm:$0xff] %v6733_v32  ;;  %9345 = vst [vmem:[#allocation21_spill] sm:$0xff] %v6736_v5  ;;  %v1185_v28 = vsel %vm1180_vm11, %v9348_v48, %v1169_v31  ;;  %4922 = vmatpush1.bf16.msra.mxu1 %v4921_v49  ;;  %v1152_v30 = vmul.f32 %v9339_v1, %v1124_v9  ;;  %v1155_v0 = vmul.f32 %v9340_v6, %v1118_v29  ;;  %v9356_v49 = vld [vmem:[#allocation118_spill] sm:$0xff] }
 0x250   : > { %9346 = vst [vmem:[#allocation81_spill] sm:$0xff] %v6742_v17  ;;  %v6759_v56 = vmul.f32 %v9342_v21, %v1118_v29  ;;  %v4815_v52 = vpack.c.bf16 %v1153_v27, %v6677_v62  ;;  %v6770_v6 = vmul.f32 %v6095_v4, %v1120_v35  ;;  %v4925_v21 = vpack.c.bf16 %v1154_v37, %v6680_v11  ;;  %v9350_v29 = vld [vmem:[#allocation42_spill] sm:$0xff]  ;;  %v9351_v35 = vld [vmem:[#allocation40_spill] sm:$0xff]  ;;  %v9353_v37 = vld [vmem:[#allocation113_spill] sm:$0xff] }
 0x251   : > { %v1171_v25 = vpop.permute.xlu1 %1170  ;;  %v4817_v1 = vpack.c.bf16 %v1152_v30, %v1148_v51  ;;  %v1181_v27 = vsel %vm1180_vm11, %v9347_v24, %v1177_v61  ;;  %v1187_v58 = vsel %vm1180_vm11, %v1177_v61, %v9348_v48  ;;  %v6788_v51 = vmul.f32 %v9344_v53, %v1124_v9 }
 0x252   : > { %9349 = vst [vmem:[#allocation82_spill] sm:$0xff] %v6759_v56  ;;  %v1233_v55 = vpop.permute.xlu0 %1232  ;;  %4816 = vmatprep.subr.bf16.mxu0 %v4815_v52  ;;  %v1184_v4 = vsel %vm1180_vm11, %v1171_v25, %v9350_v29  ;;  %v1186_v11 = vsel %vm1180_vm11, %v9351_v35, %v1171_v25  ;;  %v4923_v24 = vpack.c.bf16 %v1155_v0, %v1151_v57  ;;  %v9354_v57 = vld [vmem:[#allocation114_spill] sm:$0xff]  ;;  %v9355_v52 = vld [vmem:[#allocation117_spill] sm:$0xff] }
 0x253   : > { %9352 = vst [vmem:[#allocation83_spill] sm:$0xff] %v6788_v51  ;;  %v1217_v30 = vmul.f32 %v9353_v37, %v1186_v11  ;;  %4818 = vmatpush1.bf16.msra.mxu0 %v4817_v1  ;;  %v1213_v9 = vmul.f32 %v9353_v37, %v1185_v28  ;;  %v1214_v0 = vmul.f32 %v9354_v57, %v1183_v7  ;;  %v9364_v37 = vld [vmem:[#allocation55_spill] sm:$0xff] }
 0x254   : > { %v1218_v1 = vmul.f32 %v9354_v57, %v1184_v4  ;;  %4924 = vmatprep.subr.bf16.mxu1 %v4923_v24  ;;  %v1212_v62 = vmul.f32 %v9355_v52, %v1187_v58  ;;  %v1215_v31 = vmul.f32 %v9356_v49, %v1181_v27  ;;  %v9357_v57 = vld [vmem:[#allocation53_spill] sm:$0xff]  ;;  %v1267_v36 = vrot.slane %v1254_v12, %v9364_v37 }
 0x255   : > { %v1179_v48 = vpop.permute.xlu1 %1178  ;;  %4926 = vmatpush1.bf16.msra.mxu1 %v4925_v21  ;;  %v4819_v4 = vpack.c.bf16 %v1217_v30, %v1213_v9  ;;  %v1263_v25 = vrot.slane %v1254_v12, %v9357_v57  ;;  %v1318_v30 = vld [vmem:[#allocation3 + $0x2c] sm:$0xf] }
 0x256   : > { %v1241_v61 = vpop.permute.xlu0 %1240  ;;  %v1182_v11 = vsel %vm1180_vm11, %v9350_v29, %v1179_v48  ;;  %v1188_v53 = vsel %vm1180_vm11, %v1179_v48, %v9351_v35  ;;  %v4929_v35 = vpack.c.bf16 %v1218_v1, %v1214_v0  ;;  %v9358_v48 = vld [vmem:[#allocation54_spill] sm:$0xff]  ;;  %v9362_v0 = vld [vmem:[#allocation41_spill] sm:$0xff] }
 0x257   : > { %v1219_v28 = vmul.f32 %v9356_v49, %v1182_v11  ;;  %v1216_v7 = vmul.f32 %v9355_v52, %v1188_v53  ;;  %v1259_v49 = vrot.slane %v1254_v12, %v9358_v48  ;;  %4820 = vmatprep.subr.bf16.mxu0 %v4819_v4  ;;  %v9359_v52 = vld [vmem:[#allocation39_spill] sm:$0xff]  ;;  %v9360_v9 = vld [vmem:[#allocation58_spill] sm:$0xff] }
 0x258   : > { %v1249_v53 = vsel %vm1244_vm12, %v9359_v52, %v1233_v55  ;;  %v1271_v29 = vrot.slane %v1254_v12, %v9360_v9  ;;  %v9363_v1 = vld [vmem:[#allocation46_spill] sm:$0xff]  ;;  %v1335_v17 = vrot.slane %v1318_v30, %v9360_v9 }
 0x259   : > { %v1235_v24 = vpop.permute.xlu1 %1234  ;;  %v4927_v27 = vpack.c.bf16 %v1219_v28, %v1215_v31  ;;  %v4821_v11 = vpack.c.bf16 %v1216_v7, %v1212_v62  ;;  %v1251_v31 = vsel %vm1244_vm12, %v1241_v61, %v9359_v52  ;;  %v9361_v28 = vld [vmem:[#allocation44_spill] sm:$0xff]  ;;  %v1245_v62 = vsel %vm1244_vm12, %v9362_v0, %v1241_v61 }
 0x25a   : > { %v1297_v58 = vpop.permute.xlu0 %1296  ;;  %v1250_v21 = vsel %vm1244_vm12, %v9361_v28, %v1235_v24  ;;  %v1248_v7 = vsel %vm1244_vm12, %v1235_v24, %v9363_v1  ;;  %v1247_v52 = vsel %vm1244_vm12, %v1233_v55, %v9362_v0  ;;  %v1277_v61 = vmul.f32 %v1263_v25, %v1249_v53  ;;  %v9365_v0 = vld [vmem:[#allocation43_spill] sm:$0xff] }
 0x25b   : > { %4928 = vmatprep.subr.bf16.mxu1 %v4927_v27  ;;  %v1281_v4 = vmul.f32 %v1263_v25, %v1250_v21  ;;  %4822 = vmatpush1.bf16.msra.mxu0 %v4821_v11  ;;  %v1327_v27 = vrot.slane %v1318_v30, %v9357_v57  ;;  %v1276_v5 = vmul.f32 %v1259_v49, %v1251_v31 }
 0x25c   : > { %4930 = vmatpush1.bf16.msra.mxu1 %v4929_v35  ;;  %v1279_v21 = vmul.f32 %v1271_v29, %v1245_v62  ;;  %v1282_v35 = vmul.f32 %v1267_v36, %v1248_v7  ;;  %v1313_v51 = vsel %vm1308_vm13, %v9365_v0, %v1297_v58  ;;  %v1278_v16 = vmul.f32 %v1267_v36, %v1247_v52  ;;  %v9367_v7 = vld [vmem:[#allocation45_spill] sm:$0xff]  ;;  %v9368_v52 = vld [vmem:[#allocation50_spill] sm:$0xff] }
 0x25d   : > { %v1243_v56 = vpop.permute.xlu1 %1242  ;;  %v4823_v46 = vpack.c.bf16 %v1281_v4, %v1277_v61  ;;  %v1331_v61 = vrot.slane %v1318_v30, %v9364_v37 }
 0x25e   : > { %v1305_v32 = vpop.permute.xlu0 %1304  ;;  %v1246_v24 = vsel %vm1244_vm12, %v9363_v1, %v1243_v56  ;;  %v1252_v12 = vsel %vm1244_vm12, %v1243_v56, %v9361_v28  ;;  %v1323_v1 = vrot.slane %v1318_v30, %v9358_v48  ;;  %v1382_v56 = vld [vmem:[#allocation3 + $0x30] sm:$0xf]  ;;  %v9366_v28 = vld [vmem:[#allocation48_spill] sm:$0xff]  ;;  %v4933_v62 = vpack.c.bf16 %v1282_v35, %v1278_v16 }
 0x25f   : > { %v1280_v11 = vmul.f32 %v1259_v49, %v1252_v12  ;;  %v1283_v55 = vmul.f32 %v1271_v29, %v1246_v24  ;;  %4824 = vmatprep.subr.bf16.mxu0 %v4823_v46  ;;  %v1341_v49 = vmul.f32 %v1327_v27, %v1313_v51  ;;  %v1315_v36 = vsel %vm1308_vm13, %v1305_v32, %v9365_v0  ;;  %v9369_v0 = vld [vmem:[#allocation47_spill] sm:$0xff] }
 0x260   : > { %v1309_v4 = vsel %vm1308_vm13, %v9367_v7, %v1305_v32  ;;  %v1391_v16 = vrot.slane %v1382_v56, %v9357_v57  ;;  %v1311_v12 = vsel %vm1308_vm13, %v1297_v58, %v9367_v7  ;;  %v1340_v32 = vmul.f32 %v1323_v1, %v1315_v36  ;;  %v1454_v7 = vld [vmem:[#allocation3 + $0x38] sm:$0xf] }
 0x261   : > { %v4825_v25 = vpack.c.bf16 %v1280_v11, %v1276_v5  ;;  %v1299_v31 = vpop.permute.xlu1 %1298  ;;  %v4931_v45 = vpack.c.bf16 %v1283_v55, %v1279_v21  ;;  %v1343_v30 = vmul.f32 %v1335_v17, %v1309_v4  ;;  %v1387_v36 = vrot.slane %v1382_v56, %v9358_v48 }
 0x262   : > { %v1361_v53 = vpop.permute.xlu0 %1360  ;;  %v1314_v29 = vsel %vm1308_vm13, %v9366_v28, %v1299_v31  ;;  %v1312_v46 = vsel %vm1308_vm13, %v1299_v31, %v9368_v52  ;;  %v1342_v31 = vmul.f32 %v1331_v61, %v1311_v12 }
 0x263   : > { %v1345_v5 = vmul.f32 %v1327_v27, %v1314_v29  ;;  %4826 = vmatpush1.bf16.msra.mxu0 %v4825_v25  ;;  %4932 = vmatprep.subr.bf16.mxu1 %v4931_v45  ;;  %v1346_v35 = vmul.f32 %v1331_v61, %v1312_v46  ;;  %v1377_v25 = vsel %vm1372_vm14, %v9369_v0, %v1361_v53  ;;  %v9371_v61 = vld [vmem:[#allocation49_spill] sm:$0xff] }
 0x264   : > { %4934 = vmatpush1.bf16.msra.mxu1 %v4933_v62 }
 0x265   : > { %v1307_v24 = vpop.permute.xlu1 %1306  ;;  %v4827_v27 = vpack.c.bf16 %v1345_v5, %v1341_v49  ;;  %v1399_v5 = vrot.slane %v1382_v56, %v9360_v9  ;;  %v4937_v4 = vpack.c.bf16 %v1346_v35, %v1342_v31  ;;  %v1375_v35 = vsel %vm1372_vm14, %v1361_v53, %v9371_v61 }
 0x266   : > { %v1369_v51 = vpop.permute.xlu0 %1368  ;;  %v1310_v21 = vsel %vm1308_vm13, %v9368_v52, %v1307_v24  ;;  %v1316_v45 = vsel %vm1308_vm13, %v1307_v24, %v9366_v28  ;;  %v9370_v28 = vld [vmem:[#allocation52_spill] sm:$0xff] }
 0x267   : > { %v1344_v11 = vmul.f32 %v1323_v1, %v1316_v45  ;;  %v1347_v55 = vmul.f32 %v1335_v17, %v1310_v21  ;;  %4828 = vmatprep.subr.bf16.mxu0 %v4827_v27  ;;  %v1405_v17 = vmul.f32 %v1391_v16, %v1377_v25  ;;  %v1379_v52 = vsel %vm1372_vm14, %v1369_v51, %v9369_v0  ;;  %v9372_v27 = vld [vmem:[#allocation57_spill] sm:$0xff] }
 0x268   : > { %v1373_v24 = vsel %vm1372_vm14, %v9371_v61, %v1369_v51  ;;  %v1463_v21 = vrot.slane %v1454_v7, %v9357_v57  ;;  %v1404_v51 = vmul.f32 %v1387_v36, %v1379_v52  ;;  %v9374_v52 = vld [vmem:[#allocation6_spill] sm:$0xff] }
 0x269   : > { %v4829_v58 = vpack.c.bf16 %v1344_v11, %v1340_v32  ;;  %v1363_v49 = vpop.permute.xlu1 %1362  ;;  %v4935_v62 = vpack.c.bf16 %v1347_v55, %v1343_v30  ;;  %v1395_v32 = vrot.slane %v1382_v56, %v9364_v37  ;;  %v1407_v55 = vmul.f32 %v1399_v5, %v1373_v24  ;;  %v9377_v24 = vld [vmem:[#allocation60_spill] sm:$0xff] }
 0x26a   : > { %v1433_v29 = vpop.permute.xlu0 %1432  ;;  %v1378_v1 = vsel %vm1372_vm14, %v9370_v28, %v1363_v49  ;;  %v1376_v12 = vsel %vm1372_vm14, %v1363_v49, %v9372_v27 }
 0x26b   : > { %v1409_v46 = vmul.f32 %v1391_v16, %v1378_v1  ;;  %4830 = vmatpush1.bf16.msra.mxu0 %v4829_v58  ;;  %4936 = vmatprep.subr.bf16.mxu1 %v4935_v62  ;;  %v1410_v0 = vmul.f32 %v1395_v32, %v1376_v12  ;;  %v9373_v58 = vld [vmem:[#allocation56_spill] sm:$0xff]  ;;  %v1406_v62 = vmul.f32 %v1395_v32, %v1375_v35  ;;  %v9381_v32 = vld [vmem:[#allocation13_spill] sm:$0xff] }
 0x26c   : > { %4938 = vmatpush1.bf16.msra.mxu1 %v4937_v4  ;;  %v1447_v49 = vsel %vm1444_vm15, %v1433_v29, %v9373_v58  ;;  %v9379_v12 = vld [vmem:[#allocation12_spill] sm:$0xff] }
 0x26d   : > { %v1371_v30 = vpop.permute.xlu1 %1370  ;;  %v4831_v16 = vpack.c.bf16 %v1409_v46, %v1405_v17  ;;  %v9375_v46 = vld [vmem:[#allocation8_spill] sm:$0xff] }
 0x26e   : > { %v1441_v45 = vpop.permute.xlu0 %1440  ;;  %v1374_v11 = vsel %vm1372_vm14, %v9372_v27, %v1371_v30  ;;  %v1380_v56 = vsel %vm1372_vm14, %v1371_v30, %v9370_v28  ;;  %v4837_v61 = vpack.c.bf16 %v9375_v46, %v9374_v52  ;;  %v9376_v27 = vld [vmem:[#allocation62_spill] sm:$0xff]  ;;  %v1467_v46 = vrot.slane %v1454_v7, %v9364_v37 }
 0x26f   : > { %v1408_v25 = vmul.f32 %v1387_v36, %v1380_v56  ;;  %v1411_v31 = vmul.f32 %v1399_v5, %v1374_v11  ;;  %4832 = vmatprep.subr.bf16.mxu0 %v4831_v16  ;;  %v9378_v5 = vld [vmem:[#allocation10_spill] sm:$0xff]  ;;  %v9380_v16 = vld [vmem:[#allocation11_spill] sm:$0xff]  ;;  %v1477_v11 = vmul.f32 %v1463_v21, %v1447_v49  ;;  %v4941_v56 = vpack.c.bf16 %v1410_v0, %v1406_v62 }
 0x270   : > { %v4835_v30 = vpack.c.bf16 %v9379_v12, %v9378_v5  ;;  %v4943_v35 = vpack.c.bf16 %v9381_v32, %v9380_v16  ;;  %v1445_v5 = vsel %vm1444_vm15, %v9373_v58, %v1441_v45 }
 0x271   : > { %v4833_v53 = vpack.c.bf16 %v1408_v25, %v1404_v51  ;;  %v1435_v17 = vpop.permute.xlu1 %1434  ;;  %v4939_v4 = vpack.c.bf16 %v1411_v31, %v1407_v55  ;;  %v1459_v51 = vrot.slane %v1454_v7, %v9358_v48  ;;  %v1518_v55 = vld [vmem:[#allocation3 + $0x3c] sm:$0xf]  ;;  %v9382_v31 = vld [vmem:[#allocation51_spill] sm:$0xff] }
 0x272   : > { %v1497_v1 = vpop.permute.xlu0 %1496  ;;  %v1448_v28 = vsel %vm1444_vm15, %v1435_v17, %v9376_v27  ;;  %v1450_v36 = vsel %vm1444_vm15, %v9377_v24, %v1435_v17  ;;  %v1449_v52 = vsel %vm1444_vm15, %v9382_v31, %v1433_v29  ;;  %v1471_v17 = vrot.slane %v1454_v7, %v9360_v9 }
 0x273   : > { %v1481_v25 = vmul.f32 %v1463_v21, %v1448_v28  ;;  %4834 = vmatpush1.bf16.msra.mxu0 %v4833_v53  ;;  %4940 = vmatprep.subr.bf16.mxu1 %v4939_v4  ;;  %v1451_v0 = vsel %vm1444_vm15, %v1441_v45, %v9382_v31  ;;  %v1480_v21 = vmul.f32 %v1459_v51, %v1450_v36  ;;  %v9383_v53 = vld [vmem:[#allocation7_spill] sm:$0xff]  ;;  %v9384_v4 = vld [vmem:[#allocation9_spill] sm:$0xff] }
 0x274   : > { %4836 = vmatprep.subr.bf16.mxu0 %v4835_v30  ;;  %4942 = vmatpush1.bf16.msra.mxu1 %v4941_v56  ;;  %v1523_v29 = vrot.slane %v1518_v55, %v9358_v48  ;;  %v4945_v28 = vpack.c.bf16 %v9384_v4, %v9383_v53  ;;  %v1476_v12 = vmul.f32 %v1459_v51, %v1449_v52  ;;  %v9386_v56 = vld [vmem:[#allocation59_spill] sm:$0xff] }
 0x275   : > { %v4839_v62 = vpack.c.bf16 %v1481_v25, %v1477_v11  ;;  %4944 = vmatprep.subr.bf16.mxu1 %v4943_v35  ;;  %v1443_v7 = vpop.permute.xlu1 %1442  ;;  %v1527_v58 = vrot.slane %v1518_v55, %v9357_v57  ;;  %v1478_v30 = vmul.f32 %v1467_v46, %v1445_v5  ;;  %v1479_v16 = vmul.f32 %v1471_v17, %v1451_v0  ;;  %v9385_v11 = vld [vmem:[#allocation61_spill] sm:$0xff] }
 0x276   : > { %v1505_v49 = vpop.permute.xlu0 %1504  ;;  %v1446_v45 = vsel %vm1444_vm15, %v9376_v27, %v1443_v7  ;;  %v1452_v36 = vsel %vm1444_vm15, %v1443_v7, %v9377_v24  ;;  %v1511_v51 = vsel %vm8960_vm0, %v1497_v1, %v9385_v11  ;;  %v1513_v25 = vsel %vm8960_vm0, %v9386_v56, %v1497_v1 }
 0x277   : > { %4838 = vmatpush1.bf16.msra.mxu0 %v4837_v61  ;;  %v1482_v32 = vmul.f32 %v1467_v46, %v1446_v45  ;;  %v1483_v35 = vmul.f32 %v1471_v17, %v1452_v36  ;;  %v4841_v31 = vpack.c.bf16 %v1480_v21, %v1476_v12  ;;  %v1531_v5 = vrot.slane %v1518_v55, %v9364_v37  ;;  %v9387_v17 = vld [vmem:[#allocation92_spill] sm:$0xff] }
 0x278   : > { %4840 = vmatprep.subr.bf16.mxu0 %v4839_v62  ;;  %4946 = vmatpush1.bf16.msra.mxu1 %v4945_v28  ;;  %v1535_v46 = vrot.slane %v1518_v55, %v9360_v9  ;;  %v9388_v62 = vld [vmem:[#allocation75_spill] sm:$0xff]  ;;  %v1540_v1 = vmul.f32 %v1523_v29, %v1513_v25  ;;  %v1541_v21 = vmul.f32 %v1527_v58, %v1511_v51 }
 0x279   : > { %v4949_v52 = vpack.c.bf16 %v1482_v32, %v1478_v30  ;;  %v1499_v24 = vpop.permute.xlu1 %1498  ;;  %v4947_v61 = vpack.c.bf16 %v1483_v35, %v1479_v16  ;;  %v1509_v28 = vsel %vm8960_vm0, %v9385_v11, %v1505_v49  ;;  %v1515_v55 = vsel %vm8960_vm0, %v1505_v49, %v9386_v56  ;;  %v6971_v16 = vld [vmem:[%s8788_s4 + $0x8] sm:$0xff] }
 0x27a   : > { %v6952_v27 = vpop.permute.xlu0 %1556  ;;  %v1512_v0 = vsel %vm8960_vm0, %v1499_v24, %v9387_v17  ;;  %v1514_v7 = vsel %vm8960_vm0, %v9388_v62, %v1499_v24  ;;  %v1542_v32 = vmul.f32 %v1531_v5, %v1509_v28  ;;  %v1543_v49 = vmul.f32 %v1535_v46, %v1515_v55  ;;  %v5279_v24 = vld [vmem:[%s8788_s4] sm:$0xff] }
 0x27b   : > { %4842 = vmatpush1.bf16.msra.mxu0 %v4841_v31  ;;  %v1544_v53 = vmul.f32 %v1523_v29, %v1514_v7  ;;  %v1545_v4 = vmul.f32 %v1527_v58, %v1512_v0  ;;  %4948 = vmatprep.subr.bf16.mxu1 %v4947_v61  ;;  %v2262_v56 = vcombine.high %v6971_v16, %v6971_v16 }
 0x27c   : > { %4950 = vmatpush1.bf16.msra.mxu1 %v4949_v52 }
 0x27d   : > { %v4845_v45 = vpack.c.bf16 %v1544_v53, %v1540_v1  ;;  %v1507_v36 = vpop.permute.xlu1 %1506  ;;  %v4843_v30 = vpack.c.bf16 %v1545_v4, %v1541_v21 }
 0x27e   : > { %v1561_v12 = vpop.permute.xlu0 %1560  ;;  %v1510_v29 = vsel %vm8960_vm0, %v9387_v17, %v1507_v36  ;;  %v1516_v58 = vsel %vm8960_vm0, %v1507_v36, %v9388_v62  ;;  %vm1572_vm0 = vcmp.lt.s32.totalorder %v5904_v34, 120 }
 0x27f   : > { %v1546_v35 = vmul.f32 %v1531_v5, %v1510_v29  ;;  %v1547_v11 = vmul.f32 %v1535_v46, %v1516_v58  ;;  %4844 = vmatprep.subr.bf16.mxu0 %v4843_v30  ;;  %v1582_v46 = vld [vmem:[#allocation3 + $0x40] sm:$0xf]  ;;  %v1577_v1 = vsel %vm1572_vm0, %v6952_v27, %v1561_v12 }
 0x280   : > { %4846 = vmatpush1.bf16.msra.mxu0 %v4845_v45  ;;  %v1591_v17 = vrot.slane %v1582_v46, %v9357_v57  ;;  %v1587_v62 = vrot.slane %v1582_v46, %v9358_v48  ;;  %v1595_v45 = vrot.slane %v1582_v46, %v9364_v37  ;;  %v1599_v36 = vrot.slane %v1582_v46, %v9360_v9 }
 0x281   : > { %v4953_v25 = vpack.c.bf16 %v1546_v35, %v1542_v32  ;;  %v1559_v31 = vpop.permute.xlu1 %1558  ;;  %v4951_v52 = vpack.c.bf16 %v1547_v11, %v1543_v49 }
 0x282   : > { %v1565_v51 = vpop.permute.xlu0 %1564  ;;  %v1604_v29 = vmul.f32 %v1587_v62, %v1577_v1 }
 0x283   : > { %4952 = vmatprep.subr.bf16.mxu1 %v4951_v52  ;;  %2332 = vmatmul.mubr.f32.vlgmr.msra.gmra.mrb[4].mxu0 %v5279_v24  ;;  %v1575_v7 = vsel %vm1572_vm0, %v1561_v12, %v1565_v51 }
 0x284   : > { %4954 = vmatpush1.bf16.msra.mxu1 %v4953_v25  ;;  %4771 = vmatprep.mubr.msk.f32.mxu0 %vm8961_vm1, %v2262_v56  ;;  %v1605_v55 = vmul.f32 %v1591_v17, %v1575_v7 }
 0x285   : > { %v1563_v5 = vpop.permute.xlu1 %1562 }
 0x286   : > { %v1569_v61 = vpop.permute.xlu0 %1568  ;;  %v1578_v0 = vsel %vm1572_vm0, %v1559_v31, %v1563_v5 }
 0x287   : > { %2474 = vmatmul.mubr.f32.vlgmr.msra.gmra.mrb[4].mxu1 %v5279_v24  ;;  %v1608_v4 = vmul.f32 %v1587_v62, %v1578_v0  ;;  %v1573_v58 = vsel %vm1572_vm0, %v1565_v51, %v1569_v61  ;;  %v1579_v12 = vsel %vm1572_vm0, %v1569_v61, %v6952_v27  ;;  %v1646_v61 = vld [vmem:[#allocation3 + $0x44] sm:$0xf] }
 0x288   : > { %4772 = vmatprep.mubr.msk.f32.mxu1 %vm8961_vm1, %v2262_v56  ;;  %v1606_v52 = vmul.f32 %v1595_v45, %v1573_v58  ;;  %v1607_v24 = vmul.f32 %v1599_v36, %v1579_v12  ;;  %vm8962_vm1 = vcmp.lt.s32.totalorder %v5904_v34, 119  ;;  %v1655_v7 = vrot.slane %v1646_v61, %v9357_v57 }
 0x289   : > { %v1567_v53 = vpop.permute.xlu1 %1566  ;;  %v4849_v11 = vpack.c.bf16 %v1608_v4, %v1604_v29  ;;  %v1651_v1 = vrot.slane %v1646_v61, %v9358_v48  ;;  %v1659_v29 = vrot.slane %v1646_v61, %v9364_v37  ;;  %v1663_v58 = vrot.slane %v1646_v61, %v9360_v9 }
 0x28a   : > { %v1621_v21 = vpop.permute.xlu0 %1620  ;;  %v1576_v28 = vsel %vm1572_vm0, %v1563_v5, %v1567_v53 }
 0x28b   : > { %v1609_v30 = vmul.f32 %v1591_v17, %v1576_v28 }
 0x28d   : > { %v4847_v35 = vpack.c.bf16 %v1609_v30, %v1605_v55 }
 0x28e   : > { %v1625_v32 = vpop.permute.xlu0 %1624 }
 0x28f   : > { %v1571_v49 = vpop.permute.xlu1 %1570  ;;  %4848 = vmatprep.subr.bf16.mxu0 %v4847_v35  ;;  %v1641_v4 = vsel %vm8962_vm1, %v1621_v21, %v1625_v32 }
 0x290   : > { %v1574_v56 = vsel %vm1572_vm0, %v1567_v53, %v1571_v49  ;;  %v1580_v25 = vsel %vm1572_vm0, %v1571_v49, %v1559_v31  ;;  %4850 = vmatpush1.bf16.msra.mxu0 %v4849_v11  ;;  %v1668_v49 = vmul.f32 %v1651_v1, %v1641_v4  ;;  %v9395_v4 = vld [vmem:[#allocation129_spill] sm:$0xff] }
 0x291   : > { %v1610_v5 = vmul.f32 %v1595_v45, %v1574_v56  ;;  %v1611_v46 = vmul.f32 %v1599_v36, %v1580_v25 }
 0x292   : > { %v1629_v27 = vpop.permute.xlu0 %1628 }
 0x293   : > { %v4957_v51 = vpack.c.bf16 %v1610_v5, %v1606_v52  ;;  %v4955_v0 = vpack.c.bf16 %v1611_v46, %v1607_v24  ;;  %v1639_v53 = vsel %vm8962_vm1, %v1625_v32, %v1629_v27 }
 0x294   : > { %v1623_v17 = vpop.permute.xlu1 %1622  ;;  %v1669_v30 = vmul.f32 %v1655_v7, %v1639_v53 }
 0x295   : > { %4956 = vmatprep.subr.bf16.mxu1 %v4955_v0 }
 0x296   : > { %4958 = vmatpush1.bf16.msra.mxu1 %v4957_v51 }
 0x297   : > { %v1633_v28 = vpop.permute.xlu0 %1632 }
 0x298   : > { %v1627_v62 = vpop.permute.xlu1 %1626  ;;  %v1637_v35 = vsel %vm8962_vm1, %v1629_v27, %v1633_v28  ;;  %v1643_v11 = vsel %vm8962_vm1, %v1633_v28, %v1621_v21  ;;  %v9389_v27 = vld [vmem:[#allocation124_spill] sm:$0xff] }
 0x299   : > { %v1642_v31 = vsel %vm8962_vm1, %v1623_v17, %v1627_v62  ;;  %v1670_v5 = vmul.f32 %v1659_v29, %v1637_v35  ;;  %v1671_v46 = vmul.f32 %v1663_v58, %v1643_v11  ;;  %v9406_v35 = vpack.c.bf16 %v6311_v20, %v6234_v54  ;;  %v9407_v11 = vld [vmem:[#allocation130_spill] sm:$0xff]  ;;  %v9418_v20 = vld [vmem:[#allocation63_spill] sm:$0xff] }
 0x29a   : > { %v1672_v45 = vmul.f32 %v1651_v1, %v1642_v31  ;;  %v9392_v31 = vld [vmem:[#allocation116_spill] sm:$0xff]  ;;  %v9393_v1 = vld [vmem:[#allocation115_spill] sm:$0xff] }
 0x29b   : > { %v9394_v53 = vpack.c.bf16 %v9392_v31, %v9393_v1  ;;  %v9437_v1 = vpack.c.bf16 %v6637_v42, %v6562_v59  ;;  %v9446_v59 = vpack.c.bf16 %v6671_v19, %v6596_v22  ;;  %v9447_v42 = vld [vmem:[#allocation19_spill] sm:$0xff]  ;;  %v9460_v19 = vld [vmem:[#allocation77_spill] sm:$0xff] }
 0x29c   : > { %v1631_v55 = vpop.permute.xlu1 %1630  ;;  %v4853_v25 = vpack.c.bf16 %v1672_v45, %v1668_v49  ;;  %v9399_v45 = vld [vmem:[#allocation125_spill] sm:$0xff]  ;;  %v9405_v49 = vpack.c.bf16 %v6348_v40, %v6268_v10  ;;  %v9414_v10 = vpack.c.bf16 %v6389_v39, %v6308_v41  ;;  %v9415_v40 = vld [vmem:[#allocation64_spill] sm:$0xff]  ;;  %v9426_v39 = vld [vmem:[#allocation66_spill] sm:$0xff] }
 0x29d   : > { %v1640_v36 = vsel %vm8962_vm1, %v1627_v62, %v1631_v55  ;;  %v9390_v62 = vld [vmem:[#allocation119_spill] sm:$0xff] }
 0x29e   : > { %v1673_v12 = vmul.f32 %v1655_v7, %v1640_v36  ;;  %v9391_v7 = vpack.c.bf16 %v9389_v27, %v9390_v62  ;;  %v9400_v36 = vld [vmem:[#allocation122_spill] sm:$0xff]  ;;  %v9429_v62 = vpack.c.bf16 %v6565_v43, %v6498_v47  ;;  %v9438_v47 = vpack.c.bf16 %v6599_v63, %v6523_v23  ;;  %v9439_v43 = vld [vmem:[#allocation72_spill] sm:$0xff] }
 0x29f   : > { %v9450_v63 = vld [vmem:[#allocation74_spill] sm:$0xff] }
 0x2a0   : > { %v1635_v32 = vpop.permute.xlu1 %1634  ;;  %v4851_v56 = vpack.c.bf16 %v1673_v12, %v1669_v30  ;;  %v9401_v30 = vpack.c.bf16 %v9399_v45, %v9400_v36  ;;  %v9451_v45 = vld [vmem:[#allocation73_spill] sm:$0xff] }
 0x2a1   : > { %v1638_v52 = vsel %vm8962_vm1, %v1631_v55, %v1635_v32  ;;  %v1644_v24 = vsel %vm8962_vm1, %v1635_v32, %v1623_v17  ;;  %v9396_v17 = vld [vmem:[#allocation123_spill] sm:$0xff]  ;;  %v9398_v55 = vpack.c.bf16 %v6237_v13, %v6160_v60  ;;  %v9408_v32 = vld [vmem:[#allocation128_spill] sm:$0xff]  ;;  %v9452_v36 = vpack.c.bf16 %v9450_v63, %v9451_v45 }
 0x2a2   : > { %v1674_v51 = vmul.f32 %v1659_v29, %v1638_v52  ;;  %v1675_v0 = vmul.f32 %v1663_v58, %v1644_v24  ;;  %4852 = vmatprep.subr.bf16.mxu0 %v4851_v56  ;;  %v9397_v28 = vpack.c.bf16 %v9395_v4, %v9396_v17  ;;  %v9402_v29 = vld [vmem:[#allocation121_spill] sm:$0xff]  ;;  %v9403_v58 = vld [vmem:[#allocation120_spill] sm:$0xff]  ;;  %v9409_v60 = vpack.c.bf16 %v9407_v11, %v9408_v32  ;;  %v9410_v13 = vld [vmem:[#allocation127_spill] sm:$0xff] }
 0x2a3   : > { %4854 = vmatpush1.bf16.msra.mxu0 %v4853_v25  ;;  %v9404_v12 = vpack.c.bf16 %v9402_v29, %v9403_v58  ;;  %v9411_v56 = vld [vmem:[#allocation126_spill] sm:$0xff]  ;;  %v9413_v52 = vpack.c.bf16 %v6427_v8, %v6343_v2  ;;  %v9422_v2 = vpack.c.bf16 %v6470_v44, %v6386_v26  ;;  %v9423_v8 = vld [vmem:[#allocation15_spill] sm:$0xff]  ;;  %v9434_v44 = vld [vmem:[#allocation16_spill] sm:$0xff]  ;;  %vm2589_vm1 = vcmask 64512  }
 0x2a4   : > { %v4961_v61 = vpack.c.bf16 %v1674_v51, %v1670_v5  ;;  %4856 = vmatprep.subr.bf16.mxu0 %v9391_v7  ;;  %v4959_v21 = vpack.c.bf16 %v1675_v0, %v1671_v46  ;;  %v9412_v25 = vpack.c.bf16 %v9410_v13, %v9411_v56  ;;  %v9416_v24 = vld [vmem:[#allocation14_spill] sm:$0xff]  ;;  %v9419_v5 = vld [vmem:[#allocation131_spill] sm:$0xff]  ;;  %v9421_v51 = vpack.c.bf16 %v6501_v50, %v6419_v18  ;;  %v9431_v50 = vld [vmem:[#allocation69_spill] sm:$0xff] }
 0x2a5   : > { %v9417_v54 = vpack.c.bf16 %v9415_v40, %v9416_v24  ;;  %v9420_v46 = vpack.c.bf16 %v9418_v20, %v9419_v5  ;;  %v9424_v0 = vld [vmem:[#allocation67_spill] sm:$0xff]  ;;  %v9430_v18 = vpack.c.bf16 %v6532_v38, %v6461_v15  ;;  %v9432_v7 = vld [vmem:[#allocation68_spill] sm:$0xff]  ;;  %v9443_v4 = vld [vmem:[#allocation70_spill] sm:$0xff]  ;;  %v9469_v56 = vmov 0.0  }
 0x2a6   : > { %4960 = vmatprep.subr.bf16.mxu1 %v4959_v21  ;;  %v9425_v41 = vpack.c.bf16 %v9423_v8, %v9424_v0  ;;  %v9433_v26 = vpack.c.bf16 %v9431_v50, %v9432_v7  ;;  %v9435_v21 = vld [vmem:[#allocation18_spill] sm:$0xff]  ;;  %v9442_v38 = vld [vmem:[#allocation71_spill] sm:$0xff]  ;;  %v9454_v29 = vld [vmem:[#allocation81_spill] sm:$0xff] }
 0x2a7   : > { %4858 = vmatpush1.bf16.msra.mxu0 %v9394_v53  ;;  %4962 = vmatpush1.bf16.msra.mxu1 %v4961_v61  ;;  %v9427_v61 = vld [vmem:[#allocation65_spill] sm:$0xff]  ;;  %v9436_v31 = vpack.c.bf16 %v9434_v44, %v9435_v21  ;;  %v9444_v17 = vpack.c.bf16 %v9442_v38, %v9443_v4  ;;  %v9455_v58 = vld [vmem:[#allocation20_spill] sm:$0xff]  ;;  %v9463_v11 = vld [vmem:[#allocation83_spill] sm:$0xff] }
 0x2a8   : > { %4860 = vmatprep.subr.bf16.mxu0 %v9397_v28  ;;  %4964 = vmatprep.subr.bf16.mxu1 %v9398_v55  ;;  %v9428_v27 = vpack.c.bf16 %v9426_v39, %v9427_v61  ;;  %v9440_v53 = vld [vmem:[#allocation17_spill] sm:$0xff]  ;;  %v9445_v28 = vpack.c.bf16 %v6709_v33, %v6634_v14  ;;  %v9448_v55 = vld [vmem:[#allocation76_spill] sm:$0xff]  ;;  %v9456_v14 = vpack.c.bf16 %v9454_v29, %v9455_v58  ;;  %v9457_v33 = vld [vmem:[#allocation79_spill] sm:$0xff] }
 0x2a9   : > { %v9441_v15 = vpack.c.bf16 %v9439_v43, %v9440_v53  ;;  %v9449_v23 = vpack.c.bf16 %v9447_v42, %v9448_v55  ;;  %v9464_v32 = vld [vmem:[#allocation21_spill] sm:$0xff] }
 0x2ab   : > { %4862 = vmatpush1.bf16.msra.mxu0 %v9401_v30  ;;  %4966 = vmatpush1.bf16.msra.mxu1 %v9404_v12  ;;  %v9453_v30 = vpack.c.bf16 %v6770_v6, %v6706_v3  ;;  %v9458_v12 = vld [vmem:[#allocation78_spill] sm:$0xff]  ;;  %v9467_v6 = vld [vmem:[#allocation80_spill] sm:$0xff] }
 0x2ac   : > { %4864 = vmatprep.subr.bf16.mxu0 %v9405_v49  ;;  %4968 = vmatprep.subr.bf16.mxu1 %v9406_v35  ;;  %v9459_v22 = vpack.c.bf16 %v9457_v33, %v9458_v12  ;;  %v9461_v49 = vld [vmem:[#allocation22_spill] sm:$0xff] }
 0x2ad   : > { %v9462_v35 = vpack.c.bf16 %v9460_v19, %v9461_v49  ;;  %v9466_v3 = vld [vmem:[#allocation82_spill] sm:$0xff] }
 0x2ae   : > { %v9468_v13 = vpack.c.bf16 %v9466_v3, %v9467_v6 }
 0x2af   : > { %4866 = vmatpush1.bf16.msra.mxu0 %v9409_v60  ;;  %4970 = vmatpush1.bf16.msra.mxu1 %v9412_v25  ;;  %v9465_v60 = vpack.c.bf16 %v9463_v11, %v9464_v32  ;;  %v2577_v25 = vld [vmem:[%s8791_s7] sm:$0xff] }
 0x2b0   : > { %4868 = vmatprep.subr.bf16.mxu0 %v9413_v52  ;;  %4972 = vmatprep.subr.bf16.mxu1 %v9414_v10  ;;  %v2257_v52 = vpop.permute.xlu0 %2256 }
 0x2b1   : > { %2581 = vperm.xlu1 %5272, %v2577_v25  }
 0x2b3   : > { %4870 = vmatpush1.bf16.msra.mxu0 %v9417_v54  ;;  %4974 = vmatpush1.bf16.msra.mxu1 %v9420_v46 }
 0x2b4   : > { %4872 = vmatprep.subr.bf16.mxu0 %v9421_v51  ;;  %4976 = vmatprep.subr.bf16.mxu1 %v9422_v2  ;;  %v7166_v43 = vpop.permute.xlu0 %2586 }
 0x2b7   : > { %4874 = vmatpush1.bf16.msra.mxu0 %v9425_v41  ;;  %4978 = vmatpush1.bf16.msra.mxu1 %v9428_v27 }
 0x2b8   : > { %4876 = vmatprep.subr.bf16.mxu0 %v9429_v62  ;;  %4980 = vmatprep.subr.bf16.mxu1 %v9430_v18  ;;  %v2571_v18 = vld [vmem:[%s8790_s6] sm:$0xff] }
 0x2bb   : > { %4878 = vmatpush1.bf16.msra.mxu0 %v9433_v26  ;;  %4982 = vmatpush1.bf16.msra.mxu1 %v9436_v31  ;;  %v2572_v26 = vld [vmem:[%s8790_s6 + $0x8] sm:$0xff] }
 0x2bc   : > { %4880 = vmatprep.subr.bf16.mxu0 %v9437_v1  ;;  %4984 = vmatprep.subr.bf16.mxu1 %v9438_v47 }
 0x2bf   : > { %4882 = vmatpush1.bf16.msra.mxu0 %v9441_v15  ;;  %4986 = vmatpush1.bf16.msra.mxu1 %v9444_v17 }
 0x2c0   : > { %4884 = vmatprep.subr.bf16.mxu0 %v9445_v28  ;;  %4988 = vmatprep.subr.bf16.mxu1 %v9446_v59 }
 0x2c3   : > { %4886 = vmatpush1.bf16.msra.mxu0 %v9449_v23  ;;  %4990 = vmatpush1.bf16.msra.mxu1 %v9452_v36 }
 0x2c4   : > { %4888 = vmatprep.subr.bf16.mxu0 %v9453_v30  ;;  %4992 = vmatprep.subr.bf16.mxu1 %v9456_v14 }
 0x2c7   : > { %4890 = vmatpush1.bf16.msra.mxu0 %v9459_v22  ;;  %4994 = vmatpush1.bf16.msra.mxu1 %v9462_v35 }
 0x2c8   : > { %4996 = vmatprep.subr.bf16.mxu1 %v9465_v60 }
 0x2ca   : > { %2403 = vmatmul.mubr.f32.vlgmr.msra.gmra.mrb[4].mxu0 %v6971_v16 }
 0x2cb   : > { %4998 = vmatpush1.bf16.msra.mxu1 %v9468_v13  ;;  %2660 = vmatprep.mubr.f32.mxu0 %v9469_v56 }
 0x2ce   : > { %2545 = vmatmul.mubr.f32.vlgmr.msra.gmra.mrb[4].mxu1 %v6971_v16 }
 0x2cf   : > { %2737 = vmatprep.mubr.f32.mxu1 %v9469_v56 }
 0x330   : > { %v7161_v21 = vpop.permute.xlu1 %2581 }
 0x39d   : > { %v2404_v10 = vpop.f32.mrb[4].mxu0 }
 0x39e   : > { %v5215_v40 = vadd.f32 %v2404_v10, %v2257_v52  ;;  %v2406_v24 = vpop.f32.mrb[5].mxu0 }
 0x39f   : > { %v5216_v54 = vadd.f32 %v2406_v24, %v2257_v52 }
 0x3a0   : > { %v2551_v20 = vmax.f32 %v5215_v40, 0.0 }
 0x3a1   : > { %v2552_v5 = vmax.f32 %v5216_v54, 0.0  ;;  %v2546_v16 = vpop.f32.mrb[4].mxu1 }
 0x3a2   : > { %v2559_v46 = vrot.slane %v2551_v20, 4  ;;  %v5217_v51 = vadd.f32 %v2546_v16, %v2257_v52  ;;  %v2548_v2 = vpop.f32.mrb[5].mxu1 }
 0x3a3   : > { %v2560_v8 = vrot.slane %v2552_v5, 4  ;;  %v5218_v0 = vadd.f32 %v2548_v2, %v2257_v52 }
 0x3a4   : > { %2567 = vst [vmem:[%s5453_s20] sm:$0xf0] %v2559_v46  ;;  %v2553_v41 = vmax.f32 %v5217_v51, 0.0 }
 0x3a5   : > { %2568 = vst [vmem:[%s5453_s20 + $0x8] sm:$0xf0] %v2560_v8  ;;  %v2554_v39 = vmax.f32 %v5218_v0, 0.0 }
 0x3a6   : > { %v2561_v61 = vrot.slane %v2553_v41, 4 }
 0x3a7   : > { %v2562_v27 = vrot.slane %v2554_v39, 4 }
 0x3a8   : > { %2569 = vst [vmem:[%s5453_s20 + $0x10] sm:$0xf0] %v2561_v61 }
 0x3a9   : > { %2570 = vst [vmem:[%s5453_s20 + $0x18] sm:$0xf0] %v2562_v27 }
 0x3ab   : > { %v2573_v50 = vld [vmem:[%s5453_s20] sm:$0xff] }
 0x3ac   : > { %v2574_v62 = vld [vmem:[%s5453_s20 + $0x8] sm:$0xff] }
 0x3ad   : > { %2596 = vmatprep.subr.mxu0 %v2574_v62 }
 0x3ae   : > { %2597 = vmatpush1.msra.mxu0 %v2573_v50 }
 0x3af   : > { %4773 = vmatmul.mubr.msk.f32.vlgmr.msra.gmra.mrb[6].mxu0 %vm2589_vm1, %v2571_v18  ;;  %v2575_v44 = vld [vmem:[%s5453_s20 + $0x10] sm:$0xff] }
 0x3b0   : > { %v2576_v7 = vld [vmem:[%s5453_s20 + $0x18] sm:$0xff]  ;;  %2666 = vmatprep.mubr.f32.mxu0 %v9469_v56 }
 0x3b1   : > { %2673 = vmatprep.subr.mxu1 %v2576_v7 }
 0x3b2   : > { %2674 = vmatpush1.msra.mxu1 %v2575_v44 }
 0x3b3   : > { %4774 = vmatmul.mubr.msk.f32.gmra.mrb[8].mxu0 %vm2589_vm1, %v2572_v26  ;;  %4775 = vmatmul.mubr.msk.f32.vlgmr.msra.gmra.mrb[6].mxu1 %vm2589_vm1, %v2571_v18 }
 0x3b4   : > { %2743 = vmatprep.mubr.f32.mxu1 %v9469_v56 }
 0x3b7   : > { %4776 = vmatmul.mubr.msk.f32.gmra.mrb[8].mxu1 %vm2589_vm1, %v2572_v26 }
 0x482   : > { %v2662_v31 = vpop.f32.mrb[6].mxu0 }
 0x483   : > { %v2663_v1 = vadd.f32 %v2662_v31, %v7161_v21  ;;  %v7164_v47 = vpop.f32.mrb[7].mxu0 }
 0x484   : > { %v2665_v19 = vadd.f32 %v7164_v47, %v7161_v21 }
 0x485   : > { %v7168_v53 = vmax.f32 %v2663_v1, 0.0 }
 0x486   : > { %v2668_v15 = vpop.f32.mrb[8].mxu0  ;;  %v2739_v38 = vpop.f32.mrb[6].mxu1  ;;  %v7339_v11 = vmax.f32 %v2665_v19, 0.0 }
 0x487   : > { %9470 = vst [vmem:[#allocation84_spill] sm:$0xff] %v7168_v53  ;;  %v2669_v4 = vadd.f32 %v2668_v15, %v7166_v43  ;;  %v2740_v17 = vadd.f32 %v2739_v38, %v7161_v21  ;;  %v7172_v28 = vpop.f32.mrb[9].mxu0  ;;  %2758 = vrot.lane.b32.xlu1 %v7168_v53, %s5326_s28  ;;  %v7176_v59 = vpop.f32.mrb[7].mxu1 }
 0x488   : > { %v2671_v32 = vadd.f32 %v7172_v28, %v7166_v43  ;;  %v2742_v60 = vadd.f32 %v7176_v59, %v7161_v21 }
 0x489   : > { %v7178_v42 = vmax.f32 %v2669_v4, 0.0  ;;  %v7180_v55 = vmax.f32 %v2740_v17, 0.0 }
 0x48a   : > { %v2745_v23 = vpop.f32.mrb[8].mxu1  ;;  %v7353_v13 = vmax.f32 %v2671_v32, 0.0  ;;  %v7355_v56 = vmax.f32 %v2742_v60, 0.0 }
 0x48b   : > { %9471 = vst [vmem:[#allocation85_spill] sm:$0xff] %v7178_v42  ;;  %9472 = vst [vmem:[#allocation23_spill] sm:$0xff] %v7180_v55  ;;  %v2746_v63 = vadd.f32 %v2745_v23, %v7166_v43  ;;  %v7183_v45 = vpop.f32.mrb[9].mxu1  ;;  %2760 = vrot.lane.b32.xlu0 %v7178_v42, %s5326_s28  ;;  %2766 = vrot.lane.b32.xlu1 %v7180_v55, %s5326_s28 }
 0x48c   : > { %v2748_v25 = vadd.f32 %v7183_v45, %v7166_v43 }
 0x48d   : > { %v7189_v36 = vmax.f32 %v2746_v63, 0.0 }
 0x48e   : > { %v7367_v40 = vmax.f32 %v2748_v25, 0.0 }
 0x48f   : > { %9473 = vst [vmem:[#allocation26_spill] sm:$0xff] %v7189_v36  ;;  %2768 = vrot.lane.b32.xlu0 %v7189_v36, %s5326_s28  ;;  %2820 = vrot.lane.b32.xlu1 %v7168_v53, %s5327_s29 }
 0x493   : > { %2822 = vrot.lane.b32.xlu0 %v7178_v42, %s5327_s29  ;;  %2828 = vrot.lane.b32.xlu1 %v7180_v55, %s5327_s29 }
 0x497   : > { %2830 = vrot.lane.b32.xlu0 %v7189_v36, %s5327_s29  ;;  %2882 = vrot.lane.b32.xlu1 %v7168_v53, %s5328_s30 }
 0x49b   : > { %2884 = vrot.lane.b32.xlu0 %v7178_v42, %s5328_s30  ;;  %2890 = vrot.lane.b32.xlu1 %v7180_v55, %s5328_s30 }
 0x49f   : > { %2892 = vrot.lane.b32.xlu0 %v7189_v36, %s5328_s30  ;;  %2944 = vrot.lane.b32.xlu1 %v7168_v53, %s5329_s11 }
 0x4a3   : > { %2946 = vrot.lane.b32.xlu0 %v7178_v42, %s5329_s11  ;;  %2952 = vrot.lane.b32.xlu1 %v7180_v55, %s5329_s11 }
 0x4a7   : > { %2954 = vrot.lane.b32.xlu0 %v7189_v36, %s5329_s11  ;;  %3006 = vrot.lane.b32.xlu1 %v7168_v53, %s5330_s12 }
 0x4ab   : > { %3008 = vrot.lane.b32.xlu0 %v7178_v42, %s5330_s12  ;;  %3014 = vrot.lane.b32.xlu1 %v7180_v55, %s5330_s12 }
 0x4af   : > { %3016 = vrot.lane.b32.xlu0 %v7189_v36, %s5330_s12  ;;  %3068 = vrot.lane.b32.xlu1 %v7168_v53, %s5331_s15 }
 0x4b3   : > { %3070 = vrot.lane.b32.xlu0 %v7178_v42, %s5331_s15  ;;  %3076 = vrot.lane.b32.xlu1 %v7180_v55, %s5331_s15 }
 0x4b7   : > { %3078 = vrot.lane.b32.xlu0 %v7189_v36, %s5331_s15  ;;  %3130 = vrot.lane.b32.xlu1 %v7168_v53, %s5332_s16 }
 0x4bb   : > { %3132 = vrot.lane.b32.xlu0 %v7178_v42, %s5332_s16  ;;  %3138 = vrot.lane.b32.xlu1 %v7180_v55, %s5332_s16 }
 0x4bf   : > { %3140 = vrot.lane.b32.xlu0 %v7189_v36, %s5332_s16  ;;  %3192 = vrot.lane.b32.xlu1 %v7168_v53, %s5333_s17 }
 0x4c3   : > { %3194 = vrot.lane.b32.xlu0 %v7178_v42, %s5333_s17  ;;  %3200 = vrot.lane.b32.xlu1 %v7180_v55, %s5333_s17 }
 0x4c7   : > { %3202 = vrot.lane.b32.xlu0 %v7189_v36, %s5333_s17  ;;  %3254 = vrot.lane.b32.xlu1 %v7168_v53, %s5334_s18 }
 0x4cb   : > { %3256 = vrot.lane.b32.xlu0 %v7178_v42, %s5334_s18  ;;  %3262 = vrot.lane.b32.xlu1 %v7180_v55, %s5334_s18 }
 0x4cf   : > { %3264 = vrot.lane.b32.xlu0 %v7189_v36, %s5334_s18  ;;  %3316 = vrot.lane.b32.xlu1 %v7168_v53, %s5335_s19 }
 0x4d3   : > { %3318 = vrot.lane.b32.xlu0 %v7178_v42, %s5335_s19  ;;  %3324 = vrot.lane.b32.xlu1 %v7180_v55, %s5335_s19 }
 0x4d7   : > { %3326 = vrot.lane.b32.xlu0 %v7189_v36, %s5335_s19  ;;  %3378 = vrot.lane.b32.xlu1 %v7168_v53, %s5336_s14 }
 0x4db   : > { %3380 = vrot.lane.b32.xlu0 %v7178_v42, %s5336_s14  ;;  %3386 = vrot.lane.b32.xlu1 %v7180_v55, %s5336_s14 }
 0x4df   : > { %3388 = vrot.lane.b32.xlu0 %v7189_v36, %s5336_s14  ;;  %3440 = vrot.lane.b32.xlu1 %v7168_v53, %s5337_s21 }
 0x4e3   : > { %3442 = vrot.lane.b32.xlu0 %v7178_v42, %s5337_s21  ;;  %3448 = vrot.lane.b32.xlu1 %v7180_v55, %s5337_s21 }
 0x4e7   : > { %3450 = vrot.lane.b32.xlu0 %v7189_v36, %s5337_s21  ;;  %3502 = vrot.lane.b32.xlu1 %v7168_v53, %s5338_s22 }
 0x4eb   : > { %3504 = vrot.lane.b32.xlu0 %v7178_v42, %s5338_s22  ;;  %3510 = vrot.lane.b32.xlu1 %v7180_v55, %s5338_s22 }
 0x4ef   : > { %3512 = vrot.lane.b32.xlu0 %v7189_v36, %s5338_s22  ;;  %3572 = vrot.lane.b32.xlu1 %v7168_v53, %s5339_s23 }
 0x4f3   : > { %3574 = vrot.lane.b32.xlu0 %v7178_v42, %s5339_s23  ;;  %3580 = vrot.lane.b32.xlu1 %v7180_v55, %s5339_s23 }
 0x4f7   : > { %3582 = vrot.lane.b32.xlu0 %v7189_v36, %s5339_s23  ;;  %3634 = vrot.lane.b32.xlu1 %v7168_v53, %s9474_s24 }
 0x4f9   : > { %v7299_v30 = vpop.permute.xlu1 %2758 }
 0x4fb   : > { %3636 = vrot.lane.b32.xlu0 %v7178_v42, %s9474_s24  ;;  %3642 = vrot.lane.b32.xlu1 %v7180_v55, %s9474_s24 }
 0x4fd   : > { %v7305_v29 = vpop.permute.xlu0 %2760  ;;  %v7307_v58 = vpop.permute.xlu1 %2766 }
 0x4ff   : > { %3644 = vrot.lane.b32.xlu0 %v7189_v36, %s9474_s24  ;;  %3696 = vrot.lane.b32.xlu1 %v7168_v53, %s9475_s26 }
 0x501   : > { %v7313_v14 = vpop.permute.xlu0 %2768  ;;  %v7315_v33 = vpop.permute.xlu1 %2820 }
 0x503   : > { %3698 = vrot.lane.b32.xlu0 %v7178_v42, %s9475_s26  ;;  %3704 = vrot.lane.b32.xlu1 %v7180_v55, %s9475_s26 }
 0x505   : > { %v7321_v12 = vpop.permute.xlu0 %2822  ;;  %v7323_v22 = vpop.permute.xlu1 %2828 }
 0x507   : > { %3706 = vrot.lane.b32.xlu0 %v7189_v36, %s9475_s26  ;;  %3758 = vrot.lane.b32.xlu1 %v7168_v53, %s9476_s25 }
 0x509   : > { %v7331_v49 = vpop.permute.xlu0 %2830  ;;  %v7333_v35 = vpop.permute.xlu1 %2882 }
 0x50b   : > { %3760 = vrot.lane.b32.xlu0 %v7178_v42, %s9476_s25  ;;  %3766 = vrot.lane.b32.xlu1 %v7180_v55, %s9476_s25 }
 0x50d   : > { %v7345_v3 = vpop.permute.xlu0 %2884  ;;  %v7347_v6 = vpop.permute.xlu1 %2890 }
 0x50f   : > { %3768 = vrot.lane.b32.xlu0 %v7189_v36, %s9476_s25  ;;  %2762 = vrot.lane.b32.xlu1 %v7339_v11, %s5326_s28 }
 0x511   : > { %v7359_v52 = vpop.permute.xlu0 %2892  ;;  %v7361_v10 = vpop.permute.xlu1 %2944 }
 0x513   : > { %2764 = vrot.lane.b32.xlu0 %v7353_v13, %s5326_s28  ;;  %2770 = vrot.lane.b32.xlu1 %v7355_v56, %s5326_s28 }
 0x515   : > { %v7369_v24 = vpop.permute.xlu0 %2946  ;;  %v7371_v54 = vpop.permute.xlu1 %2952 }
 0x517   : > { %2772 = vrot.lane.b32.xlu0 %v7367_v40, %s5326_s28  ;;  %2824 = vrot.lane.b32.xlu1 %v7339_v11, %s5327_s29 }
 0x519   : > { %v7377_v20 = vpop.permute.xlu0 %2954  ;;  %v7379_v5 = vpop.permute.xlu1 %3006 }
 0x51a   : > { %9477 = vst [vmem:[#allocation24_spill] sm:$0xff] %v7379_v5 }
 0x51b   : > { %2826 = vrot.lane.b32.xlu0 %v7353_v13, %s5327_s29  ;;  %2832 = vrot.lane.b32.xlu1 %v7355_v56, %s5327_s29 }
 0x51d   : > { %v7385_v16 = vpop.permute.xlu0 %3008  ;;  %v7387_v46 = vpop.permute.xlu1 %3014 }
 0x51e   : > { %9478 = vst [vmem:[#allocation86_spill] sm:$0xff] %v7385_v16  ;;  %9479 = vst [vmem:[#allocation87_spill] sm:$0xff] %v7387_v46  ;;  %v3092_v16 = vld [vmem:[#allocation3 + $0x14] sm:$0xf] }
 0x51f   : > { %2834 = vrot.lane.b32.xlu0 %v7367_v40, %s5327_s29  ;;  %2886 = vrot.lane.b32.xlu1 %v7339_v11, %s5328_s30 }
 0x521   : > { %v7393_v51 = vpop.permute.xlu0 %3016  ;;  %v7395_v2 = vpop.permute.xlu1 %3068 }
 0x522   : > { %9480 = vst [vmem:[#allocation88_spill] sm:$0xff] %v7393_v51  ;;  %9481 = vst [vmem:[#allocation25_spill] sm:$0xff] %v7395_v2 }
 0x523   : > { %2888 = vrot.lane.b32.xlu0 %v7353_v13, %s5328_s30  ;;  %2894 = vrot.lane.b32.xlu1 %v7355_v56, %s5328_s30 }
 0x525   : > { %v7401_v8 = vpop.permute.xlu0 %3070  ;;  %v7403_v0 = vpop.permute.xlu1 %3076 }
 0x526   : > { %9482 = vst [vmem:[#allocation89_spill] sm:$0xff] %v7401_v8  ;;  %9483 = vst [vmem:[#allocation90_spill] sm:$0xff] %v7403_v0  ;;  %v3972_v0 = vld [vmem:[#allocation3 + $0x58] sm:$0xf] }
 0x527   : > { %2896 = vrot.lane.b32.xlu0 %v7367_v40, %s5328_s30  ;;  %2948 = vrot.lane.b32.xlu1 %v7339_v11, %s5329_s11 }
 0x529   : > { %v7409_v41 = vpop.permute.xlu0 %3078  ;;  %v7411_v39 = vpop.permute.xlu1 %3130 }
 0x52a   : > { %9484 = vst [vmem:[#allocation91_spill] sm:$0xff] %v7409_v41  ;;  %9485 = vst [vmem:[#allocation93_spill] sm:$0xff] %v7411_v39 }
 0x52b   : > { %2950 = vrot.lane.b32.xlu0 %v7353_v13, %s5329_s11  ;;  %2956 = vrot.lane.b32.xlu1 %v7355_v56, %s5329_s11 }
 0x52d   : > { %v7417_v61 = vpop.permute.xlu0 %3132  ;;  %v7419_v27 = vpop.permute.xlu1 %3138 }
 0x52e   : > { %9486 = vst [vmem:[#allocation94_spill] sm:$0xff] %v7417_v61  ;;  %9487 = vst [vmem:[#allocation95_spill] sm:$0xff] %v7419_v27  ;;  %v3030_v61 = vld [vmem:[#allocation3 + $0x10] sm:$0xf] }
 0x52f   : > { %2958 = vrot.lane.b32.xlu0 %v7367_v40, %s5329_s11  ;;  %3010 = vrot.lane.b32.xlu1 %v7339_v11, %s5330_s12  ;;  %v7674_v46 = vrot.slane %v3030_v61, %v9357_v57  ;;  %v7677_v5 = vrot.slane %v3030_v61, %v9364_v37 }
 0x531   : > { %v7425_v62 = vpop.permute.xlu0 %3140  ;;  %v7427_v18 = vpop.permute.xlu1 %3192  ;;  %9533 = vst [vmem:[#allocation52_spill] sm:$0xff] %v7674_v46  ;;  %9534 = vst [vmem:[#allocation49_spill] sm:$0xff] %v7677_v5  ;;  %v7696_v5 = vrot.slane %v3972_v0, %v9364_v37 }
 0x532   : > { %9488 = vst [vmem:[#allocation29_spill] sm:$0xff] %v7425_v62  ;;  %9489 = vst [vmem:[#allocation27_spill] sm:$0xff] %v7427_v18 }
 0x533   : > { %3012 = vrot.lane.b32.xlu0 %v7353_v13, %s5330_s12  ;;  %3018 = vrot.lane.b32.xlu1 %v7355_v56, %s5330_s12  ;;  %9541 = vst [vmem:[#allocation10_spill] sm:$0xff] %v7696_v5  ;;  %v7717_v5 = vrot.slane %v3092_v16, %v9360_v9 }
 0x535   : > { %v7433_v50 = vpop.permute.xlu0 %3194  ;;  %v7435_v7 = vpop.permute.xlu1 %3200  ;;  %9548 = vst [vmem:[#allocation61_spill] sm:$0xff] %v7717_v5 }
 0x536   : > { %9490 = vst [vmem:[#allocation30_spill] sm:$0xff] %v7433_v50  ;;  %9491 = vst [vmem:[#allocation28_spill] sm:$0xff] %v7435_v7 }
 0x537   : > { %3020 = vrot.lane.b32.xlu0 %v7367_v40, %s5330_s12  ;;  %3072 = vrot.lane.b32.xlu1 %v7339_v11, %s5331_s15 }
 0x539   : > { %v7441_v26 = vpop.permute.xlu0 %3202  ;;  %v7443_v44 = vpop.permute.xlu1 %3254 }
 0x53a   : > { %9492 = vst [vmem:[#allocation96_spill] sm:$0xff] %v7441_v26  ;;  %9493 = vst [vmem:[#allocation97_spill] sm:$0xff] %v7443_v44 }
 0x53b   : > { %3074 = vrot.lane.b32.xlu0 %v7353_v13, %s5331_s15  ;;  %3080 = vrot.lane.b32.xlu1 %v7355_v56, %s5331_s15 }
 0x53d   : > { %v7449_v21 = vpop.permute.xlu0 %3256  ;;  %v7451_v31 = vpop.permute.xlu1 %3262 }
 0x53e   : > { %9494 = vst [vmem:[#allocation98_spill] sm:$0xff] %v7449_v21  ;;  %9495 = vst [vmem:[#allocation99_spill] sm:$0xff] %v7451_v31  ;;  %v3934_v31 = vld [vmem:[#allocation3 + $0x54] sm:$0xf] }
 0x53f   : > { %3082 = vrot.lane.b32.xlu0 %v7367_v40, %s5331_s15  ;;  %3134 = vrot.lane.b32.xlu1 %v7339_v11, %s5332_s16  ;;  %v7655_v2 = vrot.slane %v3934_v31, %v9357_v57  ;;  %v7671_v51 = vrot.slane %v3934_v31, %v9360_v9 }
 0x541   : > { %v7457_v1 = vpop.permute.xlu0 %3264  ;;  %v7459_v47 = vpop.permute.xlu1 %3316  ;;  %9528 = vst [vmem:[#allocation43_spill] sm:$0xff] %v7655_v2  ;;  %9532 = vst [vmem:[#allocation47_spill] sm:$0xff] %v7671_v51  ;;  %v7689_v2 = vrot.slane %v3030_v61, %v9360_v9 }
 0x542   : > { %9496 = vst [vmem:[#allocation100_spill] sm:$0xff] %v7457_v1  ;;  %9497 = vst [vmem:[#allocation101_spill] sm:$0xff] %v7459_v47  ;;  %v2968_v1 = vld [vmem:[#allocation3 + $0xc] sm:$0xf] }
 0x543   : > { %3136 = vrot.lane.b32.xlu0 %v7353_v13, %s5332_s16  ;;  %3142 = vrot.lane.b32.xlu1 %v7355_v56, %s5332_s16  ;;  %v7646_v8 = vrot.slane %v2968_v1, %v9357_v57  ;;  %v7649_v41 = vrot.slane %v2968_v1, %v9364_v37  ;;  %9538 = vst [vmem:[#allocation8_spill] sm:$0xff] %v7689_v2  ;;  %v3278_v2 = vld [vmem:[#allocation3 + $0x20] sm:$0xf] }
 0x545   : > { %v7465_v43 = vpop.permute.xlu0 %3318  ;;  %v7467_v15 = vpop.permute.xlu1 %3324  ;;  %9527 = vst [vmem:[#allocation46_spill] sm:$0xff] %v7649_v41  ;;  %v7699_v41 = vrot.slane %v3972_v0, %v9360_v9 }
 0x546   : > { %9498 = vst [vmem:[#allocation102_spill] sm:$0xff] %v7465_v43  ;;  %9499 = vst [vmem:[#allocation103_spill] sm:$0xff] %v7467_v15 }
 0x547   : > { %3144 = vrot.lane.b32.xlu0 %v7367_v40, %s5332_s16  ;;  %3196 = vrot.lane.b32.xlu1 %v7339_v11, %s5333_s17  ;;  %9542 = vst [vmem:[#allocation12_spill] sm:$0xff] %v7699_v41 }
 0x549   : > { %v7473_v38 = vpop.permute.xlu0 %3326  ;;  %v7475_v4 = vpop.permute.xlu1 %3378 }
 0x54a   : > { %9500 = vst [vmem:[#allocation33_spill] sm:$0xff] %v7473_v38  ;;  %9501 = vst [vmem:[#allocation31_spill] sm:$0xff] %v7475_v4 }
 0x54b   : > { %3198 = vrot.lane.b32.xlu0 %v7353_v13, %s5333_s17  ;;  %3204 = vrot.lane.b32.xlu1 %v7355_v56, %s5333_s17 }
 0x54d   : > { %v7481_v17 = vpop.permute.xlu0 %3380  ;;  %v7483_v28 = vpop.permute.xlu1 %3386 }
 0x54e   : > { %9502 = vst [vmem:[#allocation34_spill] sm:$0xff] %v7481_v17  ;;  %9503 = vst [vmem:[#allocation32_spill] sm:$0xff] %v7483_v28  ;;  %v3896_v17 = vld [vmem:[#allocation3 + $0x50] sm:$0xf] }
 0x54f   : > { %3206 = vrot.lane.b32.xlu0 %v7367_v40, %s5333_s17  ;;  %3258 = vrot.lane.b32.xlu1 %v7339_v11, %s5334_s18  ;;  %v7624_v50 = vrot.slane %v3896_v17, %v9358_v48  ;;  %v7636_v18 = vrot.slane %v3896_v17, %v9364_v37  ;;  %v7643_v39 = vrot.slane %v3896_v17, %v9360_v9 }
 0x551   : > { %v7489_v59 = vpop.permute.xlu0 %3388  ;;  %v7491_v23 = vpop.permute.xlu1 %3440  ;;  %9526 = vst [vmem:[#allocation41_spill] sm:$0xff] %v7643_v39 }
 0x552   : > { %9504 = vst [vmem:[#allocation104_spill] sm:$0xff] %v7489_v59  ;;  %9505 = vst [vmem:[#allocation105_spill] sm:$0xff] %v7491_v23  ;;  %v2906_v59 = vld [vmem:[#allocation3 + $0x8] sm:$0xf] }
 0x553   : > { %3260 = vrot.lane.b32.xlu0 %v7353_v13, %s5334_s18  ;;  %3266 = vrot.lane.b32.xlu1 %v7355_v56, %s5334_s18  ;;  %v7618_v44 = vrot.slane %v2906_v59, %v9357_v57  ;;  %v7630_v26 = vrot.slane %v2906_v59, %v9358_v48  ;;  %v7633_v7 = vrot.slane %v2906_v59, %v9360_v9 }
 0x555   : > { %v7497_v63 = vpop.permute.xlu0 %3442  ;;  %v7499_v45 = vpop.permute.xlu1 %3448 }
 0x556   : > { %9506 = vst [vmem:[#allocation106_spill] sm:$0xff] %v7497_v63  ;;  %9507 = vst [vmem:[#allocation107_spill] sm:$0xff] %v7499_v45  ;;  %v2844_v45 = vld [vmem:[#allocation3 + $0x4] sm:$0xf] }
 0x557   : > { %3268 = vrot.lane.b32.xlu0 %v7367_v40, %s5334_s18  ;;  %3320 = vrot.lane.b32.xlu1 %v7339_v11, %s5335_s19  ;;  %v7590_v38 = vrot.slane %v2844_v45, %v9357_v57  ;;  %v7593_v43 = vrot.slane %v2844_v45, %v9364_v37  ;;  %v7605_v21 = vrot.slane %v2844_v45, %v9360_v9 }
 0x559   : > { %v7505_v19 = vpop.permute.xlu0 %3450  ;;  %v7507_v32 = vpop.permute.xlu1 %3502 }
 0x55a   : > { %9508 = vst [vmem:[#allocation108_spill] sm:$0xff] %v7505_v19  ;;  %9509 = vst [vmem:[#allocation38_spill] sm:$0xff] %v7507_v32  ;;  %v3858_v19 = vld [vmem:[#allocation3 + $0x4c] sm:$0xf] }
 0x55b   : > { %3322 = vrot.lane.b32.xlu0 %v7353_v13, %s5335_s19  ;;  %3328 = vrot.lane.b32.xlu1 %v7355_v56, %s5335_s19  ;;  %v7599_v47 = vrot.slane %v3858_v19, %v9357_v57 }
 0x55d   : > { %v7513_v60 = vpop.permute.xlu0 %3504  ;;  %v7515_v25 = vpop.permute.xlu1 %3510 }
 0x55e   : > { %9510 = vst [vmem:[#allocation36_spill] sm:$0xff] %v7513_v60  ;;  %9511 = vst [vmem:[#allocation109_spill] sm:$0xff] %v7515_v25 }
 0x55f   : > { %3330 = vrot.lane.b32.xlu0 %v7367_v40, %s5335_s19  ;;  %3382 = vrot.lane.b32.xlu1 %v7339_v11, %s5336_s14 }
 0x561   : > { %v7521_v36 = vpop.permute.xlu0 %3512  ;;  %v7523_v55 = vpop.permute.xlu1 %3572 }
 0x562   : > { %9512 = vst [vmem:[#allocation110_spill] sm:$0xff] %v7521_v36  ;;  %9513 = vst [vmem:[#allocation111_spill] sm:$0xff] %v7523_v55 }
 0x563   : > { %3384 = vrot.lane.b32.xlu0 %v7353_v13, %s5336_s14  ;;  %3390 = vrot.lane.b32.xlu1 %v7355_v56, %s5336_s14 }
 0x565   : > { %v7529_v42 = vpop.permute.xlu0 %3574  ;;  %v7531_v53 = vpop.permute.xlu1 %3580 }
 0x566   : > { %9514 = vst [vmem:[#allocation112_spill] sm:$0xff] %v7529_v42  ;;  %9515 = vst [vmem:[#allocation37_spill] sm:$0xff] %v7531_v53  ;;  %v2782_v53 = vld [vmem:[#allocation3] sm:$0xf] }
 0x567   : > { %3392 = vrot.lane.b32.xlu0 %v7367_v40, %s5336_s14  ;;  %3444 = vrot.lane.b32.xlu1 %v7339_v11, %s5337_s21  ;;  %v7558_v32 = vrot.slane %v2782_v53, %v9357_v57  ;;  %v7577_v63 = vrot.slane %v2782_v53, %v9360_v9 }
 0x569   : > { %v7537_v25 = vpop.permute.xlu0 %3582  ;;  %v7539_v36 = vpop.permute.xlu1 %3634 }
 0x56a   : > { %9516 = vst [vmem:[#allocation35_spill] sm:$0xff] %v7537_v25  ;;  %9517 = vst [vmem:[#allocation42_spill] sm:$0xff] %v7539_v36  ;;  %v3820_v25 = vld [vmem:[#allocation3 + $0x48] sm:$0xf] }
 0x56b   : > { %3446 = vrot.lane.b32.xlu0 %v7353_v13, %s5337_s21  ;;  %3452 = vrot.lane.b32.xlu1 %v7355_v56, %s5337_s21  ;;  %v7580_v23 = vrot.slane %v3820_v25, %v9364_v37  ;;  %v7583_v28 = vrot.slane %v3820_v25, %v9360_v9 }
 0x56d   : > { %v7545_v55 = vpop.permute.xlu0 %3636  ;;  %v7547_v42 = vpop.permute.xlu1 %3642 }
 0x56e   : > { %9518 = vst [vmem:[#allocation40_spill] sm:$0xff] %v7545_v55  ;;  %9519 = vst [vmem:[#allocation113_spill] sm:$0xff] %v7547_v42  ;;  %v7565_v55 = vrot.slane %v2782_v53, %v9364_v37  ;;  %v7568_v42 = vrot.slane %v3820_v25, %v9358_v48 }
 0x56f   : > { %3454 = vrot.lane.b32.xlu0 %v7367_v40, %s5337_s21  ;;  %3506 = vrot.lane.b32.xlu1 %v7339_v11, %s5338_s22 }
 0x571   : > { %v7553_v60 = vpop.permute.xlu0 %3644  ;;  %v7555_v36 = vpop.permute.xlu1 %3696 }
 0x572   : > { %9520 = vst [vmem:[#allocation114_spill] sm:$0xff] %v7553_v60  ;;  %9521 = vst [vmem:[#allocation117_spill] sm:$0xff] %v7555_v36  ;;  %v7571_v60 = vrot.slane %v3820_v25, %v9357_v57  ;;  %v7574_v36 = vrot.slane %v2782_v53, %v9358_v48  ;;  %v7596_v53 = vrot.slane %v3858_v19, %v9358_v48 }
 0x573   : > { %3508 = vrot.lane.b32.xlu0 %v7353_v13, %s5338_s22  ;;  %3514 = vrot.lane.b32.xlu1 %v7355_v56, %s5338_s22  ;;  %v7602_v25 = vrot.slane %v2844_v45, %v9358_v48  ;;  %v7621_v45 = vrot.slane %v2906_v59, %v9364_v37  ;;  %v7652_v59 = vrot.slane %v3934_v31, %v9358_v48 }
 0x575   : > { %v7585_v4 = vpop.permute.xlu0 %3698  ;;  %v7587_v15 = vpop.permute.xlu1 %3704 }
 0x576   : > { %9522 = vst [vmem:[#allocation118_spill] sm:$0xff] %v7585_v4  ;;  %9523 = vst [vmem:[#allocation39_spill] sm:$0xff] %v7587_v15  ;;  %v7608_v4 = vrot.slane %v3858_v19, %v9364_v37  ;;  %v7611_v15 = vrot.slane %v3858_v19, %v9360_v9  ;;  %v7627_v19 = vrot.slane %v3896_v17, %v9357_v57 }
 0x577   : > { %3516 = vrot.lane.b32.xlu0 %v7367_v40, %s5338_s22  ;;  %3576 = vrot.lane.b32.xlu1 %v7339_v11, %s5339_s23  ;;  %v7664_v17 = vrot.slane %v3934_v31, %v9364_v37  ;;  %v3154_v31 = vld [vmem:[#allocation3 + $0x18] sm:$0xf] }
 0x578   : > { %v7742_v41 = vrot.slane %v3154_v31, %v9358_v48 }
 0x579   : > { %v7638_v62 = vpop.permute.xlu0 %3706  ;;  %v7640_v27 = vpop.permute.xlu1 %3758  ;;  %9531 = vst [vmem:[#allocation50_spill] sm:$0xff] %v7664_v17  ;;  %v7683_v17 = vrot.slane %v3972_v0, %v9357_v57 }
 0x57a   : > { %9524 = vst [vmem:[#allocation58_spill] sm:$0xff] %v7638_v62  ;;  %9525 = vst [vmem:[#allocation44_spill] sm:$0xff] %v7640_v27  ;;  %v7658_v62 = vrot.slane %v2968_v1, %v9358_v48  ;;  %v7661_v27 = vrot.slane %v2968_v1, %v9360_v9  ;;  %v4010_v1 = vld [vmem:[#allocation3 + $0x5c] sm:$0xf] }
 0x57b   : > { %3578 = vrot.lane.b32.xlu0 %v7353_v13, %s5339_s23  ;;  %3584 = vrot.lane.b32.xlu1 %v7355_v56, %s5339_s23  ;;  %9536 = vst [vmem:[#allocation56_spill] sm:$0xff] %v7683_v17  ;;  %v7705_v17 = vrot.slane %v3092_v16, %v9364_v37  ;;  %9555 = vst [vmem:[#allocation115_spill] sm:$0xff] %v7742_v41 }
 0x57c   : > { %9529 = vst [vmem:[#allocation48_spill] sm:$0xff] %v7658_v62  ;;  %9530 = vst [vmem:[#allocation45_spill] sm:$0xff] %v7661_v27  ;;  %v7680_v27 = vrot.slane %v3972_v0, %v9358_v48  ;;  %v7686_v62 = vrot.slane %v3030_v61, %v9358_v48  ;;  %v7708_v61 = vrot.slane %v4010_v1, %v9358_v48  ;;  %v3216_v0 = vld [vmem:[#allocation3 + $0x1c] sm:$0xf] }
 0x57d   : > { %v7691_v51 = vpop.permute.xlu0 %3760  ;;  %v7693_v46 = vpop.permute.xlu1 %3766  ;;  %9544 = vst [vmem:[#allocation13_spill] sm:$0xff] %v7705_v17  ;;  %v7724_v17 = vrot.slane %v4010_v1, %v9364_v37  ;;  %v7759_v39 = vrot.slane %v3216_v0, %v9364_v37 }
 0x57e   : > { %9535 = vst [vmem:[#allocation57_spill] sm:$0xff] %v7680_v27  ;;  %9537 = vst [vmem:[#allocation6_spill] sm:$0xff] %v7686_v62  ;;  %v7702_v27 = vrot.slane %v3092_v16, %v9357_v57  ;;  %v4048_v62 = vld [vmem:[#allocation3 + $0x60] sm:$0xf] }
 0x57f   : > { %9539 = vst [vmem:[#allocation62_spill] sm:$0xff] %v7691_v51  ;;  %9540 = vst [vmem:[#allocation60_spill] sm:$0xff] %v7693_v46  ;;  %v7711_v51 = vrot.slane %v4010_v1, %v9357_v57  ;;  %v7714_v46 = vrot.slane %v3092_v16, %v9358_v48  ;;  %3586 = vrot.lane.b32.xlu0 %v7367_v40, %s5339_s23  ;;  %3638 = vrot.lane.b32.xlu1 %v7339_v11, %s9474_s24 }
 0x580   : > { %9543 = vst [vmem:[#allocation11_spill] sm:$0xff] %v7702_v27  ;;  %9545 = vst [vmem:[#allocation51_spill] sm:$0xff] %v7708_v61  ;;  %v7727_v61 = vrot.slane %v4010_v1, %v9360_v9  ;;  %v7733_v16 = vrot.slane %v3154_v31, %v9364_v37  ;;  %v7736_v5 = vrot.slane %v4048_v62, %v9358_v48 }
 0x581   : > { %9546 = vst [vmem:[#allocation7_spill] sm:$0xff] %v7711_v51  ;;  %9547 = vst [vmem:[#allocation9_spill] sm:$0xff] %v7714_v46  ;;  %v7730_v51 = vrot.slane %v3154_v31, %v9357_v57  ;;  %v4086_v46 = vld [vmem:[#allocation3 + $0x64] sm:$0xf]  ;;  %v7739_v27 = vrot.slane %v4048_v62, %v9357_v57  ;;  %v2763_v1 = vpop.permute.xlu1 %2762 }
 0x582   : > { %9549 = vst [vmem:[#allocation59_spill] sm:$0xff] %v7724_v17  ;;  %9550 = vst [vmem:[#allocation92_spill] sm:$0xff] %v7727_v61  ;;  %v7744_v17 = vpop.permute.xlu0 %3768  ;;  %v7747_v61 = vrot.slane %v3154_v31, %v9360_v9  ;;  %v7765_v31 = vrot.slane %v4086_v46, %v9357_v57 }
 0x583   : > { %9551 = vst [vmem:[#allocation75_spill] sm:$0xff] %v7730_v51  ;;  %9552 = vst [vmem:[#allocation124_spill] sm:$0xff] %v7733_v16  ;;  %v7750_v51 = vrot.slane %v4048_v62, %v9364_v37  ;;  %v7753_v16 = vrot.slane %v4048_v62, %v9360_v9  ;;  %v2778_v62 = vsel %vm605_vm2, %v7299_v30, %v2763_v1  ;;  %3640 = vrot.lane.b32.xlu0 %v7353_v13, %s9474_s24 }
 0x584   : > { %9553 = vst [vmem:[#allocation119_spill] sm:$0xff] %v7736_v5  ;;  %9554 = vst [vmem:[#allocation116_spill] sm:$0xff] %v7739_v27  ;;  %v7756_v5 = vrot.slane %v3216_v0, %v9357_v57  ;;  %v4124_v27 = vld [vmem:[#allocation3 + $0x68] sm:$0xf]  ;;  %3646 = vrot.lane.b32.xlu1 %v7355_v56, %s9474_s24 }
 0x585   : > { %9556 = vst [vmem:[#allocation129_spill] sm:$0xff] %v7744_v17  ;;  %9557 = vst [vmem:[#allocation123_spill] sm:$0xff] %v7747_v61  ;;  %v7762_v17 = vrot.slane %v4086_v46, %v9358_v48  ;;  %v7768_v61 = vrot.slane %v3216_v0, %v9358_v48  ;;  %v7805_v41 = vrot.slane %v4124_v27, %v9364_v37 }
 0x586   : > { %9558 = vst [vmem:[#allocation125_spill] sm:$0xff] %v7750_v51  ;;  %9559 = vst [vmem:[#allocation122_spill] sm:$0xff] %v7753_v16  ;;  %v7790_v16 = vrot.slane %v3278_v2, %v9364_v37  ;;  %v7793_v51 = vrot.slane %v4124_v27, %v9358_v48 }
 0x587   : > { %9560 = vst [vmem:[#allocation121_spill] sm:$0xff] %v7756_v5  ;;  %9561 = vst [vmem:[#allocation120_spill] sm:$0xff] %v7759_v39  ;;  %v7776_v5 = vrot.slane %v3216_v0, %v9360_v9  ;;  %v7779_v39 = vrot.slane %v4086_v46, %v9364_v37  ;;  %v7796_v0 = vrot.slane %v4124_v27, %v9357_v57  ;;  %3648 = vrot.lane.b32.xlu0 %v7367_v40, %s9474_s24 }
 0x588   : > { %9562 = vst [vmem:[#allocation130_spill] sm:$0xff] %v7762_v17  ;;  %9563 = vst [vmem:[#allocation128_spill] sm:$0xff] %v7765_v31  ;;  %v7782_v17 = vrot.slane %v4086_v46, %v9360_v9  ;;  %v3340_v31 = vld [vmem:[#allocation3 + $0x24] sm:$0xf]  ;;  %v7799_v46 = vrot.slane %v3278_v2, %v9358_v48  ;;  %3700 = vrot.lane.b32.xlu1 %v7339_v11, %s9475_s26 }
 0x589   : > { %9564 = vst [vmem:[#allocation127_spill] sm:$0xff] %v7768_v61  ;;  %9565 = vst [vmem:[#allocation126_spill] sm:$0xff] %v7776_v5  ;;  %v7787_v61 = vrot.slane %v3278_v2, %v9357_v57  ;;  %v2771_v5 = vpop.permute.xlu1 %2770 }
 0x58a   : > { %9566 = vst [vmem:[#allocation64_spill] sm:$0xff] %v7779_v39  ;;  %9567 = vst [vmem:[#allocation14_spill] sm:$0xff] %v7782_v17  ;;  %v2765_v39 = vpop.permute.xlu0 %2764  ;;  %v7802_v17 = vrot.slane %v3278_v2, %v9360_v9  ;;  %v7821_v2 = vmul.f32 %v7568_v42, %v2778_v62 }
 0x58b   : > { %9568 = vst [vmem:[#allocation63_spill] sm:$0xff] %v7787_v61  ;;  %9569 = vst [vmem:[#allocation131_spill] sm:$0xff] %v7790_v16  ;;  %v7808_v61 = vrot.slane %v4124_v27, %v9360_v9  ;;  %v2805_v16 = vmul.f32 %v7558_v32, %v2778_v62  ;;  %v7838_v62 = vrot.slane %v3340_v31, %v9364_v37  ;;  %3702 = vrot.lane.b32.xlu0 %v7353_v13, %s9475_s26 }
 0x58c   : > { %9570 = vst [vmem:[#allocation15_spill] sm:$0xff] %v7793_v51  ;;  %9571 = vst [vmem:[#allocation67_spill] sm:$0xff] %v7796_v0  ;;  %v2779_v0 = vsel %vm605_vm2, %v7305_v29, %v2765_v39  ;;  %v2780_v51 = vsel %vm605_vm2, %v2771_v5, %v7299_v30  ;;  %v2776_v30 = vsel %vm605_vm2, %v2763_v1, %v7307_v58  ;;  %3708 = vrot.lane.b32.xlu1 %v7355_v56, %s9475_s26 }
 0x58d   : > { %9572 = vst [vmem:[#allocation66_spill] sm:$0xff] %v7799_v46  ;;  %9573 = vst [vmem:[#allocation65_spill] sm:$0xff] %v7805_v41  ;;  %v7818_v46 = vrot.slane %v3340_v31, %v9357_v57  ;;  %v2809_v41 = vmul.f32 %v7558_v32, %v2779_v0  ;;  %v7825_v27 = vmul.f32 %v7568_v42, %v2779_v0  ;;  %v2825_v57 = vpop.permute.xlu1 %2824 }
 0x58e   : > { %9574 = vst [vmem:[#allocation69_spill] sm:$0xff] %v7808_v61  ;;  %9576 = vst [vmem:[#allocation16_spill] sm:$0xff] %v7821_v2  ;;  %v2774_v61 = vsel %vm605_vm2, %v7307_v58, %v2771_v5  ;;  %v7841_v42 = vrot.slane %v3340_v31, %v9358_v48  ;;  %v7844_v32 = vrot.slane %v3340_v31, %v9360_v9  ;;  %v2773_v1 = vpop.permute.xlu0 %2772 }
 0x58f   : > { %9575 = vst [vmem:[#allocation68_spill] sm:$0xff] %v7818_v46  ;;  %9577 = vst [vmem:[#allocation18_spill] sm:$0xff] %v7825_v27  ;;  %v2777_v5 = vsel %vm605_vm2, %v2765_v39, %v7313_v14  ;;  %v2804_v58 = vmul.f32 %v7574_v36, %v2780_v51  ;;  %v4999_v46 = vpack.c.bf16 %v2809_v41, %v2805_v16  ;;  %3710 = vrot.lane.b32.xlu0 %v7367_v40, %s9475_s26 }
 0x590   : > { %v2807_v37 = vmul.f32 %v7577_v63, %v2774_v61  ;;  %v7854_v48 = vmul.f32 %v7580_v23, %v2774_v61  ;;  %v2775_v31 = vsel %vm605_vm2, %v7313_v14, %v2773_v1  ;;  %v2781_v39 = vsel %vm605_vm2, %v2773_v1, %v7305_v29  ;;  %3762 = vrot.lane.b32.xlu1 %v7339_v11, %s9476_s25 }
 0x591   : > { %v2808_v0 = vmul.f32 %v7574_v36, %v2781_v39  ;;  %v2811_v2 = vmul.f32 %v7577_v63, %v2775_v31  ;;  %v7865_v27 = vmul.f32 %v7580_v23, %v2775_v31  ;;  %v2840_v41 = vsel %vm668_vm3, %v7315_v33, %v2825_v57  ;;  %5000 = vmatprep.subr.bf16.mxu0 %v4999_v46 }
 0x592   : > { %v2806_v14 = vmul.f32 %v7565_v55, %v2776_v30  ;;  %v7874_v61 = vmul.f32 %v7571_v60, %v2776_v30  ;;  %v2810_v29 = vmul.f32 %v7565_v55, %v2777_v5  ;;  %v7878_v36 = vmul.f32 %v7571_v60, %v2777_v5  ;;  %v2827_v1 = vpop.permute.xlu0 %2826  ;;  %v2833_v30 = vpop.permute.xlu1 %2832 }
 0x593   : > { %v5001_v23 = vpack.c.bf16 %v2808_v0, %v2804_v58  ;;  %v2838_v16 = vsel %vm668_vm3, %v2825_v57, %v7323_v22  ;;  %v5107_v31 = vpack.c.bf16 %v2811_v2, %v2807_v37  ;;  %v7888_v55 = vmul.f32 %v7583_v28, %v2780_v51  ;;  %3764 = vrot.lane.b32.xlu0 %v7353_v13, %s9476_s25 }
 0x594   : > { %v2867_v60 = vmul.f32 %v7590_v38, %v2840_v41  ;;  %v2841_v5 = vsel %vm668_vm3, %v7321_v12, %v2827_v1  ;;  %v2842_v0 = vsel %vm668_vm3, %v2833_v30, %v7315_v33  ;;  %v7898_v58 = vmul.f32 %v7596_v53, %v2840_v41  ;;  %3770 = vrot.lane.b32.xlu1 %v7355_v56, %s9476_s25 }
 0x595   : > { %v2871_v57 = vmul.f32 %v7590_v38, %v2841_v5  ;;  %v7902_v37 = vmul.f32 %v7596_v53, %v2841_v5  ;;  %v2836_v51 = vsel %vm668_vm3, %v7323_v22, %v2833_v30  ;;  %v5109_v46 = vpack.c.bf16 %v2810_v29, %v2806_v14  ;;  %5002 = vmatpush1.bf16.msra.mxu0 %v5001_v23 }
 0x596   : > { %v7910_v2 = vmul.f32 %v7583_v28, %v2781_v39  ;;  %v2868_v33 = vmul.f32 %v7593_v43, %v2838_v16  ;;  %v2839_v38 = vsel %vm668_vm3, %v2827_v1, %v7331_v49  ;;  %v2866_v22 = vmul.f32 %v7602_v25, %v2842_v0  ;;  %5108 = vmatprep.subr.bf16.mxu1 %v5107_v31  ;;  %v2835_v41 = vpop.permute.xlu0 %2834  ;;  %v2887_v14 = vpop.permute.xlu1 %2886 }
 0x597   : > { %v5003_v28 = vpack.c.bf16 %v2871_v57, %v2867_v60  ;;  %v2869_v39 = vmul.f32 %v7605_v21, %v2836_v51  ;;  %v7923_v29 = vmul.f32 %v7608_v4, %v2836_v51  ;;  %5110 = vmatpush1.bf16.msra.mxu1 %v5109_v46  ;;  %v2837_v1 = vsel %vm668_vm3, %v7331_v49, %v2835_v41  ;;  %v4162_v46 = vld [vmem:[%s8792_s8] sm:$0xff] }
 0x598   : > { %v2843_v30 = vsel %vm668_vm3, %v2835_v41, %v7321_v12  ;;  %v2873_v31 = vmul.f32 %v7605_v21, %v2837_v1  ;;  %v7934_v60 = vmul.f32 %v7608_v4, %v2837_v1  ;;  %v2902_v5 = vsel %vm732_vm4, %v7333_v35, %v2887_v14  ;;  %3772 = vrot.lane.b32.xlu0 %v7367_v40, %s9476_s25 }
 0x599   : > { %9578 = vst [vmem:[#allocation72_spill] sm:$0xff] %v7923_v29  ;;  %v2870_v23 = vmul.f32 %v7602_v25, %v2843_v30  ;;  %v7942_v49 = vmul.f32 %v7599_v47, %v2838_v16  ;;  %v2872_v57 = vmul.f32 %v7593_v43, %v2839_v38  ;;  %v7946_v12 = vmul.f32 %v7599_v47, %v2839_v38  ;;  %v4380_v47 = vld [vmem:[%s8793_s9] sm:$0xf]  ;;  %v9632_v29 = vld [vmem:[#allocation59_spill] sm:$0xff] }
 0x59a   : > { %9579 = vst [vmem:[#allocation17_spill] sm:$0xff] %v7934_v60  ;;  %v7949_v21 = vmul.f32 %v7611_v15, %v2842_v0  ;;  %v2900_v16 = vsel %vm732_vm4, %v2887_v14, %v7347_v6  ;;  %5004 = vmatprep.subr.bf16.mxu0 %v5003_v28  ;;  %v2889_v51 = vpop.permute.xlu0 %2888  ;;  %v2895_v43 = vpop.permute.xlu1 %2894  ;;  %v5111_v0 = vpack.c.bf16 %v2873_v31, %v2869_v39  ;;  %vm9716_vm2 = vcmp.lt.s32.totalorder %v5904_v34, 121 }
 0x59b   : > { %v5005_v4 = vpack.c.bf16 %v2870_v23, %v2866_v22  ;;  %v2929_v38 = vmul.f32 %v7618_v44, %v2902_v5  ;;  %v2901_v22 = vsel %vm732_vm4, %v2889_v51, %v7359_v52  ;;  %v2903_v41 = vsel %vm732_vm4, %v7345_v3, %v2889_v51  ;;  %4383 = vperm.xlu1 %5272, %v4380_v47   ;;  %vm9718_vm3 = vmmov %vm9716_vm2 }
 0x59c   : > { %9580 = vst [vmem:[#allocation71_spill] sm:$0xff] %v7949_v21  ;;  %v2904_v14 = vsel %vm732_vm4, %v2895_v43, %v7333_v35  ;;  %v7975_v28 = vmul.f32 %v7624_v50, %v2902_v5  ;;  %v2933_v39 = vmul.f32 %v7618_v44, %v2903_v41  ;;  %v7979_v1 = vmul.f32 %v7624_v50, %v2903_v41  ;;  %v9648_v21 = vld [vmem:[#allocation125_spill] sm:$0xff] }
 0x59d   : > { %v2898_v23 = vsel %vm732_vm4, %v7347_v6, %v2895_v43  ;;  %v5113_v31 = vpack.c.bf16 %v2872_v57, %v2868_v33  ;;  %v2930_v51 = vmul.f32 %v7621_v45, %v2900_v16  ;;  %v2934_v35 = vmul.f32 %v7621_v45, %v2901_v22  ;;  %5006 = vmatpush1.bf16.msra.mxu0 %v5005_v4 }
 0x59e   : > { %9581 = vst [vmem:[#allocation70_spill] sm:$0xff] %v7975_v28  ;;  %9582 = vst [vmem:[#allocation19_spill] sm:$0xff] %v7979_v1  ;;  %v4388_v5 = vcombine.high %v4162_v46, %v4162_v46  ;;  %v2928_v50 = vmul.f32 %v7630_v26, %v2904_v14  ;;  %5112 = vmatprep.subr.bf16.mxu1 %v5111_v0  ;;  %v2897_v41 = vpop.permute.xlu0 %2896  ;;  %v2949_v25 = vpop.permute.xlu1 %2948  ;;  %v5007_v6 = vpack.c.bf16 %v2933_v39, %v2929_v38  ;;  %v9645_v28 = vld [vmem:[#allocation116_spill] sm:$0xff] }
 0x59f   : > { %v2931_v43 = vmul.f32 %v7633_v7, %v2898_v23  ;;  %v7993_v33 = vmul.f32 %v7636_v18, %v2898_v23  ;;  %5114 = vmatpush1.bf16.msra.mxu1 %v5113_v31  ;;  %v2899_v45 = vsel %vm732_vm4, %v7359_v52, %v2897_v41  ;;  %v2905_v57 = vsel %vm732_vm4, %v2897_v41, %v7345_v3  ;;  %vm9720_vm4 = vmmov %vm9716_vm2 }
 0x5a0   : > { %v2932_v4 = vmul.f32 %v7630_v26, %v2905_v57  ;;  %v2935_v47 = vmul.f32 %v7633_v7, %v2899_v45  ;;  %v8004_v0 = vmul.f32 %v7636_v18, %v2899_v45  ;;  %v2964_v46 = vsel %vm796_vm5, %v7361_v10, %v2949_v25  ;;  %5008 = vmatprep.subr.bf16.mxu0 %v5007_v6  ;;  %v9600_v18 = vld [vmem:[#allocation47_spill] sm:$0xff] }
 0x5a1   : > { %9583 = vst [vmem:[#allocation76_spill] sm:$0xff] %v7993_v33  ;;  %v8010_v38 = vmul.f32 %v7611_v15, %v2843_v30  ;;  %v8013_v52 = vmul.f32 %v7627_v19, %v2900_v16  ;;  %v8016_v3 = vmul.f32 %v7627_v19, %v2901_v22  ;;  %v5117_v26 = vpack.c.bf16 %v2934_v35, %v2930_v51  ;;  %v9615_v33 = vld [vmem:[#allocation10_spill] sm:$0xff] }
 0x5a2   : > { %9584 = vst [vmem:[#allocation74_spill] sm:$0xff] %v8004_v0  ;;  %4457 = vmatprep.mubr.f32.mxu0 %v4388_v5  ;;  %v5009_v7 = vpack.c.bf16 %v2932_v4, %v2928_v50  ;;  %v2962_v39 = vsel %vm796_vm5, %v2949_v25, %v7371_v54  ;;  %v2951_v23 = vpop.permute.xlu0 %2950  ;;  %v2957_v31 = vpop.permute.xlu1 %2956  ;;  %v5115_v15 = vpack.c.bf16 %v2935_v47, %v2931_v43  ;;  %v9587_v50 = vld [vmem:[#allocation41_spill] sm:$0xff]  ;;  %v9593_v47 = vld [vmem:[#allocation48_spill] sm:$0xff] }
 0x5a3   : > { %4599 = vmatprep.mubr.f32.mxu1 %v4388_v5  ;;  %v2991_v30 = vmul.f32 %v7646_v8, %v2964_v46  ;;  %v2963_v19 = vsel %vm796_vm5, %v2951_v23, %v7377_v20  ;;  %v2965_v16 = vsel %vm796_vm5, %v7369_v24, %v2951_v23  ;;  %v2966_v22 = vsel %vm796_vm5, %v2957_v31, %v7361_v10  ;;  %v9590_v10 = vld [vmem:[#allocation46_spill] sm:$0xff]  ;;  %v9594_v23 = vld [vmem:[#allocation45_spill] sm:$0xff] }
 0x5a4   : > { %v8034_v25 = vmul.f32 %v7652_v59, %v2964_v46  ;;  %v2995_v51 = vmul.f32 %v7646_v8, %v2965_v16  ;;  %v8038_v35 = vmul.f32 %v7652_v59, %v2965_v16  ;;  %v2960_v5 = vsel %vm796_vm5, %v7371_v54, %v2957_v31  ;;  %5010 = vmatpush1.bf16.msra.mxu0 %v5009_v7  ;;  %v9591_v8 = vld [vmem:[#allocation43_spill] sm:$0xff]  ;;  %v9595_v31 = vld [vmem:[#allocation50_spill] sm:$0xff] }
 0x5a5   : > { %v8044_v41 = vmul.f32 %v9587_v50, %v2904_v14  ;;  %v8047_v6 = vmul.f32 %v9587_v50, %v2905_v57  ;;  %v2992_v43 = vmul.f32 %v9590_v10, %v2962_v39  ;;  %v2996_v45 = vmul.f32 %v9590_v10, %v2963_v19  ;;  %5116 = vmatprep.subr.bf16.mxu1 %v5115_v15 }
 0x5a6   : > { %9585 = vst [vmem:[#allocation73_spill] sm:$0xff] %v8034_v25  ;;  %9586 = vst [vmem:[#allocation81_spill] sm:$0xff] %v8038_v35  ;;  %v8052_v4 = vmul.f32 %v9591_v8, %v2962_v39  ;;  %v2990_v54 = vmul.f32 %v9593_v47, %v2966_v22  ;;  %5118 = vmatpush1.bf16.msra.mxu1 %v5117_v26  ;;  %v2959_v46 = vpop.permute.xlu0 %2958  ;;  %v3011_v14 = vpop.permute.xlu1 %3010  ;;  %v5011_v7 = vpack.c.bf16 %v2995_v51, %v2991_v30  ;;  %v9598_v30 = vld [vmem:[#allocation24_spill] sm:$0xff]  ;;  %v9628_v25 = vld [vmem:[#allocation7_spill] sm:$0xff] }
 0x5a7   : > { %9588 = vst [vmem:[#allocation20_spill] sm:$0xff] %v8044_v41  ;;  %9589 = vst [vmem:[#allocation79_spill] sm:$0xff] %v8047_v6  ;;  %v2993_v57 = vmul.f32 %v9594_v23, %v2960_v5  ;;  %v8059_v16 = vmul.f32 %v9595_v31, %v2960_v5  ;;  %v2961_v15 = vsel %vm796_vm5, %v7377_v20, %v2959_v46  ;;  %v9661_v41 = vld [vmem:[#allocation128_spill] sm:$0xff] }
 0x5a8   : > { %9592 = vst [vmem:[#allocation78_spill] sm:$0xff] %v8052_v4  ;;  %v2967_v39 = vsel %vm796_vm5, %v2959_v46, %v7369_v24  ;;  %v2997_v26 = vmul.f32 %v9594_v23, %v2961_v15  ;;  %v8070_v10 = vmul.f32 %v9595_v31, %v2961_v15  ;;  %v3026_v51 = vsel %vm860_vm6, %v9598_v30, %v3011_v14  ;;  %v9602_v24 = vld [vmem:[#allocation87_spill] sm:$0xff]  ;;  %vm9722_vm5 = vmmov %vm9716_vm2 }
 0x5a9   : > { %9596 = vst [vmem:[#allocation77_spill] sm:$0xff] %v8059_v16  ;;  %v2994_v50 = vmul.f32 %v9593_v47, %v2967_v39  ;;  %5012 = vmatprep.subr.bf16.mxu0 %v5011_v7  ;;  %v8076_v5 = vmul.f32 %v9591_v8, %v2963_v19  ;;  %v5121_v20 = vpack.c.bf16 %v2996_v45, %v2992_v43  ;;  %v9603_v19 = vld [vmem:[#allocation52_spill] sm:$0xff]  ;;  %v9605_v45 = vld [vmem:[#allocation86_spill] sm:$0xff] }
 0x5aa   : > { %9597 = vst [vmem:[#allocation22_spill] sm:$0xff] %v8070_v10  ;;  %v8079_v59 = vmul.f32 %v9600_v18, %v2966_v22  ;;  %v3024_v47 = vsel %vm860_vm6, %v3011_v14, %v9602_v24  ;;  %v3013_v31 = vpop.permute.xlu0 %3012  ;;  %v3019_v15 = vpop.permute.xlu1 %3018  ;;  %v5119_v44 = vpack.c.bf16 %v2997_v26, %v2993_v57  ;;  %v3053_v8 = vmul.f32 %v9603_v19, %v3026_v51  ;;  %v9604_v43 = vld [vmem:[#allocation88_spill] sm:$0xff] }
 0x5ab   : > { %9599 = vst [vmem:[#allocation83_spill] sm:$0xff] %v8076_v5  ;;  %v5013_v46 = vpack.c.bf16 %v2994_v50, %v2990_v54  ;;  %v3025_v22 = vsel %vm860_vm6, %v3013_v31, %v9604_v43  ;;  %v3027_v14 = vsel %vm860_vm6, %v9605_v45, %v3013_v31  ;;  %v3028_v54 = vsel %vm860_vm6, %v3019_v15, %v9598_v30  ;;  %v9606_v50 = vld [vmem:[#allocation57_spill] sm:$0xff]  ;;  %v9611_v16 = vld [vmem:[#allocation56_spill] sm:$0xff] }
 0x5ac   : > { %9601 = vst [vmem:[#allocation21_spill] sm:$0xff] %v8079_v59  ;;  %v8099_v23 = vmul.f32 %v9606_v50, %v3026_v51  ;;  %v3057_v57 = vmul.f32 %v9603_v19, %v3027_v14  ;;  %v8103_v26 = vmul.f32 %v9606_v50, %v3027_v14  ;;  %v3022_v63 = vsel %vm860_vm6, %v9602_v24, %v3019_v15  ;;  %v9610_v31 = vld [vmem:[#allocation49_spill] sm:$0xff]  ;;  %v9613_v14 = vld [vmem:[#allocation6_spill] sm:$0xff]  ;;  %v9664_v5 = vld [vmem:[#allocation64_spill] sm:$0xff] }
 0x5ad   : > { %5014 = vmatpush1.bf16.msra.mxu0 %v5013_v46  ;;  %v8109_v53 = vmul.f32 %v9600_v18, %v2967_v39  ;;  %v3054_v7 = vmul.f32 %v9610_v31, %v3024_v47  ;;  %v8113_v30 = vmul.f32 %v9611_v16, %v3024_v47  ;;  %v3058_v51 = vmul.f32 %v9610_v31, %v3025_v22  ;;  %v9614_v39 = vld [vmem:[#allocation8_spill] sm:$0xff]  ;;  %v9618_v19 = vld [vmem:[#allocation25_spill] sm:$0xff]  ;;  %v9679_v59 = vld [vmem:[#allocation67_spill] sm:$0xff] }
 0x5ae   : > { %9607 = vst [vmem:[#allocation82_spill] sm:$0xff] %v8099_v23  ;;  %9608 = vst [vmem:[#allocation80_spill] sm:$0xff] %v8103_v26  ;;  %5120 = vmatprep.subr.bf16.mxu1 %v5119_v44  ;;  %v3052_v50 = vmul.f32 %v9613_v14, %v3028_v54  ;;  %v3021_v10 = vpop.permute.xlu0 %3020  ;;  %v3073_v24 = vpop.permute.xlu1 %3072  ;;  %v5015_v46 = vpack.c.bf16 %v3057_v57, %v3053_v8  ;;  %v3055_v15 = vmul.f32 %v9614_v39, %v3022_v63  ;;  %v9619_v23 = vld [vmem:[#allocation12_spill] sm:$0xff] }
 0x5af   : > { %9609 = vst [vmem:[#allocation41_spill] sm:$0xff] %v8109_v53  ;;  %9612 = vst [vmem:[#allocation46_spill] sm:$0xff] %v8113_v30  ;;  %5122 = vmatpush1.bf16.msra.mxu1 %v5121_v20  ;;  %v8123_v47 = vmul.f32 %v9615_v33, %v3022_v63  ;;  %v3023_v44 = vsel %vm860_vm6, %v9604_v43, %v3021_v10  ;;  %v3029_v31 = vsel %vm860_vm6, %v3021_v10, %v9605_v45  ;;  %v9620_v10 = vld [vmem:[#allocation90_spill] sm:$0xff] }
 0x5b0   : > { %v3056_v20 = vmul.f32 %v9613_v14, %v3029_v31  ;;  %v3059_v8 = vmul.f32 %v9614_v39, %v3023_v44  ;;  %v8134_v57 = vmul.f32 %v9615_v33, %v3023_v44  ;;  %v3088_v63 = vsel %vm924_vm7, %v9618_v19, %v3073_v24  ;;  %5016 = vmatprep.subr.bf16.mxu0 %v5015_v46  ;;  %vm9723_vm6 = vmmov %vm9716_vm2 }
 0x5b1   : > { %9616 = vst [vmem:[#allocation43_spill] sm:$0xff] %v8123_v47  ;;  %v8140_v18 = vmul.f32 %v9611_v16, %v3025_v22  ;;  %v5125_v43 = vpack.c.bf16 %v3058_v51, %v3054_v7  ;;  %v8143_v26 = vmul.f32 %v9619_v23, %v3028_v54  ;;  %v3086_v45 = vsel %vm924_vm7, %v3073_v24, %v9620_v10  ;;  %v9621_v16 = vld [vmem:[#allocation11_spill] sm:$0xff]  ;;  %v9623_v51 = vld [vmem:[#allocation89_spill] sm:$0xff] }
 0x5b2   : > { %9617 = vst [vmem:[#allocation48_spill] sm:$0xff] %v8134_v57  ;;  %v5017_v14 = vpack.c.bf16 %v3056_v20, %v3052_v50  ;;  %v3075_v39 = vpop.permute.xlu0 %3074  ;;  %v3081_v44 = vpop.permute.xlu1 %3080  ;;  %v5123_v0 = vpack.c.bf16 %v3059_v8, %v3055_v15  ;;  %v3115_v22 = vmul.f32 %v9621_v16, %v3088_v63  ;;  %v9622_v7 = vld [vmem:[#allocation91_spill] sm:$0xff]  ;;  %v8173_v47 = vmul.f32 %v9619_v23, %v3029_v31  ;;  %v9631_v31 = vld [vmem:[#allocation61_spill] sm:$0xff] }
 0x5b3   : > { %v3087_v54 = vsel %vm924_vm7, %v3075_v39, %v9622_v7  ;;  %v3089_v24 = vsel %vm924_vm7, %v9623_v51, %v3075_v39  ;;  %v3090_v50 = vsel %vm924_vm7, %v3081_v44, %v9618_v19  ;;  %v9624_v20 = vld [vmem:[#allocation51_spill] sm:$0xff]  ;;  %v3084_v46 = vsel %vm924_vm7, %v9620_v10, %v3081_v44  ;;  %v9627_v39 = vld [vmem:[#allocation13_spill] sm:$0xff] }
 0x5b4   : > { %v8163_v33 = vmul.f32 %v9624_v20, %v3088_v63  ;;  %v3119_v15 = vmul.f32 %v9621_v16, %v3089_v24  ;;  %v8167_v8 = vmul.f32 %v9624_v20, %v3089_v24  ;;  %5018 = vmatpush1.bf16.msra.mxu0 %v5017_v14  ;;  %v3116_v57 = vmul.f32 %v9627_v39, %v3086_v45  ;;  %v9630_v24 = vld [vmem:[#allocation9_spill] sm:$0xff] }
 0x5b5   : > { %v8177_v19 = vmul.f32 %v9628_v25, %v3086_v45  ;;  %v3120_v63 = vmul.f32 %v9627_v39, %v3087_v54  ;;  %5124 = vmatprep.subr.bf16.mxu1 %v5123_v0  ;;  %v3114_v20 = vmul.f32 %v9630_v24, %v3090_v50  ;;  %v3117_v44 = vmul.f32 %v9631_v31, %v3084_v46  ;;  %v9635_v16 = vld [vmem:[#allocation93_spill] sm:$0xff] }
 0x5b6   : > { %9625 = vst [vmem:[#allocation45_spill] sm:$0xff] %v8163_v33  ;;  %9626 = vst [vmem:[#allocation50_spill] sm:$0xff] %v8167_v8  ;;  %5126 = vmatpush1.bf16.msra.mxu1 %v5125_v43  ;;  %v3083_v35 = vpop.permute.xlu0 %3082  ;;  %v3135_v10 = vpop.permute.xlu1 %3134  ;;  %v5019_v14 = vpack.c.bf16 %v3119_v15, %v3115_v22  ;;  %v8187_v45 = vmul.f32 %v9632_v29, %v3084_v46  ;;  %v8204_v23 = vmul.f32 %v9628_v25, %v3087_v54  ;;  %v9636_v33 = vld [vmem:[#allocation92_spill] sm:$0xff]  ;;  %v9638_v25 = vld [vmem:[#allocation75_spill] sm:$0xff] }
 0x5b7   : > { %9629 = vst [vmem:[#allocation24_spill] sm:$0xff] %v8177_v19  ;;  %v3085_v0 = vsel %vm924_vm7, %v9622_v7, %v3083_v35  ;;  %v3091_v39 = vsel %vm924_vm7, %v3083_v35, %v9623_v51  ;;  %v3150_v46 = vsel %vm988_vm8, %v9635_v16, %v3135_v10  ;;  %v5129_v7 = vpack.c.bf16 %v3120_v63, %v3116_v57  ;;  %v9637_v35 = vld [vmem:[#allocation95_spill] sm:$0xff]  ;;  %v9639_v57 = vld [vmem:[#allocation29_spill] sm:$0xff]  ;;  %v9640_v63 = vld [vmem:[#allocation94_spill] sm:$0xff] }
 0x5b8   : > { %9633 = vst [vmem:[#allocation47_spill] sm:$0xff] %v8187_v45  ;;  %v3118_v43 = vmul.f32 %v9630_v24, %v3091_v39  ;;  %v3121_v22 = vmul.f32 %v9631_v31, %v3085_v0  ;;  %v8198_v15 = vmul.f32 %v9632_v29, %v3085_v0  ;;  %5020 = vmatprep.subr.bf16.mxu0 %v5019_v14  ;;  %vm9724_vm7 = vmmov %vm9716_vm2 }
 0x5b9   : > { %v8207_v8 = vmul.f32 %v9636_v33, %v3090_v50  ;;  %v3148_v51 = vsel %vm988_vm8, %v3135_v10, %v9637_v35  ;;  %v3177_v54 = vmul.f32 %v9638_v25, %v3150_v46  ;;  %v8237_v45 = vmul.f32 %v9636_v33, %v3091_v39  ;;  %v9647_v39 = vld [vmem:[#allocation123_spill] sm:$0xff] }
 0x5ba   : > { %9634 = vst [vmem:[#allocation87_spill] sm:$0xff] %v8198_v15  ;;  %v5021_v24 = vpack.c.bf16 %v3118_v43, %v3114_v20  ;;  %v3137_v31 = vpop.permute.xlu0 %3136  ;;  %v3143_v0 = vpop.permute.xlu1 %3142  ;;  %v5127_v60 = vpack.c.bf16 %v3121_v22, %v3117_v44  ;;  %v9641_v43 = vld [vmem:[#allocation119_spill] sm:$0xff] }
 0x5bb   : > { %v3149_v50 = vsel %vm988_vm8, %v3137_v31, %v9639_v57  ;;  %v3151_v10 = vsel %vm988_vm8, %v9640_v63, %v3137_v31  ;;  %v3152_v20 = vsel %vm988_vm8, %v3143_v0, %v9635_v16  ;;  %v8227_v29 = vmul.f32 %v9641_v43, %v3150_v46  ;;  %v9644_v31 = vld [vmem:[#allocation124_spill] sm:$0xff] }
 0x5bc   : > { %v3181_v44 = vmul.f32 %v9638_v25, %v3151_v10  ;;  %v8231_v22 = vmul.f32 %v9641_v43, %v3151_v10  ;;  %v3146_v14 = vsel %vm988_vm8, %v9637_v35, %v3143_v0  ;;  %5022 = vmatpush1.bf16.msra.mxu0 %v5021_v24  ;;  %v3178_v15 = vmul.f32 %v9644_v31, %v3148_v51  ;;  %v9646_v10 = vld [vmem:[#allocation115_spill] sm:$0xff] }
 0x5bd   : > { %9642 = vst [vmem:[#allocation52_spill] sm:$0xff] %v8227_v29  ;;  %v8241_v16 = vmul.f32 %v9645_v28, %v3148_v51  ;;  %v3182_v46 = vmul.f32 %v9644_v31, %v3149_v50  ;;  %5128 = vmatprep.subr.bf16.mxu1 %v5127_v60  ;;  %v3176_v43 = vmul.f32 %v9646_v10, %v3152_v20  ;;  %v9651_v25 = vld [vmem:[#allocation27_spill] sm:$0xff]  ;;  %v9652_v29 = vld [vmem:[#allocation122_spill] sm:$0xff] }
 0x5be   : > { %9643 = vst [vmem:[#allocation88_spill] sm:$0xff] %v8231_v22  ;;  %5130 = vmatpush1.bf16.msra.mxu1 %v5129_v7  ;;  %v3145_v1 = vpop.permute.xlu0 %3144  ;;  %v3197_v35 = vpop.permute.xlu1 %3196  ;;  %v5023_v24 = vpack.c.bf16 %v3181_v44, %v3177_v54  ;;  %v3179_v0 = vmul.f32 %v9647_v39, %v3146_v14  ;;  %v8251_v51 = vmul.f32 %v9648_v21, %v3146_v14 }
 0x5bf   : > { %v3147_v60 = vsel %vm988_vm8, %v9639_v57, %v3145_v1  ;;  %v3153_v31 = vsel %vm988_vm8, %v3145_v1, %v9640_v63  ;;  %v3212_v14 = vsel %vm1052_vm9, %v9651_v25, %v3197_v35  ;;  %v8268_v33 = vmul.f32 %v9645_v28, %v3149_v50  ;;  %v9653_v1 = vld [vmem:[#allocation28_spill] sm:$0xff]  ;;  %v9654_v28 = vld [vmem:[#allocation121_spill] sm:$0xff]  ;;  %vm9725_vm8 = vmmov %vm9716_vm2 }
 0x5c0   : > { %9649 = vst [vmem:[#allocation86_spill] sm:$0xff] %v8251_v51  ;;  %v3180_v7 = vmul.f32 %v9646_v10, %v3153_v31  ;;  %v3183_v54 = vmul.f32 %v9647_v39, %v3147_v60  ;;  %v8262_v44 = vmul.f32 %v9648_v21, %v3147_v60  ;;  %5024 = vmatprep.subr.bf16.mxu0 %v5023_v24 }
 0x5c1   : > { %v5133_v57 = vpack.c.bf16 %v3182_v46, %v3178_v15  ;;  %v8271_v22 = vmul.f32 %v9652_v29, %v3152_v20  ;;  %v3210_v63 = vsel %vm1052_vm9, %v3197_v35, %v9653_v1  ;;  %v3239_v50 = vmul.f32 %v9654_v28, %v3212_v14  ;;  %v9655_v15 = vld [vmem:[#allocation96_spill] sm:$0xff]  ;;  %v9656_v46 = vld [vmem:[#allocation30_spill] sm:$0xff] }
 0x5c2   : > { %9650 = vst [vmem:[#allocation57_spill] sm:$0xff] %v8262_v44  ;;  %v5025_v10 = vpack.c.bf16 %v3180_v7, %v3176_v43  ;;  %v3199_v39 = vpop.permute.xlu0 %3198  ;;  %v3205_v60 = vpop.permute.xlu1 %3204  ;;  %v5131_v4 = vpack.c.bf16 %v3183_v54, %v3179_v0  ;;  %v9657_v7 = vld [vmem:[#allocation130_spill] sm:$0xff]  ;;  %v8301_v51 = vmul.f32 %v9652_v29, %v3153_v31 }
 0x5c3   : > { %v3211_v20 = vsel %vm1052_vm9, %v3199_v39, %v9655_v15  ;;  %v3213_v35 = vsel %vm1052_vm9, %v9656_v46, %v3199_v39  ;;  %v3214_v43 = vsel %vm1052_vm9, %v3205_v60, %v9651_v25  ;;  %v8291_v21 = vmul.f32 %v9657_v7, %v3212_v14  ;;  %v9660_v39 = vld [vmem:[#allocation120_spill] sm:$0xff]  ;;  %v9663_v31 = vld [vmem:[#allocation126_spill] sm:$0xff] }
 0x5c4   : > { %v3243_v0 = vmul.f32 %v9654_v28, %v3213_v35  ;;  %v8295_v54 = vmul.f32 %v9657_v7, %v3213_v35  ;;  %v3208_v24 = vsel %vm1052_vm9, %v9653_v1, %v3205_v60  ;;  %5026 = vmatpush1.bf16.msra.mxu0 %v5025_v10  ;;  %v3240_v44 = vmul.f32 %v9660_v39, %v3210_v63  ;;  %v9662_v35 = vld [vmem:[#allocation127_spill] sm:$0xff]  ;;  %v9667_v28 = vld [vmem:[#allocation97_spill] sm:$0xff] }
 0x5c5   : > { %9658 = vst [vmem:[#allocation49_spill] sm:$0xff] %v8291_v21  ;;  %v8305_v25 = vmul.f32 %v9661_v41, %v3210_v63  ;;  %v3244_v14 = vmul.f32 %v9660_v39, %v3211_v20  ;;  %5132 = vmatprep.subr.bf16.mxu1 %v5131_v4  ;;  %v3238_v7 = vmul.f32 %v9662_v35, %v3214_v43  ;;  %v9668_v21 = vld [vmem:[#allocation14_spill] sm:$0xff] }
 0x5c6   : > { %9659 = vst [vmem:[#allocation56_spill] sm:$0xff] %v8295_v54  ;;  %5134 = vmatpush1.bf16.msra.mxu1 %v5133_v57  ;;  %v3207_v6 = vpop.permute.xlu0 %3206  ;;  %v3259_v1 = vpop.permute.xlu1 %3258  ;;  %v5027_v10 = vpack.c.bf16 %v3243_v0, %v3239_v50  ;;  %v3241_v60 = vmul.f32 %v9663_v31, %v3208_v24  ;;  %v8315_v63 = vmul.f32 %v9664_v5, %v3208_v24 }
 0x5c7   : > { %v3209_v4 = vsel %vm1052_vm9, %v9655_v15, %v3207_v6  ;;  %v3215_v39 = vsel %vm1052_vm9, %v3207_v6, %v9656_v46  ;;  %v3274_v24 = vsel %vm1116_vm10, %v9667_v28, %v3259_v1  ;;  %v8332_v29 = vmul.f32 %v9661_v41, %v3211_v20  ;;  %v9670_v6 = vld [vmem:[#allocation99_spill] sm:$0xff]  ;;  %vm9726_vm9 = vmmov %vm9716_vm2 }
 0x5c8   : > { %9665 = vst [vmem:[#allocation6_spill] sm:$0xff] %v8315_v63  ;;  %v3242_v57 = vmul.f32 %v9662_v35, %v3215_v39  ;;  %v3245_v50 = vmul.f32 %v9663_v31, %v3209_v4  ;;  %v8326_v0 = vmul.f32 %v9664_v5, %v3209_v4  ;;  %5028 = vmatprep.subr.bf16.mxu0 %v5027_v10  ;;  %v9671_v41 = vld [vmem:[#allocation63_spill] sm:$0xff] }
 0x5c9   : > { %v5137_v15 = vpack.c.bf16 %v3244_v14, %v3240_v44  ;;  %v8335_v54 = vmul.f32 %v9668_v21, %v3214_v43  ;;  %v3272_v46 = vsel %vm1116_vm10, %v3259_v1, %v9670_v6  ;;  %v3301_v20 = vmul.f32 %v9671_v41, %v3274_v24  ;;  %v9672_v44 = vld [vmem:[#allocation100_spill] sm:$0xff]  ;;  %v9673_v14 = vld [vmem:[#allocation98_spill] sm:$0xff] }
 0x5ca   : > { %9666 = vst [vmem:[#allocation8_spill] sm:$0xff] %v8326_v0  ;;  %v5029_v35 = vpack.c.bf16 %v3242_v57, %v3238_v7  ;;  %v3261_v31 = vpop.permute.xlu0 %3260  ;;  %v3267_v4 = vpop.permute.xlu1 %3266  ;;  %v5135_v30 = vpack.c.bf16 %v3245_v50, %v3241_v60  ;;  %v9674_v57 = vld [vmem:[#allocation15_spill] sm:$0xff]  ;;  %v8365_v63 = vmul.f32 %v9668_v21, %v3215_v39 }
 0x5cb   : > { %9669 = vst [vmem:[#allocation10_spill] sm:$0xff] %v8335_v54  ;;  %v3273_v43 = vsel %vm1116_vm10, %v3261_v31, %v9672_v44  ;;  %v3275_v1 = vsel %vm1116_vm10, %v9673_v14, %v3261_v31  ;;  %v3276_v7 = vsel %vm1116_vm10, %v3267_v4, %v9667_v28  ;;  %v8355_v5 = vmul.f32 %v9674_v57, %v3274_v24  ;;  %v9678_v31 = vld [vmem:[#allocation131_spill] sm:$0xff] }
 0x5cc   : > { %v3305_v60 = vmul.f32 %v9671_v41, %v3275_v1  ;;  %v8359_v50 = vmul.f32 %v9674_v57, %v3275_v1  ;;  %v3270_v10 = vsel %vm1116_vm10, %v9670_v6, %v3267_v4  ;;  %5030 = vmatpush1.bf16.msra.mxu0 %v5029_v35  ;;  %9677 = vst [vmem:[#allocation90_spill] sm:$0xff] %v8365_v63  ;;  %v9680_v1 = vld [vmem:[#allocation66_spill] sm:$0xff]  ;;  %v9681_v4 = vld [vmem:[#allocation65_spill] sm:$0xff] }
 0x5cd   : > { %9675 = vst [vmem:[#allocation25_spill] sm:$0xff] %v8355_v5  ;;  %v3302_v0 = vmul.f32 %v9678_v31, %v3272_v46  ;;  %v8369_v28 = vmul.f32 %v9679_v59, %v3272_v46  ;;  %v3306_v24 = vmul.f32 %v9678_v31, %v3273_v43  ;;  %5136 = vmatprep.subr.bf16.mxu1 %v5135_v30  ;;  %v9684_v41 = vld [vmem:[#allocation101_spill] sm:$0xff]  ;;  %v9700_v63 = vld [vmem:[#allocation106_spill] sm:$0xff] }
 0x5ce   : > { %9676 = vst [vmem:[#allocation12_spill] sm:$0xff] %v8359_v50  ;;  %v3300_v57 = vmul.f32 %v9680_v1, %v3276_v7  ;;  %5138 = vmatpush1.bf16.msra.mxu1 %v5137_v15  ;;  %v3269_v53 = vpop.permute.xlu0 %3268  ;;  %v3321_v6 = vpop.permute.xlu1 %3320  ;;  %v5031_v35 = vpack.c.bf16 %v3305_v60, %v3301_v20  ;;  %v3303_v39 = vmul.f32 %v7802_v17, %v3270_v10 }
 0x5cf   : > { %v8379_v46 = vmul.f32 %v9681_v4, %v3270_v10  ;;  %v3271_v30 = vsel %vm1116_vm10, %v9672_v44, %v3269_v53  ;;  %v3277_v31 = vsel %vm1116_vm10, %v3269_v53, %v9673_v14  ;;  %v3336_v10 = vsel %vm1180_vm11, %v9684_v41, %v3321_v6  ;;  %v9685_v44 = vld [vmem:[#allocation69_spill] sm:$0xff]  ;;  %v9689_v53 = vld [vmem:[#allocation102_spill] sm:$0xff] }
 0x5d0   : > { %v3304_v15 = vmul.f32 %v9680_v1, %v3277_v31  ;;  %v3307_v20 = vmul.f32 %v7802_v17, %v3271_v30  ;;  %v8390_v60 = vmul.f32 %v9681_v4, %v3271_v30  ;;  %5032 = vmatprep.subr.bf16.mxu0 %v5031_v35  ;;  %v8396_v21 = vmul.f32 %v9679_v59, %v3273_v43 }
 0x5d1   : > { %9682 = vst [vmem:[#allocation11_spill] sm:$0xff] %v8379_v46  ;;  %v8399_v5 = vmul.f32 %v9685_v44, %v3277_v31  ;;  %v5141_v43 = vpack.c.bf16 %v3306_v24, %v3302_v0  ;;  %v8410_v35 = vmul.f32 %v9685_v44, %v3276_v7  ;;  %v9688_v31 = vld [vmem:[#allocation68_spill] sm:$0xff]  ;;  %vm9731_vm10 = vcmask 392192  }
 0x5d2   : > { %9683 = vst [vmem:[#allocation91_spill] sm:$0xff] %v8390_v60  ;;  %v5033_v14 = vpack.c.bf16 %v3304_v15, %v3300_v57  ;;  %v3323_v4 = vpop.permute.xlu0 %3322  ;;  %v3329_v30 = vpop.permute.xlu1 %3328  ;;  %v5139_v50 = vpack.c.bf16 %v3307_v20, %v3303_v39  ;;  %v3363_v19 = vmul.f32 %v9688_v31, %v3336_v10  ;;  %v3402_v57 = vld [vmem:[#allocation3 + $0x28] sm:$0xf]  ;;  %v9691_v20 = vld [vmem:[#allocation103_spill] sm:$0xff] }
 0x5d3   : > { %9686 = vst [vmem:[#allocation89_spill] sm:$0xff] %v8399_v5  ;;  %9687 = vst [vmem:[#allocation51_spill] sm:$0xff] %v8410_v35  ;;  %v3337_v17 = vsel %vm1180_vm11, %v9689_v53, %v3323_v4  ;;  %v9690_v15 = vld [vmem:[#allocation33_spill] sm:$0xff]  ;;  %v3332_v0 = vsel %vm1180_vm11, %v9691_v20, %v3329_v30  ;;  %v3338_v7 = vsel %vm1180_vm11, %v3329_v30, %v9684_v41 }
 0x5d4   : > { %v3335_v1 = vsel %vm1180_vm11, %v3323_v4, %v9690_v15  ;;  %v3367_v39 = vmul.f32 %v9688_v31, %v3337_v17  ;;  %5034 = vmatpush1.bf16.msra.mxu0 %v5033_v14  ;;  %5140 = vmatprep.subr.bf16.mxu1 %v5139_v50  ;;  %v9692_v31 = vld [vmem:[#allocation53_spill] sm:$0xff]  ;;  %v3334_v14 = vsel %vm1180_vm11, %v3321_v6, %v9691_v20  ;;  %v9693_v6 = vld [vmem:[#allocation31_spill] sm:$0xff] }
 0x5d5   : > { %5142 = vmatpush1.bf16.msra.mxu1 %v5141_v43  ;;  %v3411_v59 = vrot.slane %v3402_v57, %v9692_v31  ;;  %v3368_v30 = vmul.f32 %v7838_v62, %v3335_v1  ;;  %v3362_v17 = vmul.f32 %v7841_v42, %v3338_v7  ;;  %v3364_v20 = vmul.f32 %v7838_v62, %v3334_v14 }
 0x5d6   : > { %v3331_v4 = vpop.permute.xlu0 %3330  ;;  %v3383_v46 = vpop.permute.xlu1 %3382  ;;  %v5035_v41 = vpack.c.bf16 %v3367_v39, %v3363_v19  ;;  %v3365_v19 = vmul.f32 %v7844_v32, %v3332_v0  ;;  %v9695_v0 = vld [vmem:[#allocation54_spill] sm:$0xff] }
 0x5d7   : > { %v3333_v44 = vsel %vm1180_vm11, %v9690_v15, %v3331_v4  ;;  %v3339_v43 = vsel %vm1180_vm11, %v3331_v4, %v9689_v53  ;;  %v3398_v1 = vsel %vm1244_vm12, %v9693_v6, %v3383_v46  ;;  %v9694_v53 = vld [vmem:[#allocation34_spill] sm:$0xff]  ;;  %v3407_v4 = vrot.slane %v3402_v57, %v9695_v0 }
 0x5d8   : > { %v3366_v39 = vmul.f32 %v7841_v42, %v3339_v43  ;;  %v3369_v50 = vmul.f32 %v7844_v32, %v3333_v44  ;;  %5036 = vmatprep.subr.bf16.mxu0 %v5035_v41  ;;  %v3419_v42 = vrot.slane %v3402_v57, %v9360_v9  ;;  %v3464_v32 = vld [vmem:[#allocation3 + $0x2c] sm:$0xf]  ;;  %v5145_v44 = vpack.c.bf16 %v3368_v30, %v3364_v20  ;;  %v9696_v43 = vld [vmem:[#allocation104_spill] sm:$0xff] }
 0x5d9   : > { %v3425_v41 = vmul.f32 %v3411_v59, %v3398_v1  ;;  %v3473_v1 = vrot.slane %v3464_v32, %v9692_v31  ;;  %vm9733_vm11 = vcmp.lt.s32.totalorder %v5904_v34, 119  ;;  %v9749_v34 = vpack.c.bf16 %v7946_v12, %v7942_v49  ;;  %v9756_v12 = vld [vmem:[#allocation19_spill] sm:$0xff] }
 0x5da   : > { %v5037_v15 = vpack.c.bf16 %v3366_v39, %v3362_v17  ;;  %v3385_v10 = vpop.permute.xlu0 %3384  ;;  %v3391_v24 = vpop.permute.xlu1 %3390  ;;  %v5143_v60 = vpack.c.bf16 %v3369_v50, %v3365_v19  ;;  %v9697_v17 = vld [vmem:[#allocation55_spill] sm:$0xff]  ;;  %v9698_v50 = vld [vmem:[#allocation32_spill] sm:$0xff] }
 0x5db   : > { %v3399_v7 = vsel %vm1244_vm12, %v9694_v53, %v3385_v10  ;;  %v3397_v35 = vsel %vm1244_vm12, %v3385_v10, %v9696_v43  ;;  %v3415_v14 = vrot.slane %v3402_v57, %v9697_v17  ;;  %v3394_v19 = vsel %vm1244_vm12, %v9698_v50, %v3391_v24 }
 0x5dc   : > { %v3429_v62 = vmul.f32 %v3411_v59, %v3399_v7  ;;  %5038 = vmatpush1.bf16.msra.mxu0 %v5037_v15  ;;  %v3400_v39 = vsel %vm1244_vm12, %v3391_v24, %v9693_v6  ;;  %5144 = vmatprep.subr.bf16.mxu1 %v5143_v60  ;;  %v3396_v59 = vsel %vm1244_vm12, %v3383_v46, %v9698_v50 }
 0x5dd   : > { %5146 = vmatpush1.bf16.msra.mxu1 %v5145_v44  ;;  %v3430_v57 = vmul.f32 %v3415_v14, %v3397_v35  ;;  %v3424_v60 = vmul.f32 %v3407_v4, %v3400_v39  ;;  %v3427_v6 = vmul.f32 %v3419_v42, %v3394_v19  ;;  %v9699_v44 = vld [vmem:[#allocation105_spill] sm:$0xff]  ;;  %v3481_v19 = vrot.slane %v3464_v32, %v9360_v9  ;;  %v9701_v39 = vld [vmem:[#allocation108_spill] sm:$0xff] }
 0x5de   : > { %v3393_v30 = vpop.permute.xlu0 %3392  ;;  %v3445_v20 = vpop.permute.xlu1 %3444  ;;  %v5039_v5 = vpack.c.bf16 %v3429_v62, %v3425_v41  ;;  %v3426_v62 = vmul.f32 %v3415_v14, %v3396_v59  ;;  %v3477_v59 = vrot.slane %v3464_v32, %v9697_v17 }
 0x5df   : > { %v3395_v10 = vsel %vm1244_vm12, %v9696_v43, %v3393_v30  ;;  %v3401_v24 = vsel %vm1244_vm12, %v3393_v30, %v9694_v53  ;;  %v3460_v41 = vsel %vm1308_vm13, %v9699_v44, %v3445_v20  ;;  %v3469_v53 = vrot.slane %v3464_v32, %v9695_v0  ;;  %vm9735_vm12 = vmmov %vm9733_vm11 }
 0x5e0   : > { %v3428_v15 = vmul.f32 %v3407_v4, %v3401_v24  ;;  %v3431_v7 = vmul.f32 %v3419_v42, %v3395_v10  ;;  %5040 = vmatprep.subr.bf16.mxu0 %v5039_v5  ;;  %v3526_v4 = vld [vmem:[#allocation3 + $0x30] sm:$0xf]  ;;  %v5149_v42 = vpack.c.bf16 %v3430_v57, %v3426_v62  ;;  %v3487_v5 = vmul.f32 %v3473_v1, %v3460_v41  ;;  %v9702_v10 = vld [vmem:[#allocation107_spill] sm:$0xff] }
 0x5e2   : > { %v5041_v46 = vpack.c.bf16 %v3428_v15, %v3424_v60  ;;  %v3447_v35 = vpop.permute.xlu0 %3446  ;;  %v3453_v50 = vpop.permute.xlu1 %3452  ;;  %v5147_v54 = vpack.c.bf16 %v3431_v7, %v3427_v6  ;;  %v3535_v6 = vrot.slane %v3526_v4, %v9692_v31 }
 0x5e3   : > { %v3461_v43 = vsel %vm1308_vm13, %v9700_v63, %v3447_v35  ;;  %v3459_v30 = vsel %vm1308_vm13, %v3447_v35, %v9701_v39  ;;  %v3456_v24 = vsel %vm1308_vm13, %v9702_v10, %v3453_v50  ;;  %v3462_v60 = vsel %vm1308_vm13, %v3453_v50, %v9699_v44  ;;  %v9703_v50 = vld [vmem:[#allocation38_spill] sm:$0xff] }
 0x5e4   : > { %v3491_v14 = vmul.f32 %v3473_v1, %v3461_v43  ;;  %5042 = vmatpush1.bf16.msra.mxu0 %v5041_v46  ;;  %5148 = vmatprep.subr.bf16.mxu1 %v5147_v54  ;;  %v3458_v1 = vsel %vm1308_vm13, %v3445_v20, %v9702_v10  ;;  %v3492_v32 = vmul.f32 %v3477_v59, %v3459_v30  ;;  %v9704_v10 = vld [vmem:[#allocation36_spill] sm:$0xff] }
 0x5e5   : > { %5150 = vmatpush1.bf16.msra.mxu1 %v5149_v42  ;;  %v3486_v54 = vmul.f32 %v3469_v53, %v3462_v60  ;;  %v3489_v62 = vmul.f32 %v3481_v19, %v3456_v24  ;;  %v3488_v42 = vmul.f32 %v3477_v59, %v3458_v1  ;;  %v3543_v24 = vrot.slane %v3526_v4, %v9360_v9 }
 0x5e6   : > { %v3455_v57 = vpop.permute.xlu0 %3454  ;;  %v3507_v15 = vpop.permute.xlu1 %3506  ;;  %v5043_v7 = vpack.c.bf16 %v3491_v14, %v3487_v5  ;;  %v3539_v1 = vrot.slane %v3526_v4, %v9697_v17 }
 0x5e7   : > { %v3457_v41 = vsel %vm1308_vm13, %v9701_v39, %v3455_v57  ;;  %v3463_v44 = vsel %vm1308_vm13, %v3455_v57, %v9700_v63  ;;  %v3522_v43 = vsel %vm1372_vm14, %v9703_v50, %v3507_v15  ;;  %v3531_v63 = vrot.slane %v3526_v4, %v9695_v0  ;;  %v9705_v57 = vld [vmem:[#allocation110_spill] sm:$0xff]  ;;  %vm9736_vm13 = vmmov %vm9731_vm10 }
 0x5e8   : > { %v3490_v46 = vmul.f32 %v3469_v53, %v3463_v44  ;;  %v3493_v35 = vmul.f32 %v3481_v19, %v3457_v41  ;;  %5044 = vmatprep.subr.bf16.mxu0 %v5043_v7  ;;  %v3596_v53 = vld [vmem:[#allocation3 + $0x38] sm:$0xf]  ;;  %v5153_v19 = vpack.c.bf16 %v3492_v32, %v3488_v42  ;;  %v3549_v60 = vmul.f32 %v3535_v6, %v3522_v43  ;;  %v9706_v41 = vld [vmem:[#allocation109_spill] sm:$0xff] }
 0x5ea   : > { %v5045_v20 = vpack.c.bf16 %v3490_v46, %v3486_v54  ;;  %v3509_v5 = vpop.permute.xlu0 %3508  ;;  %v3515_v30 = vpop.permute.xlu1 %3514  ;;  %v5151_v14 = vpack.c.bf16 %v3493_v35, %v3489_v62  ;;  %v3605_v62 = vrot.slane %v3596_v53, %v9692_v31 }
 0x5eb   : > { %v3523_v39 = vsel %vm1372_vm14, %v9704_v10, %v3509_v5  ;;  %v3521_v7 = vsel %vm1372_vm14, %v3509_v5, %v9705_v57  ;;  %v3518_v44 = vsel %vm1372_vm14, %v9706_v41, %v3515_v30  ;;  %v3524_v54 = vsel %vm1372_vm14, %v3515_v30, %v9703_v50 }
 0x5ec   : > { %v3553_v59 = vmul.f32 %v3535_v6, %v3523_v39  ;;  %5046 = vmatpush1.bf16.msra.mxu0 %v5045_v20  ;;  %5152 = vmatprep.subr.bf16.mxu1 %v5151_v14  ;;  %v3520_v6 = vsel %vm1372_vm14, %v3507_v15, %v9706_v41  ;;  %v3554_v4 = vmul.f32 %v3539_v1, %v3521_v7  ;;  %v9707_v14 = vld [vmem:[#allocation37_spill] sm:$0xff] }
 0x5ed   : > { %5154 = vmatpush1.bf16.msra.mxu1 %v5153_v19  ;;  %v3548_v42 = vmul.f32 %v3531_v63, %v3524_v54  ;;  %v3551_v20 = vmul.f32 %v3543_v24, %v3518_v44  ;;  %v5051_v15 = vpack.c.bf16 %v7353_v13, %v7339_v11  ;;  %v9708_v19 = vld [vmem:[#allocation84_spill] sm:$0xff]  ;;  %v3601_v41 = vrot.slane %v3596_v53, %v9695_v0 }
 0x5ee   : > { %v3517_v32 = vpop.permute.xlu0 %3516  ;;  %v3577_v46 = vpop.permute.xlu1 %3576  ;;  %v5047_v35 = vpack.c.bf16 %v3553_v59, %v3549_v60  ;;  %v9709_v60 = vld [vmem:[#allocation85_spill] sm:$0xff]  ;;  %v3609_v11 = vrot.slane %v3596_v53, %v9697_v17  ;;  %v3613_v13 = vrot.slane %v3596_v53, %v9360_v9  ;;  %v5159_v53 = vpack.c.bf16 %v7367_v40, %v7355_v56 }
 0x5ef   : > { %v3519_v43 = vsel %vm1372_vm14, %v9705_v57, %v3517_v32  ;;  %v3525_v50 = vsel %vm1372_vm14, %v3517_v32, %v9704_v10  ;;  %v3590_v39 = vsel %vm1444_vm15, %v3577_v46, %v9707_v14  ;;  %v5053_v7 = vpack.c.bf16 %v9709_v60, %v9708_v19  ;;  %v9711_v32 = vld [vmem:[#allocation112_spill] sm:$0xff]  ;;  %v9713_v60 = vld [vmem:[#allocation23_spill] sm:$0xff]  ;;  %vm9738_vm14 = vmmov %vm9733_vm11 }
 0x5f0   : > { %v3552_v5 = vmul.f32 %v3531_v63, %v3525_v50  ;;  %v3555_v30 = vmul.f32 %v3543_v24, %v3519_v43  ;;  %5048 = vmatprep.subr.bf16.mxu0 %v5047_v35  ;;  %v3550_v57 = vmul.f32 %v3539_v1, %v3520_v6  ;;  %v9710_v63 = vld [vmem:[#allocation35_spill] sm:$0xff]  ;;  %v3658_v43 = vld [vmem:[#allocation3 + $0x3c] sm:$0xf] }
 0x5f1   : > { %v9712_v6 = vld [vmem:[#allocation111_spill] sm:$0xff]  ;;  %v3667_v56 = vrot.slane %v3658_v43, %v9692_v31 }
 0x5f2   : > { %v5049_v59 = vpack.c.bf16 %v3552_v5, %v3548_v42  ;;  %v3579_v10 = vpop.permute.xlu0 %3578  ;;  %v3585_v54 = vpop.permute.xlu1 %3584  ;;  %v5155_v44 = vpack.c.bf16 %v3555_v30, %v3551_v20  ;;  %v5157_v1 = vpack.c.bf16 %v3554_v4, %v3550_v57  ;;  %v3592_v50 = vsel %vm1444_vm15, %v9712_v6, %v3577_v46  ;;  %v9714_v57 = vld [vmem:[#allocation26_spill] sm:$0xff] }
 0x5f3   : > { %v3591_v24 = vsel %vm1444_vm15, %v3579_v10, %v9710_v63  ;;  %v3593_v35 = vsel %vm1444_vm15, %v9711_v32, %v3579_v10  ;;  %v3619_v42 = vmul.f32 %v3605_v62, %v3590_v39  ;;  %v3588_v5 = vsel %vm1444_vm15, %v9707_v14, %v3585_v54 }
 0x5f4   : > { %v3623_v20 = vmul.f32 %v3605_v62, %v3591_v24  ;;  %5050 = vmatpush1.bf16.msra.mxu0 %v5049_v59  ;;  %v3594_v30 = vsel %vm1444_vm15, %v3585_v54, %v9712_v6  ;;  %5156 = vmatprep.subr.bf16.mxu1 %v5155_v44  ;;  %v3622_v4 = vmul.f32 %v3601_v41, %v3593_v35  ;;  %v9715_v35 = vld [vmem:[#allocation113_spill] sm:$0xff] }
 0x5f5   : > { %5052 = vmatprep.subr.bf16.mxu0 %v5051_v15  ;;  %5158 = vmatpush1.bf16.msra.mxu1 %v5157_v1  ;;  %v3663_v46 = vrot.slane %v3658_v43, %v9695_v0  ;;  %v5161_v59 = vpack.c.bf16 %v9714_v57, %v9713_v60  ;;  %v3618_v14 = vmul.f32 %v3601_v41, %v3592_v50  ;;  %v9717_v1 = vld [vmem:[#allocation42_spill] sm:$0xff]  ;;  %v3720_v60 = vld [vmem:[#allocation3 + $0x40] sm:$0xf] }
 0x5f6   : > { %v3587_v19 = vpop.permute.xlu0 %3586  ;;  %v3639_v62 = vpop.permute.xlu1 %3638  ;;  %v5055_v39 = vpack.c.bf16 %v3623_v20, %v3619_v42  ;;  %5160 = vmatprep.subr.bf16.mxu1 %v5159_v53  ;;  %v3620_v40 = vmul.f32 %v3609_v11, %v3588_v5  ;;  %v3621_v54 = vmul.f32 %v3613_v13, %v3594_v30  ;;  %v9719_v20 = vld [vmem:[#allocation114_spill] sm:$0xff]  ;;  %v3671_v5 = vrot.slane %v3658_v43, %v9697_v17 }
 0x5f7   : > { %v3589_v10 = vsel %vm1444_vm15, %v9710_v63, %v3587_v19  ;;  %v3595_v15 = vsel %vm1444_vm15, %v3587_v19, %v9711_v32  ;;  %v3652_v41 = vsel %vm9716_vm2, %v3639_v62, %v9715_v35  ;;  %v3654_v63 = vsel %vm9718_vm3, %v9717_v1, %v3639_v62  ;;  %vm9740_vm15 = vmmov %vm9733_vm11 }
 0x5f8   : > { %v3624_v44 = vmul.f32 %v3609_v11, %v3589_v10  ;;  %v3625_v24 = vmul.f32 %v3613_v13, %v3595_v15  ;;  %5054 = vmatpush1.bf16.msra.mxu0 %v5053_v7  ;;  %v5057_v6 = vpack.c.bf16 %v3622_v4, %v3618_v14  ;;  %v9721_v13 = vld [vmem:[#allocation40_spill] sm:$0xff]  ;;  %v3675_v30 = vrot.slane %v3658_v43, %v9360_v9 }
 0x5f9   : > { %5056 = vmatprep.subr.bf16.mxu0 %v5055_v39  ;;  %5162 = vmatpush1.bf16.msra.mxu1 %v5161_v59  ;;  %v3680_v19 = vmul.f32 %v3663_v46, %v3654_v63  ;;  %v3681_v62 = vmul.f32 %v3667_v56, %v3652_v41  ;;  %v9727_v63 = vld [vmem:[#allocation39_spill] sm:$0xff] }
 0x5fa   : > { %v5165_v50 = vpack.c.bf16 %v3624_v44, %v3620_v40  ;;  %v3641_v32 = vpop.permute.xlu0 %3640  ;;  %v5163_v42 = vpack.c.bf16 %v3625_v24, %v3621_v54  ;;  %v3647_v53 = vpop.permute.xlu1 %3646  ;;  %v3729_v40 = vrot.slane %v3720_v60, %v9692_v31  ;;  %v8604_v44 = vld [vmem:[%s8792_s8 + $0x8] sm:$0xff] }
 0x5fb   : > { %v3653_v11 = vsel %vm9720_vm4, %v3641_v32, %v9719_v20  ;;  %v3655_v7 = vsel %vm9722_vm5, %v9721_v13, %v3641_v32  ;;  %v3650_v57 = vsel %vm9723_vm6, %v9715_v35, %v3647_v53  ;;  %v3656_v59 = vsel %vm9724_vm7, %v3647_v53, %v9717_v1 }
 0x5fc   : > { %v3684_v4 = vmul.f32 %v3663_v46, %v3655_v7  ;;  %v3685_v39 = vmul.f32 %v3667_v56, %v3653_v11  ;;  %5058 = vmatpush1.bf16.msra.mxu0 %v5057_v6  ;;  %5164 = vmatprep.subr.bf16.mxu1 %v5163_v42  ;;  %v3725_v56 = vrot.slane %v3720_v60, %v9695_v0  ;;  %v9729_v7 = vld [vmem:[#allocation58_spill] sm:$0xff] }
 0x5fd   : > { %5166 = vmatpush1.bf16.msra.mxu1 %v5165_v50  ;;  %v3682_v24 = vmul.f32 %v3671_v5, %v3650_v57  ;;  %v3683_v35 = vmul.f32 %v3675_v30, %v3656_v59  ;;  %v9728_v50 = vld [vmem:[#allocation117_spill] sm:$0xff] }
 0x5fe   : > { %v5061_v14 = vpack.c.bf16 %v3684_v4, %v3680_v19  ;;  %v3649_v10 = vpop.permute.xlu0 %3648  ;;  %v5059_v43 = vpack.c.bf16 %v3685_v39, %v3681_v62  ;;  %v3701_v54 = vpop.permute.xlu1 %3700  ;;  %v3733_v19 = vrot.slane %v3720_v60, %v9697_v17  ;;  %v3737_v62 = vrot.slane %v3720_v60, %v9360_v9  ;;  %v5280_v60 = vld [vmem:[%s8792_s8] sm:$0xff] }
 0x5ff   : > { %v3651_v46 = vsel %vm9725_vm8, %v9719_v20, %v3649_v10  ;;  %v3657_v15 = vsel %vm9726_vm9, %v3649_v10, %v9721_v13  ;;  %v3714_v6 = vsel %vm1572_vm0, %v3701_v54, %v9727_v63  ;;  %v3716_v32 = vsel %vm1572_vm0, %v9728_v50, %v3701_v54  ;;  %v3782_v10 = vld [vmem:[#allocation3 + $0x44] sm:$0xf] }
 0x600   : > { %v3686_v41 = vmul.f32 %v3671_v5, %v3651_v46  ;;  %v3687_v1 = vmul.f32 %v3675_v30, %v3657_v15  ;;  %5060 = vmatprep.subr.bf16.mxu0 %v5059_v43  ;;  %v4389_v13 = vcombine.high %v8604_v44, %v8604_v44  ;;  %v9730_v30 = vld [vmem:[#allocation118_spill] sm:$0xff]  ;;  %v3742_v39 = vmul.f32 %v3725_v56, %v3716_v32 }
 0x601   : > { %5062 = vmatpush1.bf16.msra.mxu0 %v5061_v14  ;;  %v3743_v57 = vmul.f32 %v3729_v40, %v3714_v6 }
 0x602   : > { %v5169_v42 = vpack.c.bf16 %v3686_v41, %v3682_v24  ;;  %v3703_v20 = vpop.permute.xlu0 %3702  ;;  %v5167_v11 = vpack.c.bf16 %v3687_v1, %v3683_v35  ;;  %v3709_v4 = vpop.permute.xlu1 %3708  ;;  %v3787_v35 = vrot.slane %v3782_v10, %v9695_v0  ;;  %v3791_v41 = vrot.slane %v3782_v10, %v9692_v31  ;;  %v9737_v31 = vld [vmem:[#allocation129_spill] sm:$0xff] }
 0x603   : > { %v3715_v5 = vsel %vm1572_vm0, %v3703_v20, %v9729_v7  ;;  %v3717_v53 = vsel %vm1572_vm0, %v9730_v30, %v3703_v20  ;;  %v3712_v43 = vsel %vm1572_vm0, %v9727_v63, %v3709_v4  ;;  %v3718_v46 = vsel %vm1572_vm0, %v3709_v4, %v9728_v50 }
 0x604   : > { %v3746_v59 = vmul.f32 %v3725_v56, %v3717_v53  ;;  %v3747_v14 = vmul.f32 %v3729_v40, %v3715_v5  ;;  %5168 = vmatprep.subr.bf16.mxu1 %v5167_v11  ;;  %4458 = vmatmul.mubr.f32.vlgmr.msra.gmra.mrb[10].mxu0 %v5280_v60  ;;  %v3744_v63 = vmul.f32 %v3733_v19, %v3712_v43  ;;  %v9734_v11 = vld [vmem:[#allocation44_spill] sm:$0xff] }
 0x605   : > { %5170 = vmatpush1.bf16.msra.mxu1 %v5169_v42  ;;  %4777 = vmatprep.mubr.msk.f32.mxu0 %vm9731_vm10, %v4389_v13  ;;  %v3745_v6 = vmul.f32 %v3737_v62, %v3718_v46  ;;  %v9732_v42 = vld [vmem:[#allocation60_spill] sm:$0xff]  ;;  %v3795_v4 = vrot.slane %v3782_v10, %v9697_v17 }
 0x606   : > { %v5065_v15 = vpack.c.bf16 %v3746_v59, %v3742_v39  ;;  %v3711_v54 = vpop.permute.xlu0 %3710  ;;  %v5063_v56 = vpack.c.bf16 %v3747_v14, %v3743_v57  ;;  %v3763_v1 = vpop.permute.xlu1 %3762  ;;  %v3799_v39 = vrot.slane %v3782_v10, %v9360_v9 }
 0x607   : > { %v3713_v40 = vsel %vm1572_vm0, %v9729_v7, %v3711_v54  ;;  %v3719_v24 = vsel %vm1572_vm0, %v3711_v54, %v9730_v30  ;;  %v3776_v20 = vsel %vm9733_vm11, %v3763_v1, %v9732_v42  ;;  %v3778_v7 = vsel %vm9735_vm12, %v9734_v11, %v3763_v1  ;;  %vm9741_vm0 = vmmov %vm9733_vm11 }
 0x608   : > { %v3748_v50 = vmul.f32 %v3733_v19, %v3713_v40  ;;  %v3749_v32 = vmul.f32 %v3737_v62, %v3719_v24  ;;  %5064 = vmatprep.subr.bf16.mxu0 %v5063_v56  ;;  %4600 = vmatmul.mubr.f32.vlgmr.msra.gmra.mrb[10].mxu1 %v5280_v60  ;;  %v9739_v19 = vld [vmem:[#allocation62_spill] sm:$0xff]  ;;  %v3804_v59 = vmul.f32 %v3787_v35, %v3778_v7  ;;  %vm9742_vm1 = vmmov %vm9741_vm0 }
 0x609   : > { %5066 = vmatpush1.bf16.msra.mxu0 %v5065_v15  ;;  %4778 = vmatprep.mubr.msk.f32.mxu1 %vm9736_vm13, %v4389_v13  ;;  %v3805_v14 = vmul.f32 %v3791_v41, %v3776_v20  ;;  %vm9743_vm2 = vmmov %vm9741_vm0  ;;  %v9745_v1 = vpack.c.bf16 %v7878_v36, %v7874_v61  ;;  %v9751_v20 = vpack.c.bf16 %v7902_v37, %v7898_v58  ;;  %v9757_v7 = vld [vmem:[#allocation70_spill] sm:$0xff]  ;;  %v9762_v37 = vld [vmem:[#allocation83_spill] sm:$0xff] }
 0x60a   : > { %v5173_v5 = vpack.c.bf16 %v3748_v50, %v3744_v63  ;;  %v3765_v0 = vpop.permute.xlu0 %3764  ;;  %v5171_v30 = vpack.c.bf16 %v3749_v32, %v3745_v6  ;;  %v3771_v57 = vpop.permute.xlu1 %3770  ;;  %vm9744_vm3 = vmmov %vm9741_vm0  ;;  %v9746_v6 = vld [vmem:[#allocation18_spill] sm:$0xff]  ;;  %v9747_v50 = vld [vmem:[#allocation16_spill] sm:$0xff]  ;;  %v9752_v61 = vpack.c.bf16 %v7865_v27, %v7854_v48  ;;  %v9753_v36 = vpack.c.bf16 %v8016_v3, %v8013_v52 }
 0x60b   : > { %v3777_v53 = vsel %vm9738_vm14, %v3765_v0, %v9737_v31  ;;  %v3779_v62 = vsel %vm9740_vm15, %v9739_v19, %v3765_v0  ;;  %v3774_v13 = vsel %vm9741_vm0, %v9732_v42, %v3771_v57  ;;  %v3780_v60 = vsel %vm9742_vm1, %v3771_v57, %v9734_v11  ;;  %v9754_v11 = vld [vmem:[#allocation71_spill] sm:$0xff]  ;;  %v9763_v0 = vld [vmem:[#allocation78_spill] sm:$0xff]  ;;  %v9768_v3 = vld [vmem:[#allocation81_spill] sm:$0xff] }
 0x60c   : > { %v3808_v43 = vmul.f32 %v3787_v35, %v3779_v62  ;;  %v3809_v46 = vmul.f32 %v3791_v41, %v3777_v53  ;;  %5172 = vmatprep.subr.bf16.mxu1 %v5171_v30  ;;  %v3806_v56 = vmul.f32 %v3795_v4, %v3774_v13  ;;  %v3807_v40 = vmul.f32 %v3799_v39, %v3780_v60  ;;  %v9765_v27 = vld [vmem:[#allocation79_spill] sm:$0xff]  ;;  %v9766_v30 = vld [vmem:[#allocation20_spill] sm:$0xff]  ;;  %v9771_v53 = vld [vmem:[#allocation74_spill] sm:$0xff] }
 0x60d   : > { %5174 = vmatpush1.bf16.msra.mxu1 %v5173_v5  ;;  %v9748_v32 = vpack.c.bf16 %v9746_v6, %v9747_v50  ;;  %v9750_v42 = vpack.c.bf16 %v7910_v2, %v7888_v55  ;;  %v9755_v49 = vpack.c.bf16 %v8010_v38, %v9754_v11  ;;  %v9758_v55 = vpack.c.bf16 %v9756_v12, %v9757_v7  ;;  %v9759_v2 = vld [vmem:[#allocation17_spill] sm:$0xff]  ;;  %v9760_v5 = vld [vmem:[#allocation72_spill] sm:$0xff]  ;;  %v9782_v60 = vld [vmem:[#allocation22_spill] sm:$0xff] }
 0x60e   : > { %v5069_v15 = vpack.c.bf16 %v3808_v43, %v3804_v59  ;;  %v3773_v54 = vpop.permute.xlu0 %3772  ;;  %v5067_v17 = vpack.c.bf16 %v3809_v46, %v3805_v14  ;;  %v9761_v58 = vpack.c.bf16 %v9759_v2, %v9760_v5  ;;  %v9764_v48 = vpack.c.bf16 %v9762_v37, %v9763_v0  ;;  %v9776_v57 = vld [vmem:[#allocation41_spill] sm:$0xff]  ;;  %v9779_v43 = vld [vmem:[#allocation80_spill] sm:$0xff]  ;;  %v9780_v46 = vld [vmem:[#allocation82_spill] sm:$0xff] }
 0x60f   : > { %v3775_v9 = vsel %vm9743_vm2, %v9737_v31, %v3773_v54  ;;  %v3781_v10 = vsel %vm9744_vm3, %v3773_v54, %v9739_v19  ;;  %v9767_v52 = vpack.c.bf16 %v9765_v27, %v9766_v30  ;;  %v9769_v31 = vld [vmem:[#allocation73_spill] sm:$0xff]  ;;  %v9772_v19 = vld [vmem:[#allocation76_spill] sm:$0xff]  ;;  %v9781_v13 = vpack.c.bf16 %v9779_v43, %v9780_v46  ;;  %v9800_v50 = vld [vmem:[#allocation47_spill] sm:$0xff] }
 0x610   : > { %v3810_v24 = vmul.f32 %v3795_v4, %v3775_v9  ;;  %v3811_v35 = vmul.f32 %v3799_v39, %v3781_v10  ;;  %5068 = vmatprep.subr.bf16.mxu0 %v5067_v17  ;;  %v9770_v38 = vpack.c.bf16 %v9768_v3, %v9769_v31  ;;  %v9773_v62 = vpack.c.bf16 %v9771_v53, %v9772_v19  ;;  %v9774_v4 = vld [vmem:[#allocation46_spill] sm:$0xff]  ;;  %v9777_v59 = vld [vmem:[#allocation21_spill] sm:$0xff]  ;;  %v9785_v17 = vld [vmem:[#allocation24_spill] sm:$0xff] }
 0x611   : > { %5070 = vmatpush1.bf16.msra.mxu0 %v5069_v15  ;;  %v9775_v39 = vpack.c.bf16 %v8140_v18, %v9774_v4  ;;  %v9778_v14 = vpack.c.bf16 %v9776_v57, %v9777_v59  ;;  %v9783_v15 = vld [vmem:[#allocation77_spill] sm:$0xff]  ;;  %v9786_v9 = vpack.c.bf16 %v8204_v23, %v9785_v17  ;;  %v9787_v18 = vpack.c.bf16 %v8173_v47, %v8143_v26  ;;  %v9788_v10 = vld [vmem:[#allocation50_spill] sm:$0xff]  ;;  %v9797_v6 = vld [vmem:[#allocation52_spill] sm:$0xff] }
 0x612   : > { %v5177_v41 = vpack.c.bf16 %v3810_v24, %v3806_v56  ;;  %5072 = vmatprep.subr.bf16.mxu0 %v9745_v1  ;;  %v5175_v63 = vpack.c.bf16 %v3811_v35, %v3807_v40  ;;  %v9784_v54 = vpack.c.bf16 %v9782_v60, %v9783_v15  ;;  %v9789_v56 = vld [vmem:[#allocation45_spill] sm:$0xff]  ;;  %v9791_v24 = vld [vmem:[#allocation48_spill] sm:$0xff]  ;;  %v9792_v35 = vld [vmem:[#allocation43_spill] sm:$0xff]  ;;  %v9794_v1 = vpack.c.bf16 %v8268_v33, %v8241_v16 }
 0x613   : > { %v9790_v40 = vpack.c.bf16 %v9788_v10, %v9789_v56  ;;  %v9795_v23 = vpack.c.bf16 %v8237_v45, %v8207_v8  ;;  %v9799_v47 = vld [vmem:[#allocation87_spill] sm:$0xff]  ;;  %v9803_v16 = vpack.c.bf16 %v8301_v51, %v8271_v22  ;;  %v9804_v33 = vld [vmem:[#allocation56_spill] sm:$0xff]  ;;  %v9807_v45 = vld [vmem:[#allocation57_spill] sm:$0xff] }
 0x614   : > { %5176 = vmatprep.subr.bf16.mxu1 %v5175_v63  ;;  %v9796_v63 = vld [vmem:[#allocation88_spill] sm:$0xff]  ;;  %v9811_v11 = vld [vmem:[#allocation90_spill] sm:$0xff]  ;;  %v9815_v22 = vld [vmem:[#allocation25_spill] sm:$0xff] }
 0x615   : > { %5074 = vmatpush1.bf16.msra.mxu0 %v9748_v32  ;;  %5178 = vmatpush1.bf16.msra.mxu1 %v5177_v41  ;;  %v9793_v41 = vpack.c.bf16 %v9791_v24, %v9792_v35  ;;  %v9798_v26 = vpack.c.bf16 %v9796_v63, %v9797_v6  ;;  %v9801_v32 = vpack.c.bf16 %v9799_v47, %v9800_v50  ;;  %v9817_v12 = vld [vmem:[#allocation8_spill] sm:$0xff]  ;;  %v9818_v7 = vld [vmem:[#allocation6_spill] sm:$0xff]  ;;  %v9820_v2 = vld [vmem:[#allocation89_spill] sm:$0xff] }
 0x616   : > { %5076 = vmatprep.subr.bf16.mxu0 %v9749_v34  ;;  %5180 = vmatprep.subr.bf16.mxu1 %v9750_v42  ;;  %v9802_v34 = vpack.c.bf16 %v8332_v29, %v8305_v25  ;;  %v9805_v42 = vld [vmem:[#allocation49_spill] sm:$0xff]  ;;  %v9814_v29 = vld [vmem:[#allocation12_spill] sm:$0xff]  ;;  %v9821_v5 = vld [vmem:[#allocation51_spill] sm:$0xff] }
 0x617   : > { %v9806_v8 = vpack.c.bf16 %v9804_v33, %v9805_v42  ;;  %v9816_v51 = vpack.c.bf16 %v9814_v29, %v9815_v22 }
 0x619   : > { %5078 = vmatpush1.bf16.msra.mxu0 %v9751_v20  ;;  %5182 = vmatpush1.bf16.msra.mxu1 %v9752_v61  ;;  %v9808_v20 = vld [vmem:[#allocation86_spill] sm:$0xff] }
 0x61a   : > { %5080 = vmatprep.subr.bf16.mxu0 %v9753_v36  ;;  %5184 = vmatprep.subr.bf16.mxu1 %v9755_v49  ;;  %v9809_v61 = vpack.c.bf16 %v9807_v45, %v9808_v20  ;;  %v9810_v36 = vpack.c.bf16 %v8396_v21, %v8369_v28  ;;  %v9812_v49 = vld [vmem:[#allocation10_spill] sm:$0xff]  ;;  %v9823_v28 = vld [vmem:[#allocation91_spill] sm:$0xff]  ;;  %v4384_v0 = vpop.permute.xlu1 %4383 }
 0x61b   : > { %v9813_v25 = vpack.c.bf16 %v9811_v11, %v9812_v49  ;;  %v9824_v21 = vld [vmem:[#allocation11_spill] sm:$0xff] }
 0x61c   : > { %v9825_v37 = vpack.c.bf16 %v9823_v28, %v9824_v21 }
 0x61d   : > { %5082 = vmatpush1.bf16.msra.mxu0 %v9758_v55  ;;  %5186 = vmatpush1.bf16.msra.mxu1 %v9761_v58  ;;  %v9819_v55 = vpack.c.bf16 %v9817_v12, %v9818_v7  ;;  %v9822_v58 = vpack.c.bf16 %v9820_v2, %v9821_v5 }
 0x61e   : > { %5084 = vmatprep.subr.bf16.mxu0 %v9764_v48  ;;  %5188 = vmatprep.subr.bf16.mxu1 %v9767_v52 }
 0x621   : > { %5086 = vmatpush1.bf16.msra.mxu0 %v9770_v38  ;;  %5190 = vmatpush1.bf16.msra.mxu1 %v9773_v62 }
 0x622   : > { %5088 = vmatprep.subr.bf16.mxu0 %v9775_v39  ;;  %5192 = vmatprep.subr.bf16.mxu1 %v9778_v14 }
 0x625   : > { %5090 = vmatpush1.bf16.msra.mxu0 %v9781_v13  ;;  %5194 = vmatpush1.bf16.msra.mxu1 %v9784_v54 }
 0x626   : > { %5092 = vmatprep.subr.bf16.mxu0 %v9786_v9  ;;  %5196 = vmatprep.subr.bf16.mxu1 %v9787_v18 }
 0x629   : > { %5094 = vmatpush1.bf16.msra.mxu0 %v9790_v40  ;;  %5198 = vmatpush1.bf16.msra.mxu1 %v9793_v41 }
 0x62a   : > { %5096 = vmatprep.subr.bf16.mxu0 %v9794_v1  ;;  %5200 = vmatprep.subr.bf16.mxu1 %v9795_v23 }
 0x62d   : > { %5098 = vmatpush1.bf16.msra.mxu0 %v9798_v26  ;;  %5202 = vmatpush1.bf16.msra.mxu1 %v9801_v32 }
 0x62e   : > { %5100 = vmatprep.subr.bf16.mxu0 %v9802_v34  ;;  %5204 = vmatprep.subr.bf16.mxu1 %v9803_v16 }
 0x631   : > { %5102 = vmatpush1.bf16.msra.mxu0 %v9806_v8  ;;  %5206 = vmatpush1.bf16.msra.mxu1 %v9809_v61 }
 0x632   : > { %5104 = vmatprep.subr.bf16.mxu0 %v9810_v36  ;;  %5208 = vmatprep.subr.bf16.mxu1 %v9813_v25 }
 0x635   : > { %5106 = vmatpush1.bf16.msra.mxu0 %v9816_v51  ;;  %5210 = vmatpush1.bf16.msra.mxu1 %v9819_v55 }
 0x636   : > { %5212 = vmatprep.subr.bf16.mxu1 %v9822_v58 }
 0x638   : > { %4529 = vmatmul.mubr.f32.vlgmr.msra.gmra.mrb[10].mxu0 %v8604_v44 }
 0x639   : > { %5214 = vmatpush1.bf16.msra.mxu1 %v9825_v37 }
 0x63c   : > { %4671 = vmatmul.mubr.f32.vlgmr.msra.gmra.mrb[10].mxu1 %v8604_v44 }
 0x70b   : > { %v4530_v48 = vpop.f32.mrb[10].mxu0 }
 0x70c   : > { %v5219_v27 = vadd.f32 %v4530_v48, %v4384_v0  ;;  %v4532_v30 = vpop.f32.mrb[11].mxu0 }
 0x70d   : > { %v5220_v52 = vadd.f32 %v4532_v30, %v4384_v0 }
 0x70e   : > { %v4677_v3 = vmax.f32 %v5219_v27, 0.0 }
 0x70f   : > { %v4678_v31 = vmax.f32 %v5220_v52, 0.0  ;;  %v4672_v38 = vpop.f32.mrb[10].mxu1 }
 0x710   : > { %4681 = vst [vmem:[%s5453_s20 + $0x20] sm:$0xf] %v4677_v3  ;;  %v5221_v53 = vadd.f32 %v4672_v38, %v4384_v0  ;;  %v4674_v19 = vpop.f32.mrb[11].mxu1 }
 0x711   : > { %4682 = vst [vmem:[%s5453_s20 + $0x28] sm:$0xf] %v4678_v31  ;;  %v5222_v62 = vadd.f32 %v4674_v19, %v4384_v0 }
 0x712   : > { %v4679_v4 = vmax.f32 %v5221_v53, 0.0 }
 0x713   : > { %v4680_v39 = vmax.f32 %v5222_v62, 0.0 }
 0x714   : > { %4683 = vst [vmem:[%s5453_s20 + $0x30] sm:$0xf] %v4679_v4 }
 0x715   : > { %4684 = vst [vmem:[%s5453_s20 + $0x38] sm:$0xf] %v4680_v39 }
 0x716 PF: > { %s21_s13 = sadd.s32 1, %s5319_s13  }
 0x717   : > { %p18_p3 = scmp.ge.s32.totalorder %s21_s13, 4  }
 0x719   :  { %20 = sbr.rel (!%p18_p3) target bundleno = 1 (0x1), region = 120 }
 0x720   :  { %4706 = vsyncpa [#allocation4], 1 }
 0x721   :  { %4708 = vsyncpa [#allocation4 + $0x1], 1 }

</bundles_post_ra>
